<compile_context>
chip_gen: v7x
topology: tpu7x:2x2x1
jax: 0.10.0
libtpu: 0.0.40
codegen_flags: <defaults>
</compile_context>

<pallas_src>
import jax
import jax.numpy as jnp
from jax.experimental import pallas as pl
from jax.experimental.pallas import tpu as pltpu


def _sigmoid_smearing_kernel(hc_ref, dist_ref, e_ref, soff_ref, out_ref):
    # hc_ref:   (1, 1)   SMEM   0.5 * coeff
    # dist_ref: (R, 128) VMEM   lane-dense block of flattened distances
    # e_ref:    (128, L) bf16   0/1 replication matrix, L = 128 * num_sigmoid
    # soff_ref: (1, L)   f32    tile(0.5 * coeff * offset, 128)
    # out_ref:  (R, L)          lane-dense flat view of the (N, num_sigmoid) output
    hc = hc_ref[0, 0]
    d = hc * dist_ref[...]                                   # (R, 128) f32

    # rep[r, k] = d[r, k // num_sigmoid] via MXU: E has exactly one 1 per
    # column, so each bf16 matmul is exact; the 3-way bf16 split of d restores
    # full f32 precision (3 cheap MXU passes, hidden under the HBM write).
    d0 = d.astype(jnp.bfloat16)
    r1 = d - d0.astype(jnp.float32)
    d1 = r1.astype(jnp.bfloat16)
    d2 = (r1 - d1.astype(jnp.float32)).astype(jnp.bfloat16)
    e = e_ref[...]
    rep = jnp.dot(d0, e, preferred_element_type=jnp.float32)
    rep = rep + jnp.dot(d1, e, preferred_element_type=jnp.float32)
    rep = rep + jnp.dot(d2, e, preferred_element_type=jnp.float32)

    x = rep - soff_ref[...]                                  # 0.5*coeff*(dist - offset)
    # sigmoid(2x) == 0.5*tanh(x) + 0.5 -> single EUP op, no divide.
    out_ref[...] = (0.5 * jnp.tanh(x) + 0.5).astype(out_ref.dtype)


def sigmoid_smearing(dist, offset, coeff, *, rows_per_step=4096,
                     out_dtype=jnp.float32):
    """Pallas equivalent of SigmoidSmearing.forward.

    dist:   any-shaped float array (flattened, like dist.view(-1, 1)).
    offset: (num_sigmoid,) float array.
    coeff:  python float or traced f32 scalar.
    Returns (N, num_sigmoid), N = dist.size.
    """
    num_sigmoid = offset.shape[0]
    lanes = 128 * num_sigmoid                  # lane-dense super-row width

    dist_flat = dist.reshape(-1).astype(jnp.float32)
    n = dist_flat.shape[0]

    # Pad to whole 128-row "super rows" so (N, num_sigmoid) row-major can be
    # viewed as a lane-dense (M, 128*num_sigmoid) array. Padding dist is cheap
    # (<=127 extra f32); the output slice below only triggers for ragged N.
    m = pl.cdiv(n, 128)
    n_pad = m * 128
    if n_pad != n:
        dist_flat = jnp.pad(dist_flat, (0, n_pad - n))
    dist2d = dist_flat.reshape(m, 128)

    # Super-rows per grid step. 32 -> 4096 logical rows -> ~0.8 MiB f32 output
    # per step: amortizes pipeline overhead on all gens and keeps enough grid
    # steps for the v7x 2-TensorCore split.
    r = max(1, rows_per_step // 128)
    if r >= m:
        r = m                                  # full-dim block (always legal)
    else:
        r = ((r + 31) // 32) * 32              # sublane-packing safe for f32/bf16/int8
        r = min(r, m)

    coeff_f = jnp.asarray(coeff, jnp.float32)
    hc = (0.5 * coeff_f).reshape(1, 1)                         # SMEM scalar
    soff = jnp.tile(0.5 * coeff_f * offset.astype(jnp.float32), 128
                    ).reshape(1, lanes)                        # fetched once
    # 0/1 replication matrix: e[j, k] = (j == k // num_sigmoid).
    e = (jnp.arange(128, dtype=jnp.int32)[:, None]
         == (jnp.arange(lanes, dtype=jnp.int32)[None, :] // num_sigmoid)
         ).astype(jnp.bfloat16)

    out_bytes = jnp.dtype(out_dtype).itemsize
    cost = pl.CostEstimate(
        flops=6 * n_pad * lanes + 4 * n_pad * num_sigmoid,
        transcendentals=n_pad * num_sigmoid,
        bytes_accessed=(n_pad * 4 + n_pad * num_sigmoid * out_bytes
                        + e.size * 2 + lanes * 4),
    )

    out = pl.pallas_call(
        _sigmoid_smearing_kernel,
        out_shape=jax.ShapeDtypeStruct((m, lanes), out_dtype),
        grid_spec=pltpu.PrefetchScalarGridSpec(
            num_scalar_prefetch=0,
            grid=(pl.cdiv(m, r),),
            in_specs=[
                pl.BlockSpec(memory_space=pltpu.MemorySpace.SMEM),   # 0.5*coeff
                pl.BlockSpec((r, 128), lambda i: (i, 0)),            # dist block
                pl.BlockSpec((128, lanes), lambda i: (0, 0)),        # E (constant)
                pl.BlockSpec((1, lanes), lambda i: (0, 0)),          # offsets (constant)
            ],
            out_specs=pl.BlockSpec((r, lanes), lambda i: (i, 0)),
        ),
        compiler_params=pltpu.CompilerParams(
            dimension_semantics=("parallel",),
            vmem_limit_bytes=32 * 1024 * 1024,
        ),
        cost_estimate=cost,
    )(hc, dist2d, e, soff)

    result = out.reshape(n_pad, num_sigmoid)   # free: contiguous reshape
    if n_pad != n:
        result = result[:n]                    # only pays for ragged N
    return result


def make_sigmoid_smearing_params(start=-5.0, stop=5.0, num_sigmoid=50,
                                 basis_width_scalar=1.0):
    """Deterministic parameter init matching SigmoidSmearing.__init__.

    coeff stays a traced jnp scalar (no host sync, no recompile per value).
    """
    offset = jnp.linspace(start, stop, num_sigmoid, dtype=jnp.float32)
    coeff = jnp.asarray(basis_width_scalar, jnp.float32) / (offset[1] - offset[0])
    return offset, coeff


if __name__ == "__main__":
    key1, key2 = jax.random.split(jax.random.PRNGKey(0))
    offset, coeff = make_sigmoid_smearing_params(
        start=-5.0, stop=5.0, num_sigmoid=50, basis_width_scalar=1.0)

    # Case 1: small ragged N (not a multiple of 128) -> padded + sliced path.
    n1 = 300
    d1 = jax.random.uniform(key1, (n1,), minval=0.0, maxval=8.0,
                            dtype=jnp.float32)
    out1 = jax.block_until_ready(sigmoid_smearing(d1, offset, coeff))
    ref1 = jax.nn.sigmoid(coeff * (d1.reshape(-1, 1) - offset.reshape(1, -1)))
    assert out1.shape == (n1, 50), out1.shape
    assert jnp.allclose(out1, ref1, atol=5e-6), float(jnp.max(jnp.abs(out1 - ref1)))

    # Case 2: multi-step grid (ragged super-row count) + ragged tail rows.
    n2 = 8229
    d2 = jax.random.uniform(key2, (n2,), minval=0.0, maxval=8.0,
                            dtype=jnp.float32)
    out2 = jax.block_until_ready(
        sigmoid_smearing(d2, offset, coeff, rows_per_step=4096))
    ref2 = jax.nn.sigmoid(coeff * (d2.reshape(-1, 1) - offset.reshape(1, -1)))
    assert out2.shape == (n2, 50), out2.shape
    assert jnp.allclose(out2, ref2, atol=5e-6), float(jnp.max(jnp.abs(out2 - ref2)))

    # Case 3: bf16 output (halves HBM writeback bytes on this write-bound op).
    out3 = jax.block_until_ready(
        sigmoid_smearing(d1, offset, coeff, out_dtype=jnp.bfloat16))
    assert out3.dtype == jnp.bfloat16
    assert jnp.allclose(out3.astype(jnp.float32), ref1, atol=5e-3), \
        float(jnp.max(jnp.abs(out3.astype(jnp.float32) - ref1)))

    print("KERNEL_OK")
</pallas_src>

<mosaic_0001>
module attributes {stable_mosaic.version = 11 : i64} {
  func.func @_sigmoid_smearing_kernel(%arg0: i32, %arg1: memref<1x1xf32, #tpu.memory_space<smem>>, %arg2: memref<3x128xf32, #tpu.memory_space<vmem>>, %arg3: memref<128x6400xbf16, #tpu.memory_space<vmem>>, %arg4: memref<1x6400xf32, #tpu.memory_space<vmem>>, %arg5: memref<3x6400xf32, #tpu.memory_space<vmem>>) attributes {dimension_semantics = [#tpu.dimension_semantics<parallel>], iteration_bounds = array<i64: 1>, scalar_prefetch = 0 : i64, scratch_operands = 0 : i64, tpu.core_type = #tpu.core_type<tc>, window_params = [{transform_indices = @transform_0, window_bounds = array<i64: 1, 1>}, {transform_indices = @transform_1, window_bounds = array<i64: 3, 128>}, {pipeline_mode = #tpu.pipeline_mode<synchronous>, transform_indices = @transform_2, window_bounds = array<i64: 128, 6400>}, {pipeline_mode = #tpu.pipeline_mode<synchronous>, transform_indices = @transform_3, window_bounds = array<i64: 1, 6400>}, {transform_indices = @transform_4, window_bounds = array<i64: 3, 6400>}]} {
    %c0 = arith.constant 0 : index
    %c0_0 = arith.constant 0 : index
    %0 = memref.load %arg1[%c0, %c0_0] : memref<1x1xf32, #tpu.memory_space<smem>>
    %c0_1 = arith.constant 0 : index
    %c0_2 = arith.constant 0 : index
    %1 = vector.load %arg2[%c0_1, %c0_2] : memref<3x128xf32, #tpu.memory_space<vmem>>, vector<3x128xf32>
    %2 = vector.broadcast %0 : f32 to vector<3x128xf32>
    %3 = arith.mulf %2, %1 : vector<3x128xf32>
    %4 = arith.truncf %3 : vector<3x128xf32> to vector<3x128xbf16>
    %5 = arith.extf %4 : vector<3x128xbf16> to vector<3x128xf32>
    %6 = arith.subf %3, %5 : vector<3x128xf32>
    %7 = arith.truncf %6 : vector<3x128xf32> to vector<3x128xbf16>
    %8 = arith.extf %7 : vector<3x128xbf16> to vector<3x128xf32>
    %9 = arith.subf %6, %8 : vector<3x128xf32>
    %10 = arith.truncf %9 : vector<3x128xf32> to vector<3x128xbf16>
    %c0_3 = arith.constant 0 : index
    %c0_4 = arith.constant 0 : index
    %11 = vector.load %arg3[%c0_3, %c0_4] : memref<128x6400xbf16, #tpu.memory_space<vmem>>, vector<128x6400xbf16>
    %cst = arith.constant dense<0.000000e+00> : vector<3x6400xf32>
    %12 = tpu.matmul %4, %11, %cst {dimension_numbers = #tpu.dot_dimension_numbers<[1], [0], [0], [1], [0, 0, 1, 1], [], []>} : vector<3x128xbf16>, vector<128x6400xbf16>, vector<3x6400xf32> -> vector<3x6400xf32>
    %cst_5 = arith.constant dense<0.000000e+00> : vector<3x6400xf32>
    %13 = tpu.matmul %7, %11, %cst_5 {dimension_numbers = #tpu.dot_dimension_numbers<[1], [0], [0], [1], [0, 0, 1, 1], [], []>} : vector<3x128xbf16>, vector<128x6400xbf16>, vector<3x6400xf32> -> vector<3x6400xf32>
    %14 = arith.addf %12, %13 : vector<3x6400xf32>
    %cst_6 = arith.constant dense<0.000000e+00> : vector<3x6400xf32>
    %15 = tpu.matmul %10, %11, %cst_6 {dimension_numbers = #tpu.dot_dimension_numbers<[1], [0], [0], [1], [0, 0, 1, 1], [], []>} : vector<3x128xbf16>, vector<128x6400xbf16>, vector<3x6400xf32> -> vector<3x6400xf32>
    %16 = arith.addf %14, %15 : vector<3x6400xf32>
    %c0_7 = arith.constant 0 : index
    %c0_8 = arith.constant 0 : index
    %17 = vector.load %arg4[%c0_7, %c0_8] : memref<1x6400xf32, #tpu.memory_space<vmem>>, vector<1x6400xf32>
    %18 = vector.broadcast %17 : vector<1x6400xf32> to vector<3x6400xf32>
    %19 = arith.subf %16, %18 : vector<3x6400xf32>
    %20 = math.tanh %19 : vector<3x6400xf32>
    %cst_9 = arith.constant 5.000000e-01 : f32
    %21 = vector.broadcast %cst_9 : f32 to vector<3x6400xf32>
    %22 = arith.mulf %21, %20 : vector<3x6400xf32>
    %cst_10 = arith.constant 5.000000e-01 : f32
    %23 = vector.broadcast %cst_10 : f32 to vector<3x6400xf32>
    %24 = arith.addf %22, %23 : vector<3x6400xf32>
    %c0_11 = arith.constant 0 : index
    %c0_12 = arith.constant 0 : index
    %25 = vector.load %arg5[%c0_11, %c0_12] : memref<3x6400xf32, #tpu.memory_space<vmem>>, vector<3x6400xf32>
    tpu.vector_store %arg5[%c0_11, %c0_12], %24 {strides = array<i32>} : memref<3x6400xf32, #tpu.memory_space<vmem>>, vector<3x6400xf32>,
    return
  }
  func.func @transform_0(%arg0: i32) -> (i32, i32) {
    %c0_i32 = arith.constant 0 : i32
    %c0_i32_0 = arith.constant 0 : i32
    %c0_i32_1 = arith.constant 0 : i32
    return %c0_i32, %c0_i32_0 : i32, i32
  }
  func.func @transform_1(%arg0: i32) -> (i32, i32) {
    %c0_i32 = arith.constant 0 : i32
    %c0_i32_0 = arith.constant 0 : i32
    return %arg0, %c0_i32 : i32, i32
  }
  func.func @transform_2(%arg0: i32) -> (i32, i32) {
    %c0_i32 = arith.constant 0 : i32
    %c0_i32_0 = arith.constant 0 : i32
    %c0_i32_1 = arith.constant 0 : i32
    return %c0_i32, %c0_i32_0 : i32, i32
  }
  func.func @transform_3(%arg0: i32) -> (i32, i32) {
    %c0_i32 = arith.constant 0 : i32
    %c0_i32_0 = arith.constant 0 : i32
    %c0_i32_1 = arith.constant 0 : i32
    return %c0_i32, %c0_i32_0 : i32, i32
  }
  func.func @transform_4(%arg0: i32) -> (i32, i32) {
    %c0_i32 = arith.constant 0 : i32
    %c0_i32_0 = arith.constant 0 : i32
    return %arg0, %c0_i32 : i32, i32
  }
}

</mosaic_0001>

<bundles_post_ra>
// kernel: tpu_custom_call.1
= control target key start
LH: loop header
LB: loop body
LE: loop exit
PB: predicated region body
PF: predicated region fallthrough
CT: control target
= control target key end

     0   :  { %10 = vsyncpa [#allocation4], 0  ;;  %s9760_s0 = inlined_call_operand.<no memory space> [shape: f32[1,1], index: 0, kind: input, shape index: {}]   ;;  %s9761_s1 = inlined_call_operand.hbm [shape: f32[3,128], index: 1, kind: input, shape index: {}]   ;;  %s9762_s2 = inlined_call_operand.hbm [shape: bf16[128,6400], index: 2, kind: input, shape index: {}]   ;;  %s9763_s3 = inlined_call_operand.hbm [shape: f32[1,6400], index: 3, kind: input, shape index: {}]   ;;  %s9764_s4 = inlined_call_operand.hbm [shape: f32[3,6400], index: 4, kind: output, shape index: {}]  }
   0x1   :  { %11 = vsyncpa [#allocation7], 0 }
   0x2   :  { %12 = vsyncpa [#allocation5], 0  ;;  %s8062_s15 = smov [#allocation6]   ;;  %s7968_s19 = scalar_lea.hbm %s9762_s2, 51200 }
   0x3   :  { %s30_s16 = sshll.u32 %s8062_s15, 4  ;;  %p7969_p0 = scmp.ne.s32.totalorder %s9762_s2, %s7968_s19  ;;  %s31_s16 = int_to_ptr.vmem [resolvable:$true] %s30_s16 }
   0x4   :  { %p7972_p1 = scmp.lt.u32.totalorder %s7968_s19, %s9762_s2 }
   0x6   :  { %p7974_p2 = pnand %p7972_p1, %p7969_p0 }
   0x8   :  { %7977 = shalt.err (!%p7974_p2)
}
   0x9   :  { %s7978_s24 = scalar_lea.vmem %s31_s16, 51200  ;;  %p7983_p4 = scmp.lt.s32.totalorder %s31_s16, %s31_s16 }
   0xa   :  { %p7979_p3 = scmp.ne.s32.totalorder %s31_s16, %s7978_s24  ;;  %p7984_p5 = scmp.lt.s32.totalorder %s7978_s24, %s7978_s24 }
   0xc   :  { %p7985_p6 = por %p7984_p5, %p7983_p4 }
   0xe   :  { %p7986_p7 = pnand %p7985_p6, %p7979_p3 }
  0x10   :  { %7989 = shalt.err (!%p7986_p7)
}
  0x11   :  { %s8063_s25 = smov 3200   ;;  %s8064_s26 = smov 200  }
  0x12   :  { %36 = dma.hbm_to_vmem [thread:$0]  %s9762_s2, 51200, %s31_s16, [#allocation7], %s8063_s25, %s8063_s25, %s8064_s26  }
  0x13   :  { %s8065_s29 = smov [#allocation3]   ;;  %s8066_s5 = smov [#allocation8]  }
  0x14   :  { %s21_s30 = sshll.u32 %s8065_s29, 4  ;;  %s43_s6 = sshll.u32 %s8066_s5, 4  ;;  %s22_s30 = int_to_ptr.vmem [resolvable:$true] %s21_s30  ;;  %s44_s6 = int_to_ptr.vmem [resolvable:$true] %s43_s6 }
  0x15   :  { %s7990_s9 = scalar_lea.hbm %s9761_s1, 64 }
  0x16   :  { %p7991_p8 = scmp.ne.s32.totalorder %s9761_s1, %s7990_s9  ;;  %p7994_p9 = scmp.lt.u32.totalorder %s7990_s9, %s9761_s1 }
  0x18   :  { %p7996_p10 = pnand %p7994_p9, %p7991_p8 }
  0x1a   :  { %7999 = shalt.err (!%p7996_p10)
}
  0x1b   :  { %s8000_s2 = scalar_lea.vmem %s22_s30, 64  ;;  %p8005_p12 = scmp.lt.s32.totalorder %s22_s30, %s22_s30 }
  0x1c   :  { %p8001_p11 = scmp.ne.s32.totalorder %s22_s30, %s8000_s2  ;;  %p8006_p13 = scmp.lt.s32.totalorder %s8000_s2, %s8000_s2 }
  0x1e   :  { %p8007_p0 = por %p8006_p13, %p8005_p12 }
  0x20   :  { %p8008_p1 = pnand %p8007_p0, %p8001_p11 }
  0x22   :  { %8011 = shalt.err (!%p8008_p1)
}
  0x23   :  { %24 = dma.hbm_to_vmem [thread:$0]  %s9761_s1, 64, %s22_s30, [#allocation4]  }
  0x24   :  { %s8012_s18 = scalar_lea.hbm %s9763_s3, 800 }
  0x25   :  { %p8013_p2 = scmp.ne.s32.totalorder %s9763_s3, %s8012_s18  ;;  %p8016_p3 = scmp.lt.u32.totalorder %s8012_s18, %s9763_s3 }
  0x27   :  { %p8018_p4 = pnand %p8016_p3, %p8013_p2 }
  0x29   :  { %8021 = shalt.err (!%p8018_p4)
}
  0x2a   :  { %s8022_s23 = scalar_lea.vmem %s44_s6, 800  ;;  %p8027_p6 = scmp.lt.s32.totalorder %s44_s6, %s44_s6 }
  0x2b   :  { %p8023_p5 = scmp.ne.s32.totalorder %s44_s6, %s8022_s23  ;;  %p8028_p7 = scmp.lt.s32.totalorder %s8022_s23, %s8022_s23 }
  0x2d   :  { %p8029_p8 = por %p8028_p7, %p8027_p6 }
  0x2f   :  { %p8030_p9 = pnand %p8029_p8, %p8023_p5 }
  0x31   :  { %8033 = shalt.err (!%p8030_p9)
}
  0x32   :  { %46 = dma.hbm_to_vmem [thread:$0]  %s9763_s3, 800, %s44_s6, [#allocation7]  }
  0x33   :  { %8056 = dma.done.wait [#allocation4], 64  }
  0x34   :  { %8057 = vsyncadd [#allocation4], 4294967232 }
  0x35   :  { %8058 = dma.done.wait [#allocation7], 52000  }
  0x36   :  { %8059 = vsyncadd [#allocation7], 4294915296  ;;  %v9765_v0 = vmov 0   ;;  %v6803_v1 = vld [vmem:[#allocation6 + $0x4] ss:$200 sps:$4 sm:$0xff]   ;;  %v59_v27 = vstv %s9760_s0  ;;  %s8068_s0 = smov [#allocation9]  }
  0x37   :  { %2500 = vmatprep.mubr.bf16.mxu1 %v9765_v0  ;;  %2582 = vmatprep.mubr.bf16.mxu0 %v9765_v0  ;;  %v6805_v2 = vld [vmem:[#allocation6 + $0x14] ss:$200 sps:$4 sm:$0xff]   ;;  %v6807_v3 = vld [vmem:[#allocation6] ss:$200 sps:$4 sm:$0xff]   ;;  %v6808_v4 = vld [vmem:[#allocation6 + $0x10] ss:$200 sps:$4 sm:$0xff]  }
  0x38   :  { %2468 = vmatprep.subr.bf16.mxu1 %v6803_v1  ;;  %2550 = vmatprep.subr.bf16.mxu0 %v6805_v2  ;;  %v6809_v5 = vld [vmem:[#allocation6 + $0x194] ss:$200 sps:$4 sm:$0xff]   ;;  %v6811_v6 = vld [vmem:[#allocation6 + $0x1a4] ss:$200 sps:$4 sm:$0xff]   ;;  %v6813_v7 = vld [vmem:[#allocation6 + $0x190] ss:$200 sps:$4 sm:$0xff]  }
  0x39   :  { %2469 = vmatpush1.bf16.msra.mxu1 %v6807_v3  ;;  %2551 = vmatpush1.bf16.msra.mxu0 %v6808_v4  ;;  %v6814_v8 = vld [vmem:[#allocation6 + $0x1a0] ss:$200 sps:$4 sm:$0xff]   ;;  %v6815_v9 = vld [vmem:[#allocation6 + $0x324] ss:$200 sps:$4 sm:$0xff]   ;;  %v6817_v10 = vld [vmem:[#allocation6 + $0x334] ss:$200 sps:$4 sm:$0xff]  }
  0x3a   :  { %2470 = vmatprep.subr.bf16.mxu1 %v6809_v5  ;;  %2552 = vmatprep.subr.bf16.mxu0 %v6811_v6  ;;  %v6819_v11 = vld [vmem:[#allocation6 + $0x320] ss:$200 sps:$4 sm:$0xff]   ;;  %v6820_v12 = vld [vmem:[#allocation6 + $0x330] ss:$200 sps:$4 sm:$0xff]   ;;  %v6821_v13 = vld [vmem:[#allocation6 + $0x4b4] ss:$200 sps:$4 sm:$0xff]  }
  0x3b   :  { %v6823_v14 = vld [vmem:[#allocation6 + $0x4c4] ss:$200 sps:$4 sm:$0xff]   ;;  %v6825_v15 = vld [vmem:[#allocation6 + $0x4b0] ss:$200 sps:$4 sm:$0xff]   ;;  %v6826_v16 = vld [vmem:[#allocation6 + $0x4c0] ss:$200 sps:$4 sm:$0xff]  }
  0x3c   :  { %v6827_v17 = vld [vmem:[#allocation6 + $0x644] ss:$200 sps:$4 sm:$0xff]   ;;  %v6829_v18 = vld [vmem:[#allocation6 + $0x654] ss:$200 sps:$4 sm:$0xff]   ;;  %v6831_v19 = vld [vmem:[#allocation6 + $0x640] ss:$200 sps:$4 sm:$0xff]  }
  0x3d   :  { %2471 = vmatpush1.bf16.msra.mxu1 %v6813_v7  ;;  %2553 = vmatpush1.bf16.msra.mxu0 %v6814_v8  ;;  %v6832_v20 = vld [vmem:[#allocation6 + $0x650] ss:$200 sps:$4 sm:$0xff]   ;;  %v6833_v21 = vld [vmem:[#allocation6 + $0x7d4] ss:$200 sps:$4 sm:$0xff]   ;;  %v6835_v22 = vld [vmem:[#allocation6 + $0x7e4] ss:$200 sps:$4 sm:$0xff]  }
  0x3e   :  { %2472 = vmatprep.subr.bf16.mxu1 %v6815_v9  ;;  %2554 = vmatprep.subr.bf16.mxu0 %v6817_v10  ;;  %v6837_v23 = vld [vmem:[#allocation6 + $0x7d0] ss:$200 sps:$4 sm:$0xff]   ;;  %v6838_v24 = vld [vmem:[#allocation6 + $0x7e0] ss:$200 sps:$4 sm:$0xff]   ;;  %v6839_v25 = vld [vmem:[#allocation6 + $0x964] ss:$200 sps:$4 sm:$0xff]  }
  0x3f   :  { %v6841_v26 = vld [vmem:[#allocation6 + $0x974] ss:$200 sps:$4 sm:$0xff]   ;;  %v6843_v28 = vld [vmem:[#allocation6 + $0x960] ss:$200 sps:$4 sm:$0xff]   ;;  %v6844_v29 = vld [vmem:[#allocation6 + $0x970] ss:$200 sps:$4 sm:$0xff]  }
  0x40   :  { %v58_v30 = vld [vmem:[#allocation3] sm:$0x7]  ;;  %v6847_v32 = vld [vmem:[#allocation6 + $0xb04] ss:$200 sps:$4 sm:$0xff]   ;;  %v6849_v34 = vld [vmem:[#allocation6 + $0xaf0] ss:$200 sps:$4 sm:$0xff]  }
  0x41   :  { %2473 = vmatpush1.bf16.msra.mxu1 %v6819_v11  ;;  %2555 = vmatpush1.bf16.msra.mxu0 %v6820_v12  ;;  %v6845_v31 = vld [vmem:[#allocation6 + $0xaf4] ss:$200 sps:$4 sm:$0xff]   ;;  %v60_v33 = vmul.f32 %v59_v27, %v58_v30  ;;  %v6850_v36 = vld [vmem:[#allocation6 + $0xb00] ss:$200 sps:$4 sm:$0xff]   ;;  %v6856_v38 = vld [vmem:[#allocation6 + $0x24] ss:$200 sps:$4 sm:$0xff]  }
  0x42   :  { %2474 = vmatprep.subr.bf16.mxu1 %v6821_v13  ;;  %2556 = vmatprep.subr.bf16.mxu0 %v6823_v14  ;;  %v6853_v37 = vld [vmem:[#allocation6 + $0xc] ss:$200 sps:$4 sm:$0xff]   ;;  %v6851_v40 = vld [vmem:[#allocation6 + $0x8] ss:$200 sps:$4 sm:$0xff]   ;;  %v6859_v44 = vld [vmem:[#allocation6 + $0x19c] ss:$200 sps:$4 sm:$0xff]  }
  0x43   :  { %v8135_v35 = vpack.c.bf16 %v60_v33, %v60_v33  ;;  %v6854_v42 = vld [vmem:[#allocation6 + $0x20] ss:$200 sps:$4 sm:$0xff]   ;;  %v6862_v45 = vld [vmem:[#allocation6 + $0x1b4] ss:$200 sps:$4 sm:$0xff]   ;;  %v6860_v47 = vld [vmem:[#allocation6 + $0x1b0] ss:$200 sps:$4 sm:$0xff]  }
  0x44   :  { %v6857_v46 = vld [vmem:[#allocation6 + $0x198] ss:$200 sps:$4 sm:$0xff]   ;;  %v6865_v48 = vld [vmem:[#allocation6 + $0x32c] ss:$200 sps:$4 sm:$0xff]   ;;  %v6863_v50 = vld [vmem:[#allocation6 + $0x328] ss:$200 sps:$4 sm:$0xff]  }
  0x45   :  { %2475 = vmatpush1.bf16.msra.mxu1 %v6825_v15  ;;  %2557 = vmatpush1.bf16.msra.mxu0 %v6826_v16  ;;  %v62_v39 = vunpack.c.l.bf16 %v8135_v35  ;;  %v6868_v49 = vld [vmem:[#allocation6 + $0x344] ss:$200 sps:$4 sm:$0xff]   ;;  %v6866_v51 = vld [vmem:[#allocation6 + $0x340] ss:$200 sps:$4 sm:$0xff]   ;;  %v6874_v53 = vld [vmem:[#allocation6 + $0x4d4] ss:$200 sps:$4 sm:$0xff]  }
  0x46   :  { %2476 = vmatprep.subr.bf16.mxu1 %v6827_v17  ;;  %2558 = vmatprep.subr.bf16.mxu0 %v6829_v18  ;;  %v6871_v52 = vld [vmem:[#allocation6 + $0x4bc] ss:$200 sps:$4 sm:$0xff]   ;;  %v6869_v54 = vld [vmem:[#allocation6 + $0x4b8] ss:$200 sps:$4 sm:$0xff]   ;;  %v6877_v56 = vld [vmem:[#allocation6 + $0x64c] ss:$200 sps:$4 sm:$0xff]  }
  0x47   :  { %v8138_v41 = vsub.f32 %v60_v33, %v62_v39  ;;  %v6872_v55 = vld [vmem:[#allocation6 + $0x4d0] ss:$200 sps:$4 sm:$0xff]   ;;  %v6880_v57 = vld [vmem:[#allocation6 + $0x664] ss:$200 sps:$4 sm:$0xff]   ;;  %v6878_v59 = vld [vmem:[#allocation6 + $0x660] ss:$200 sps:$4 sm:$0xff]  }
  0x48   :  { %v6875_v58 = vld [vmem:[#allocation6 + $0x648] ss:$200 sps:$4 sm:$0xff]   ;;  %v6883_v60 = vld [vmem:[#allocation6 + $0x7dc] ss:$200 sps:$4 sm:$0xff]   ;;  %v6881_v62 = vld [vmem:[#allocation6 + $0x7d8] ss:$200 sps:$4 sm:$0xff]  }
  0x49   :  { %2477 = vmatpush1.bf16.msra.mxu1 %v6831_v19  ;;  %2559 = vmatpush1.bf16.msra.mxu0 %v6832_v20  ;;  %10047 = vst [vmem:[#allocation13_spill] sm:$0xff] %v8138_v41  ;;  %v8142_v43 = vpack.c.bf16 %v8138_v41, %v8138_v41  ;;  %v6886_v61 = vld [vmem:[#allocation6 + $0x7f4] ss:$200 sps:$4 sm:$0xff]   ;;  %v6884_v63 = vld [vmem:[#allocation6 + $0x7f0] ss:$200 sps:$4 sm:$0xff]   ;;  %s6188_s26 = sshll.u32 %s8068_s0, 4  ;;  %s6189_s26 = int_to_ptr.vmem [resolvable:$true] %s6188_s26 }
  0x4a   :  { %2478 = vmatprep.subr.bf16.mxu1 %v6833_v21  ;;  %2560 = vmatprep.subr.bf16.mxu0 %v6835_v22  ;;  %v6889_v1 = vld [vmem:[#allocation6 + $0x96c] ss:$200 sps:$4 sm:$0xff]   ;;  %v6887_v3 = vld [vmem:[#allocation6 + $0x968] ss:$200 sps:$4 sm:$0xff]   ;;  %v6895_v5 = vld [vmem:[#allocation6 + $0xafc] ss:$200 sps:$4 sm:$0xff]   ;;  %p8039_p11 = scmp.lt.s32.totalorder %s6189_s26, %s6189_s26 }
  0x4b   :  { %10048 = vst [vmem:[#allocation14_spill] sm:$0xff] %v8142_v43  ;;  %v6892_v2 = vld [vmem:[#allocation6 + $0x984] ss:$200 sps:$4 sm:$0xff]   ;;  %v6890_v4 = vld [vmem:[#allocation6 + $0x980] ss:$200 sps:$4 sm:$0xff]   ;;  %s8034_s27 = scalar_lea.vmem %s6189_s26, 3200 }
  0x4c   :  { %v6898_v6 = vld [vmem:[#allocation6 + $0xb14] ss:$200 sps:$4 sm:$0xff]   ;;  %v6893_v7 = vld [vmem:[#allocation6 + $0xaf8] ss:$200 sps:$4 sm:$0xff]   ;;  %v6910_v14 = vld [vmem:[#allocation6 + $0x1c4] ss:$200 sps:$4 sm:$0xff]   ;;  %p8035_p10 = scmp.ne.s32.totalorder %s6189_s26, %s8034_s27  ;;  %p8040_p12 = scmp.lt.s32.totalorder %s8034_s27, %s8034_s27 }
  0x4d   :  { %2479 = vmatpush1.bf16.msra.mxu1 %v6837_v23  ;;  %2561 = vmatpush1.bf16.msra.mxu0 %v6838_v24  ;;  %v6896_v8 = vld [vmem:[#allocation6 + $0xb10] ss:$200 sps:$4 sm:$0xff]   ;;  %v6901_v9 = vld [vmem:[#allocation6 + $0x1c] ss:$200 sps:$4 sm:$0xff]   ;;  %v6907_v13 = vld [vmem:[#allocation6 + $0x1ac] ss:$200 sps:$4 sm:$0xff]  }
  0x4e   :  { %2480 = vmatprep.subr.bf16.mxu1 %v6839_v25  ;;  %2562 = vmatprep.subr.bf16.mxu0 %v6841_v26  ;;  %v6904_v10 = vld [vmem:[#allocation6 + $0x34] ss:$200 sps:$4 sm:$0xff]   ;;  %v6899_v11 = vld [vmem:[#allocation6 + $0x18] ss:$200 sps:$4 sm:$0xff]   ;;  %v6905_v15 = vld [vmem:[#allocation6 + $0x1a8] ss:$200 sps:$4 sm:$0xff]   ;;  %p8041_p13 = por %p8040_p12, %p8039_p11 }
  0x4f   :  { %v6902_v12 = vld [vmem:[#allocation6 + $0x30] ss:$200 sps:$4 sm:$0xff]   ;;  %v6908_v16 = vld [vmem:[#allocation6 + $0x1c0] ss:$200 sps:$4 sm:$0xff]   ;;  %v6913_v17 = vld [vmem:[#allocation6 + $0x33c] ss:$200 sps:$4 sm:$0xff]  }
  0x50   :  { %v6916_v18 = vld [vmem:[#allocation6 + $0x354] ss:$200 sps:$4 sm:$0xff]   ;;  %v6911_v19 = vld [vmem:[#allocation6 + $0x338] ss:$200 sps:$4 sm:$0xff]   ;;  %v6922_v22 = vld [vmem:[#allocation6 + $0x4e4] ss:$200 sps:$4 sm:$0xff]   ;;  %p8042_p0 = pnand %p8041_p13, %p8035_p10 }
  0x51   :  { %2481 = vmatpush1.bf16.msra.mxu1 %v6843_v28  ;;  %2563 = vmatpush1.bf16.msra.mxu0 %v6844_v29  ;;  %v6914_v20 = vld [vmem:[#allocation6 + $0x350] ss:$200 sps:$4 sm:$0xff]   ;;  %v6919_v21 = vld [vmem:[#allocation6 + $0x4cc] ss:$200 sps:$4 sm:$0xff]   ;;  %v6920_v24 = vld [vmem:[#allocation6 + $0x4e0] ss:$200 sps:$4 sm:$0xff]  }
  0x52   :  { %2482 = vmatprep.subr.bf16.mxu1 %v6845_v31  ;;  %2564 = vmatprep.subr.bf16.mxu0 %v6847_v32  ;;  %v6917_v23 = vld [vmem:[#allocation6 + $0x4c8] ss:$200 sps:$4 sm:$0xff]   ;;  %v6925_v25 = vld [vmem:[#allocation6 + $0x65c] ss:$200 sps:$4 sm:$0xff]   ;;  %v6923_v27 = vld [vmem:[#allocation6 + $0x658] ss:$200 sps:$4 sm:$0xff]  }
  0x53   :  { %v6928_v26 = vld [vmem:[#allocation6 + $0x674] ss:$200 sps:$4 sm:$0xff]   ;;  %v6926_v28 = vld [vmem:[#allocation6 + $0x670] ss:$200 sps:$4 sm:$0xff]   ;;  %v6934_v30 = vld [vmem:[#allocation6 + $0x804] ss:$200 sps:$4 sm:$0xff]  }
  0x54   :  { %v6931_v29 = vld [vmem:[#allocation6 + $0x7ec] ss:$200 sps:$4 sm:$0xff]   ;;  %v6929_v31 = vld [vmem:[#allocation6 + $0x7e8] ss:$200 sps:$4 sm:$0xff]   ;;  %v6937_v33 = vld [vmem:[#allocation6 + $0x97c] ss:$200 sps:$4 sm:$0xff]  }
  0x55   :  { %2483 = vmatpush1.bf16.msra.mxu1 %v6849_v34  ;;  %2565 = vmatpush1.bf16.msra.mxu0 %v6850_v36  ;;  %v6932_v32 = vld [vmem:[#allocation6 + $0x800] ss:$200 sps:$4 sm:$0xff]   ;;  %v6940_v34 = vld [vmem:[#allocation6 + $0x994] ss:$200 sps:$4 sm:$0xff]   ;;  %v6946_v39 = vld [vmem:[#allocation6 + $0xb24] ss:$200 sps:$4 sm:$0xff]  }
  0x56   :  { %2509 = vmatprep.subr.bf16.mxu1 %v6853_v37  ;;  %2632 = vmatprep.subr.bf16.mxu0 %v6856_v38  ;;  %v6935_v36 = vld [vmem:[#allocation6 + $0x978] ss:$200 sps:$4 sm:$0xff]   ;;  %v6943_v38 = vld [vmem:[#allocation6 + $0xb0c] ss:$200 sps:$4 sm:$0xff]   ;;  %v8378_v41 = vld [vmem:[#allocation6 + $0x888] ss:$200 sps:$4 sm:$0xff]  }
  0x57   :  { %v6938_v37 = vld [vmem:[#allocation6 + $0x990] ss:$200 sps:$4 sm:$0xff]  }
  0x58   :  { %2501 = vmatmul.mubr.bf16.vlgmr.msra.gmra.mrb[0].mxu1 %v8142_v43  ;;  %2583 = vmatmul.mubr.bf16.vlgmr.msra.gmra.mrb[0].mxu0 %v8142_v43 }
  0x59   :  { %2510 = vmatpush1.bf16.msra.mxu1 %v6851_v40  ;;  %2633 = vmatpush1.bf16.msra.mxu0 %v6854_v42  ;;  %v6941_v40 = vld [vmem:[#allocation6 + $0xb08] ss:$200 sps:$4 sm:$0xff]  }
  0x5a   :  { %2511 = vmatprep.subr.bf16.mxu1 %v6859_v44  ;;  %2634 = vmatprep.subr.bf16.mxu0 %v6862_v45  ;;  %v6944_v42 = vld [vmem:[#allocation6 + $0xb20] ss:$200 sps:$4 sm:$0xff]   ;;  %v6949_v44 = vld [vmem:[#allocation6 + $0x2c] ss:$200 sps:$4 sm:$0xff]  }
  0x5b   :  { %2541 = vmatprep.mubr.bf16.mxu1 %v9765_v0  ;;  %2664 = vmatprep.mubr.bf16.mxu0 %v9765_v0  ;;  %v6952_v45 = vld [vmem:[#allocation6 + $0x44] ss:$200 sps:$4 sm:$0xff]  }
  0x5d   :  { %2512 = vmatpush1.bf16.msra.mxu1 %v6857_v46  ;;  %2635 = vmatpush1.bf16.msra.mxu0 %v6860_v47  ;;  %v6947_v46 = vld [vmem:[#allocation6 + $0x28] ss:$200 sps:$4 sm:$0xff]  }
  0x5e   :  { %2513 = vmatprep.subr.bf16.mxu1 %v6865_v48  ;;  %2636 = vmatprep.subr.bf16.mxu0 %v6868_v49  ;;  %v6950_v47 = vld [vmem:[#allocation6 + $0x40] ss:$200 sps:$4 sm:$0xff]   ;;  %v6955_v48 = vld [vmem:[#allocation6 + $0x1bc] ss:$200 sps:$4 sm:$0xff]  }
  0x5f   :  { %v6958_v49 = vld [vmem:[#allocation6 + $0x1d4] ss:$200 sps:$4 sm:$0xff]  }
  0x61   :  { %2514 = vmatpush1.bf16.msra.mxu1 %v6863_v50  ;;  %2637 = vmatpush1.bf16.msra.mxu0 %v6866_v51  ;;  %v6953_v50 = vld [vmem:[#allocation6 + $0x1b8] ss:$200 sps:$4 sm:$0xff]  }
  0x62   :  { %2515 = vmatprep.subr.bf16.mxu1 %v6871_v52  ;;  %2638 = vmatprep.subr.bf16.mxu0 %v6874_v53  ;;  %v6956_v51 = vld [vmem:[#allocation6 + $0x1d0] ss:$200 sps:$4 sm:$0xff]   ;;  %v6961_v52 = vld [vmem:[#allocation6 + $0x34c] ss:$200 sps:$4 sm:$0xff]  }
  0x63   :  { %v6964_v53 = vld [vmem:[#allocation6 + $0x364] ss:$200 sps:$4 sm:$0xff]  }
  0x65   :  { %2516 = vmatpush1.bf16.msra.mxu1 %v6869_v54  ;;  %2639 = vmatpush1.bf16.msra.mxu0 %v6872_v55  ;;  %v6959_v54 = vld [vmem:[#allocation6 + $0x348] ss:$200 sps:$4 sm:$0xff]  }
  0x66   :  { %2517 = vmatprep.subr.bf16.mxu1 %v6877_v56  ;;  %2640 = vmatprep.subr.bf16.mxu0 %v6880_v57  ;;  %v6962_v55 = vld [vmem:[#allocation6 + $0x360] ss:$200 sps:$4 sm:$0xff]   ;;  %v6967_v56 = vld [vmem:[#allocation6 + $0x4dc] ss:$200 sps:$4 sm:$0xff]  }
  0x67   :  { %v6970_v57 = vld [vmem:[#allocation6 + $0x4f4] ss:$200 sps:$4 sm:$0xff]  }
  0x69   :  { %2518 = vmatpush1.bf16.msra.mxu1 %v6875_v58  ;;  %2641 = vmatpush1.bf16.msra.mxu0 %v6878_v59  ;;  %v6965_v58 = vld [vmem:[#allocation6 + $0x4d8] ss:$200 sps:$4 sm:$0xff]  }
  0x6a   :  { %2519 = vmatprep.subr.bf16.mxu1 %v6883_v60  ;;  %2642 = vmatprep.subr.bf16.mxu0 %v6886_v61  ;;  %v6968_v59 = vld [vmem:[#allocation6 + $0x4f0] ss:$200 sps:$4 sm:$0xff]   ;;  %v6973_v60 = vld [vmem:[#allocation6 + $0x66c] ss:$200 sps:$4 sm:$0xff]  }
  0x6b   :  { %v6976_v61 = vld [vmem:[#allocation6 + $0x684] ss:$200 sps:$4 sm:$0xff]  }
  0x6d   :  { %2520 = vmatpush1.bf16.msra.mxu1 %v6881_v62  ;;  %2643 = vmatpush1.bf16.msra.mxu0 %v6884_v63  ;;  %v6971_v62 = vld [vmem:[#allocation6 + $0x668] ss:$200 sps:$4 sm:$0xff]  }
  0x6e   :  { %2521 = vmatprep.subr.bf16.mxu1 %v6889_v1  ;;  %2644 = vmatprep.subr.bf16.mxu0 %v6892_v2  ;;  %v6974_v63 = vld [vmem:[#allocation6 + $0x680] ss:$200 sps:$4 sm:$0xff]   ;;  %v6979_v1 = vld [vmem:[#allocation6 + $0x7fc] ss:$200 sps:$4 sm:$0xff]  }
  0x6f   :  { %v6982_v2 = vld [vmem:[#allocation6 + $0x814] ss:$200 sps:$4 sm:$0xff]  }
  0x71   :  { %2522 = vmatpush1.bf16.msra.mxu1 %v6887_v3  ;;  %2645 = vmatpush1.bf16.msra.mxu0 %v6890_v4  ;;  %v6977_v3 = vld [vmem:[#allocation6 + $0x7f8] ss:$200 sps:$4 sm:$0xff]  }
  0x72   :  { %2523 = vmatprep.subr.bf16.mxu1 %v6895_v5  ;;  %2646 = vmatprep.subr.bf16.mxu0 %v6898_v6  ;;  %v6980_v4 = vld [vmem:[#allocation6 + $0x810] ss:$200 sps:$4 sm:$0xff]   ;;  %v6985_v5 = vld [vmem:[#allocation6 + $0x98c] ss:$200 sps:$4 sm:$0xff]  }
  0x73   :  { %v6988_v6 = vld [vmem:[#allocation6 + $0x9a4] ss:$200 sps:$4 sm:$0xff]  }
  0x75   :  { %2524 = vmatpush1.bf16.msra.mxu1 %v6893_v7  ;;  %2647 = vmatpush1.bf16.msra.mxu0 %v6896_v8  ;;  %v6983_v7 = vld [vmem:[#allocation6 + $0x988] ss:$200 sps:$4 sm:$0xff]  }
  0x76   :  { %2591 = vmatprep.subr.bf16.mxu1 %v6901_v9  ;;  %2714 = vmatprep.subr.bf16.mxu0 %v6904_v10  ;;  %v6986_v8 = vld [vmem:[#allocation6 + $0x9a0] ss:$200 sps:$4 sm:$0xff]   ;;  %v6991_v9 = vld [vmem:[#allocation6 + $0xb1c] ss:$200 sps:$4 sm:$0xff]  }
  0x77   :  { %v6994_v10 = vld [vmem:[#allocation6 + $0xb34] ss:$200 sps:$4 sm:$0xff]  }
  0x78   :  { %2542 = vmatmul.mubr.bf16.vlgmr.msra.gmra.mrb[4].mxu1 %v8142_v43  ;;  %2665 = vmatmul.mubr.bf16.vlgmr.msra.gmra.mrb[4].mxu0 %v8142_v43 }
  0x79   :  { %2592 = vmatpush1.bf16.msra.mxu1 %v6899_v11  ;;  %2715 = vmatpush1.bf16.msra.mxu0 %v6902_v12  ;;  %v6989_v11 = vld [vmem:[#allocation6 + $0xb18] ss:$200 sps:$4 sm:$0xff]  }
  0x7a   :  { %2593 = vmatprep.subr.bf16.mxu1 %v6907_v13  ;;  %2716 = vmatprep.subr.bf16.mxu0 %v6910_v14  ;;  %v6992_v12 = vld [vmem:[#allocation6 + $0xb30] ss:$200 sps:$4 sm:$0xff]   ;;  %v6997_v13 = vld [vmem:[#allocation6 + $0x3c] ss:$200 sps:$4 sm:$0xff]  }
  0x7b   :  { %2623 = vmatprep.mubr.bf16.mxu1 %v9765_v0  ;;  %2746 = vmatprep.mubr.bf16.mxu0 %v9765_v0  ;;  %v7000_v14 = vld [vmem:[#allocation6 + $0x54] ss:$200 sps:$4 sm:$0xff]  }
  0x7d   :  { %2594 = vmatpush1.bf16.msra.mxu1 %v6905_v15  ;;  %2717 = vmatpush1.bf16.msra.mxu0 %v6908_v16  ;;  %v6995_v15 = vld [vmem:[#allocation6 + $0x38] ss:$200 sps:$4 sm:$0xff]  }
  0x7e   :  { %2595 = vmatprep.subr.bf16.mxu1 %v6913_v17  ;;  %2718 = vmatprep.subr.bf16.mxu0 %v6916_v18  ;;  %v6998_v16 = vld [vmem:[#allocation6 + $0x50] ss:$200 sps:$4 sm:$0xff]   ;;  %v7003_v17 = vld [vmem:[#allocation6 + $0x1cc] ss:$200 sps:$4 sm:$0xff]  }
  0x7f   :  { %v7006_v18 = vld [vmem:[#allocation6 + $0x1e4] ss:$200 sps:$4 sm:$0xff]  }
  0x81   :  { %2596 = vmatpush1.bf16.msra.mxu1 %v6911_v19  ;;  %2719 = vmatpush1.bf16.msra.mxu0 %v6914_v20  ;;  %v7001_v19 = vld [vmem:[#allocation6 + $0x1c8] ss:$200 sps:$4 sm:$0xff]  }
  0x82   :  { %2597 = vmatprep.subr.bf16.mxu1 %v6919_v21  ;;  %2720 = vmatprep.subr.bf16.mxu0 %v6922_v22  ;;  %v7004_v20 = vld [vmem:[#allocation6 + $0x1e0] ss:$200 sps:$4 sm:$0xff]   ;;  %v7009_v21 = vld [vmem:[#allocation6 + $0x35c] ss:$200 sps:$4 sm:$0xff]  }
  0x83   :  { %v7012_v22 = vld [vmem:[#allocation6 + $0x374] ss:$200 sps:$4 sm:$0xff]  }
  0x85   :  { %2598 = vmatpush1.bf16.msra.mxu1 %v6917_v23  ;;  %2721 = vmatpush1.bf16.msra.mxu0 %v6920_v24  ;;  %v7007_v23 = vld [vmem:[#allocation6 + $0x358] ss:$200 sps:$4 sm:$0xff]  }
  0x86   :  { %2599 = vmatprep.subr.bf16.mxu1 %v6925_v25  ;;  %2722 = vmatprep.subr.bf16.mxu0 %v6928_v26  ;;  %v7010_v24 = vld [vmem:[#allocation6 + $0x370] ss:$200 sps:$4 sm:$0xff]   ;;  %v7015_v25 = vld [vmem:[#allocation6 + $0x4ec] ss:$200 sps:$4 sm:$0xff]  }
  0x87   :  { %v7018_v26 = vld [vmem:[#allocation6 + $0x504] ss:$200 sps:$4 sm:$0xff]  }
  0x89   :  { %2600 = vmatpush1.bf16.msra.mxu1 %v6923_v27  ;;  %2723 = vmatpush1.bf16.msra.mxu0 %v6926_v28  ;;  %v7013_v27 = vld [vmem:[#allocation6 + $0x4e8] ss:$200 sps:$4 sm:$0xff]  }
  0x8a   :  { %2601 = vmatprep.subr.bf16.mxu1 %v6931_v29  ;;  %2724 = vmatprep.subr.bf16.mxu0 %v6934_v30  ;;  %v7016_v28 = vld [vmem:[#allocation6 + $0x500] ss:$200 sps:$4 sm:$0xff]   ;;  %v7021_v29 = vld [vmem:[#allocation6 + $0x67c] ss:$200 sps:$4 sm:$0xff]  }
  0x8b   :  { %v7024_v30 = vld [vmem:[#allocation6 + $0x694] ss:$200 sps:$4 sm:$0xff]  }
  0x8d   :  { %2602 = vmatpush1.bf16.msra.mxu1 %v6929_v31  ;;  %2725 = vmatpush1.bf16.msra.mxu0 %v6932_v32  ;;  %v7019_v31 = vld [vmem:[#allocation6 + $0x678] ss:$200 sps:$4 sm:$0xff]  }
  0x8e   :  { %2603 = vmatprep.subr.bf16.mxu1 %v6937_v33  ;;  %2726 = vmatprep.subr.bf16.mxu0 %v6940_v34  ;;  %v7022_v32 = vld [vmem:[#allocation6 + $0x690] ss:$200 sps:$4 sm:$0xff]   ;;  %v7027_v33 = vld [vmem:[#allocation6 + $0x80c] ss:$200 sps:$4 sm:$0xff]  }
  0x8f   :  { %v7030_v34 = vld [vmem:[#allocation6 + $0x824] ss:$200 sps:$4 sm:$0xff]  }
  0x91   :  { %2604 = vmatpush1.bf16.msra.mxu1 %v6935_v36  ;;  %2727 = vmatpush1.bf16.msra.mxu0 %v6938_v37  ;;  %v7025_v36 = vld [vmem:[#allocation6 + $0x808] ss:$200 sps:$4 sm:$0xff]  }
  0x92   :  { %2605 = vmatprep.subr.bf16.mxu1 %v6943_v38  ;;  %2728 = vmatprep.subr.bf16.mxu0 %v6946_v39  ;;  %v7028_v37 = vld [vmem:[#allocation6 + $0x820] ss:$200 sps:$4 sm:$0xff]   ;;  %v7033_v38 = vld [vmem:[#allocation6 + $0x99c] ss:$200 sps:$4 sm:$0xff]  }
  0x93   :  { %v7036_v39 = vld [vmem:[#allocation6 + $0x9b4] ss:$200 sps:$4 sm:$0xff]  }
  0x95   :  { %2606 = vmatpush1.bf16.msra.mxu1 %v6941_v40  ;;  %2729 = vmatpush1.bf16.msra.mxu0 %v6944_v42  ;;  %v7031_v40 = vld [vmem:[#allocation6 + $0x998] ss:$200 sps:$4 sm:$0xff]  }
  0x96   :  { %2673 = vmatprep.subr.bf16.mxu1 %v6949_v44  ;;  %2796 = vmatprep.subr.bf16.mxu0 %v6952_v45  ;;  %v7034_v42 = vld [vmem:[#allocation6 + $0x9b0] ss:$200 sps:$4 sm:$0xff]   ;;  %v7039_v44 = vld [vmem:[#allocation6 + $0xb2c] ss:$200 sps:$4 sm:$0xff]  }
  0x97   :  { %v7042_v45 = vld [vmem:[#allocation6 + $0xb44] ss:$200 sps:$4 sm:$0xff]  }
  0x98   :  { %2624 = vmatmul.mubr.bf16.vlgmr.msra.gmra.mrb[8].mxu1 %v8142_v43  ;;  %2747 = vmatmul.mubr.bf16.vlgmr.msra.gmra.mrb[8].mxu0 %v8142_v43 }
  0x99   :  { %2674 = vmatpush1.bf16.msra.mxu1 %v6947_v46  ;;  %2797 = vmatpush1.bf16.msra.mxu0 %v6950_v47  ;;  %v7037_v46 = vld [vmem:[#allocation6 + $0xb28] ss:$200 sps:$4 sm:$0xff]  }
  0x9a   :  { %2675 = vmatprep.subr.bf16.mxu1 %v6955_v48  ;;  %2798 = vmatprep.subr.bf16.mxu0 %v6958_v49  ;;  %v7040_v47 = vld [vmem:[#allocation6 + $0xb40] ss:$200 sps:$4 sm:$0xff]   ;;  %v7045_v48 = vld [vmem:[#allocation6 + $0x4c] ss:$200 sps:$4 sm:$0xff]  }
  0x9b   :  { %2705 = vmatprep.mubr.bf16.mxu1 %v9765_v0  ;;  %2828 = vmatprep.mubr.bf16.mxu0 %v9765_v0  ;;  %v7048_v49 = vld [vmem:[#allocation6 + $0x64] ss:$200 sps:$4 sm:$0xff]  }
  0x9d   :  { %2676 = vmatpush1.bf16.msra.mxu1 %v6953_v50  ;;  %2799 = vmatpush1.bf16.msra.mxu0 %v6956_v51  ;;  %v7043_v50 = vld [vmem:[#allocation6 + $0x48] ss:$200 sps:$4 sm:$0xff]  }
  0x9e   :  { %2677 = vmatprep.subr.bf16.mxu1 %v6961_v52  ;;  %2800 = vmatprep.subr.bf16.mxu0 %v6964_v53  ;;  %v7046_v51 = vld [vmem:[#allocation6 + $0x60] ss:$200 sps:$4 sm:$0xff]   ;;  %v7051_v52 = vld [vmem:[#allocation6 + $0x1dc] ss:$200 sps:$4 sm:$0xff]  }
  0x9f   :  { %v7054_v53 = vld [vmem:[#allocation6 + $0x1f4] ss:$200 sps:$4 sm:$0xff]  }
  0xa1   :  { %2678 = vmatpush1.bf16.msra.mxu1 %v6959_v54  ;;  %2801 = vmatpush1.bf16.msra.mxu0 %v6962_v55  ;;  %v7049_v54 = vld [vmem:[#allocation6 + $0x1d8] ss:$200 sps:$4 sm:$0xff]  }
  0xa2   :  { %2679 = vmatprep.subr.bf16.mxu1 %v6967_v56  ;;  %2802 = vmatprep.subr.bf16.mxu0 %v6970_v57  ;;  %v7052_v55 = vld [vmem:[#allocation6 + $0x1f0] ss:$200 sps:$4 sm:$0xff]   ;;  %v7057_v56 = vld [vmem:[#allocation6 + $0x36c] ss:$200 sps:$4 sm:$0xff]  }
  0xa3   :  { %v7060_v57 = vld [vmem:[#allocation6 + $0x384] ss:$200 sps:$4 sm:$0xff]  }
  0xa5   :  { %2680 = vmatpush1.bf16.msra.mxu1 %v6965_v58  ;;  %2803 = vmatpush1.bf16.msra.mxu0 %v6968_v59  ;;  %v7055_v58 = vld [vmem:[#allocation6 + $0x368] ss:$200 sps:$4 sm:$0xff]  }
  0xa6   :  { %2681 = vmatprep.subr.bf16.mxu1 %v6973_v60  ;;  %2804 = vmatprep.subr.bf16.mxu0 %v6976_v61  ;;  %v7058_v59 = vld [vmem:[#allocation6 + $0x380] ss:$200 sps:$4 sm:$0xff]   ;;  %v7063_v60 = vld [vmem:[#allocation6 + $0x4fc] ss:$200 sps:$4 sm:$0xff]  }
  0xa7   :  { %v7066_v61 = vld [vmem:[#allocation6 + $0x514] ss:$200 sps:$4 sm:$0xff]  }
  0xa9   :  { %2682 = vmatpush1.bf16.msra.mxu1 %v6971_v62  ;;  %2805 = vmatpush1.bf16.msra.mxu0 %v6974_v63  ;;  %v7061_v62 = vld [vmem:[#allocation6 + $0x4f8] ss:$200 sps:$4 sm:$0xff]  }
  0xaa   :  { %2683 = vmatprep.subr.bf16.mxu1 %v6979_v1  ;;  %2806 = vmatprep.subr.bf16.mxu0 %v6982_v2  ;;  %v7064_v63 = vld [vmem:[#allocation6 + $0x510] ss:$200 sps:$4 sm:$0xff]   ;;  %v7069_v1 = vld [vmem:[#allocation6 + $0x68c] ss:$200 sps:$4 sm:$0xff]  }
  0xab   :  { %v7072_v2 = vld [vmem:[#allocation6 + $0x6a4] ss:$200 sps:$4 sm:$0xff]  }
  0xad   :  { %2684 = vmatpush1.bf16.msra.mxu1 %v6977_v3  ;;  %2807 = vmatpush1.bf16.msra.mxu0 %v6980_v4  ;;  %v7067_v3 = vld [vmem:[#allocation6 + $0x688] ss:$200 sps:$4 sm:$0xff]  }
  0xae   :  { %2685 = vmatprep.subr.bf16.mxu1 %v6985_v5  ;;  %2808 = vmatprep.subr.bf16.mxu0 %v6988_v6  ;;  %v7070_v4 = vld [vmem:[#allocation6 + $0x6a0] ss:$200 sps:$4 sm:$0xff]   ;;  %v7075_v5 = vld [vmem:[#allocation6 + $0x81c] ss:$200 sps:$4 sm:$0xff]  }
  0xaf   :  { %v7078_v6 = vld [vmem:[#allocation6 + $0x834] ss:$200 sps:$4 sm:$0xff]  }
  0xb1   :  { %2686 = vmatpush1.bf16.msra.mxu1 %v6983_v7  ;;  %2809 = vmatpush1.bf16.msra.mxu0 %v6986_v8  ;;  %v7073_v7 = vld [vmem:[#allocation6 + $0x818] ss:$200 sps:$4 sm:$0xff]  }
  0xb2   :  { %2687 = vmatprep.subr.bf16.mxu1 %v6991_v9  ;;  %2810 = vmatprep.subr.bf16.mxu0 %v6994_v10  ;;  %v7076_v8 = vld [vmem:[#allocation6 + $0x830] ss:$200 sps:$4 sm:$0xff]   ;;  %v7081_v9 = vld [vmem:[#allocation6 + $0x9ac] ss:$200 sps:$4 sm:$0xff]  }
  0xb3   :  { %v7084_v10 = vld [vmem:[#allocation6 + $0x9c4] ss:$200 sps:$4 sm:$0xff]  }
  0xb5   :  { %2688 = vmatpush1.bf16.msra.mxu1 %v6989_v11  ;;  %2811 = vmatpush1.bf16.msra.mxu0 %v6992_v12  ;;  %v7079_v11 = vld [vmem:[#allocation6 + $0x9a8] ss:$200 sps:$4 sm:$0xff]  }
  0xb6   :  { %2755 = vmatprep.subr.bf16.mxu1 %v6997_v13  ;;  %2878 = vmatprep.subr.bf16.mxu0 %v7000_v14  ;;  %v7082_v12 = vld [vmem:[#allocation6 + $0x9c0] ss:$200 sps:$4 sm:$0xff]   ;;  %v7087_v13 = vld [vmem:[#allocation6 + $0xb3c] ss:$200 sps:$4 sm:$0xff]  }
  0xb7   :  { %v7090_v14 = vld [vmem:[#allocation6 + $0xb54] ss:$200 sps:$4 sm:$0xff]  }
  0xb8   :  { %2706 = vmatmul.mubr.bf16.vlgmr.msra.gmra.mrb[12].mxu1 %v8142_v43  ;;  %2829 = vmatmul.mubr.bf16.vlgmr.msra.gmra.mrb[12].mxu0 %v8142_v43 }
  0xb9   :  { %2756 = vmatpush1.bf16.msra.mxu1 %v6995_v15  ;;  %2879 = vmatpush1.bf16.msra.mxu0 %v6998_v16  ;;  %v7085_v15 = vld [vmem:[#allocation6 + $0xb38] ss:$200 sps:$4 sm:$0xff]  }
  0xba   :  { %2757 = vmatprep.subr.bf16.mxu1 %v7003_v17  ;;  %2880 = vmatprep.subr.bf16.mxu0 %v7006_v18  ;;  %v7088_v16 = vld [vmem:[#allocation6 + $0xb50] ss:$200 sps:$4 sm:$0xff]   ;;  %v7093_v17 = vld [vmem:[#allocation6 + $0x5c] ss:$200 sps:$4 sm:$0xff]  }
  0xbb   :  { %2787 = vmatprep.mubr.bf16.mxu1 %v9765_v0  ;;  %2910 = vmatprep.mubr.bf16.mxu0 %v9765_v0  ;;  %v7096_v18 = vld [vmem:[#allocation6 + $0x74] ss:$200 sps:$4 sm:$0xff]  }
  0xbd   :  { %2758 = vmatpush1.bf16.msra.mxu1 %v7001_v19  ;;  %2881 = vmatpush1.bf16.msra.mxu0 %v7004_v20  ;;  %v7091_v19 = vld [vmem:[#allocation6 + $0x58] ss:$200 sps:$4 sm:$0xff]  }
  0xbe   :  { %2759 = vmatprep.subr.bf16.mxu1 %v7009_v21  ;;  %2882 = vmatprep.subr.bf16.mxu0 %v7012_v22  ;;  %v7094_v20 = vld [vmem:[#allocation6 + $0x70] ss:$200 sps:$4 sm:$0xff]   ;;  %v7099_v21 = vld [vmem:[#allocation6 + $0x1ec] ss:$200 sps:$4 sm:$0xff]  }
  0xbf   :  { %v7102_v22 = vld [vmem:[#allocation6 + $0x204] ss:$200 sps:$4 sm:$0xff]  }
  0xc1   :  { %2760 = vmatpush1.bf16.msra.mxu1 %v7007_v23  ;;  %2883 = vmatpush1.bf16.msra.mxu0 %v7010_v24  ;;  %v7097_v23 = vld [vmem:[#allocation6 + $0x1e8] ss:$200 sps:$4 sm:$0xff]  }
  0xc2   :  { %2761 = vmatprep.subr.bf16.mxu1 %v7015_v25  ;;  %2884 = vmatprep.subr.bf16.mxu0 %v7018_v26  ;;  %v7100_v24 = vld [vmem:[#allocation6 + $0x200] ss:$200 sps:$4 sm:$0xff]   ;;  %v7105_v25 = vld [vmem:[#allocation6 + $0x37c] ss:$200 sps:$4 sm:$0xff]  }
  0xc3   :  { %v7108_v26 = vld [vmem:[#allocation6 + $0x394] ss:$200 sps:$4 sm:$0xff]  }
  0xc5   :  { %2762 = vmatpush1.bf16.msra.mxu1 %v7013_v27  ;;  %2885 = vmatpush1.bf16.msra.mxu0 %v7016_v28  ;;  %v7103_v27 = vld [vmem:[#allocation6 + $0x378] ss:$200 sps:$4 sm:$0xff]  }
  0xc6   :  { %2763 = vmatprep.subr.bf16.mxu1 %v7021_v29  ;;  %2886 = vmatprep.subr.bf16.mxu0 %v7024_v30  ;;  %v7106_v28 = vld [vmem:[#allocation6 + $0x390] ss:$200 sps:$4 sm:$0xff]   ;;  %v7111_v29 = vld [vmem:[#allocation6 + $0x50c] ss:$200 sps:$4 sm:$0xff]  }
  0xc7   :  { %v7114_v30 = vld [vmem:[#allocation6 + $0x524] ss:$200 sps:$4 sm:$0xff]  }
  0xc9   :  { %2764 = vmatpush1.bf16.msra.mxu1 %v7019_v31  ;;  %2887 = vmatpush1.bf16.msra.mxu0 %v7022_v32  ;;  %v7109_v31 = vld [vmem:[#allocation6 + $0x508] ss:$200 sps:$4 sm:$0xff]  }
  0xca   :  { %2765 = vmatprep.subr.bf16.mxu1 %v7027_v33  ;;  %2888 = vmatprep.subr.bf16.mxu0 %v7030_v34  ;;  %v7112_v32 = vld [vmem:[#allocation6 + $0x520] ss:$200 sps:$4 sm:$0xff]   ;;  %v7117_v33 = vld [vmem:[#allocation6 + $0x69c] ss:$200 sps:$4 sm:$0xff]  }
  0xcb   :  { %v7120_v34 = vld [vmem:[#allocation6 + $0x6b4] ss:$200 sps:$4 sm:$0xff]  }
  0xcd   :  { %2766 = vmatpush1.bf16.msra.mxu1 %v7025_v36  ;;  %2889 = vmatpush1.bf16.msra.mxu0 %v7028_v37  ;;  %v7115_v36 = vld [vmem:[#allocation6 + $0x698] ss:$200 sps:$4 sm:$0xff]  }
  0xce   :  { %2767 = vmatprep.subr.bf16.mxu1 %v7033_v38  ;;  %2890 = vmatprep.subr.bf16.mxu0 %v7036_v39  ;;  %v7118_v37 = vld [vmem:[#allocation6 + $0x6b0] ss:$200 sps:$4 sm:$0xff]   ;;  %v7123_v38 = vld [vmem:[#allocation6 + $0x82c] ss:$200 sps:$4 sm:$0xff]  }
  0xcf   :  { %v7126_v39 = vld [vmem:[#allocation6 + $0x844] ss:$200 sps:$4 sm:$0xff]  }
  0xd1   :  { %2768 = vmatpush1.bf16.msra.mxu1 %v7031_v40  ;;  %2891 = vmatpush1.bf16.msra.mxu0 %v7034_v42  ;;  %v7121_v40 = vld [vmem:[#allocation6 + $0x828] ss:$200 sps:$4 sm:$0xff]  }
  0xd2   :  { %2769 = vmatprep.subr.bf16.mxu1 %v7039_v44  ;;  %2892 = vmatprep.subr.bf16.mxu0 %v7042_v45  ;;  %v7124_v42 = vld [vmem:[#allocation6 + $0x840] ss:$200 sps:$4 sm:$0xff]   ;;  %v7129_v44 = vld [vmem:[#allocation6 + $0x9bc] ss:$200 sps:$4 sm:$0xff]  }
  0xd3   :  { %v7132_v45 = vld [vmem:[#allocation6 + $0x9d4] ss:$200 sps:$4 sm:$0xff]  }
  0xd5   :  { %2770 = vmatpush1.bf16.msra.mxu1 %v7037_v46  ;;  %2893 = vmatpush1.bf16.msra.mxu0 %v7040_v47  ;;  %v7127_v46 = vld [vmem:[#allocation6 + $0x9b8] ss:$200 sps:$4 sm:$0xff]  }
  0xd6   :  { %2837 = vmatprep.subr.bf16.mxu1 %v7045_v48  ;;  %2960 = vmatprep.subr.bf16.mxu0 %v7048_v49  ;;  %v7130_v47 = vld [vmem:[#allocation6 + $0x9d0] ss:$200 sps:$4 sm:$0xff]   ;;  %v7135_v48 = vld [vmem:[#allocation6 + $0xb4c] ss:$200 sps:$4 sm:$0xff]  }
  0xd7   :  { %v7138_v49 = vld [vmem:[#allocation6 + $0xb64] ss:$200 sps:$4 sm:$0xff]  }
  0xd8   :  { %2788 = vmatmul.mubr.bf16.vlgmr.msra.gmra.mrb[16].mxu1 %v8142_v43  ;;  %2911 = vmatmul.mubr.bf16.vlgmr.msra.gmra.mrb[16].mxu0 %v8142_v43 }
  0xd9   :  { %2838 = vmatpush1.bf16.msra.mxu1 %v7043_v50  ;;  %2961 = vmatpush1.bf16.msra.mxu0 %v7046_v51  ;;  %v7133_v50 = vld [vmem:[#allocation6 + $0xb48] ss:$200 sps:$4 sm:$0xff]  }
  0xda   :  { %2839 = vmatprep.subr.bf16.mxu1 %v7051_v52  ;;  %2962 = vmatprep.subr.bf16.mxu0 %v7054_v53  ;;  %v7136_v51 = vld [vmem:[#allocation6 + $0xb60] ss:$200 sps:$4 sm:$0xff]   ;;  %v7141_v52 = vld [vmem:[#allocation6 + $0x6c] ss:$200 sps:$4 sm:$0xff]  }
  0xdb   :  { %2869 = vmatprep.mubr.bf16.mxu1 %v9765_v0  ;;  %2992 = vmatprep.mubr.bf16.mxu0 %v9765_v0  ;;  %v7144_v53 = vld [vmem:[#allocation6 + $0x84] ss:$200 sps:$4 sm:$0xff]  }
  0xdd   :  { %2840 = vmatpush1.bf16.msra.mxu1 %v7049_v54  ;;  %2963 = vmatpush1.bf16.msra.mxu0 %v7052_v55  ;;  %v7139_v54 = vld [vmem:[#allocation6 + $0x68] ss:$200 sps:$4 sm:$0xff]  }
  0xde   :  { %2841 = vmatprep.subr.bf16.mxu1 %v7057_v56  ;;  %2964 = vmatprep.subr.bf16.mxu0 %v7060_v57  ;;  %v7142_v55 = vld [vmem:[#allocation6 + $0x80] ss:$200 sps:$4 sm:$0xff]   ;;  %v7147_v56 = vld [vmem:[#allocation6 + $0x1fc] ss:$200 sps:$4 sm:$0xff]  }
  0xdf   :  { %v7150_v57 = vld [vmem:[#allocation6 + $0x214] ss:$200 sps:$4 sm:$0xff]  }
  0xe1   :  { %2842 = vmatpush1.bf16.msra.mxu1 %v7055_v58  ;;  %2965 = vmatpush1.bf16.msra.mxu0 %v7058_v59  ;;  %v7145_v58 = vld [vmem:[#allocation6 + $0x1f8] ss:$200 sps:$4 sm:$0xff]  }
  0xe2   :  { %2843 = vmatprep.subr.bf16.mxu1 %v7063_v60  ;;  %2966 = vmatprep.subr.bf16.mxu0 %v7066_v61  ;;  %v7148_v59 = vld [vmem:[#allocation6 + $0x210] ss:$200 sps:$4 sm:$0xff]   ;;  %v7153_v60 = vld [vmem:[#allocation6 + $0x38c] ss:$200 sps:$4 sm:$0xff]  }
  0xe3   :  { %v7156_v61 = vld [vmem:[#allocation6 + $0x3a4] ss:$200 sps:$4 sm:$0xff]  }
  0xe5   :  { %2844 = vmatpush1.bf16.msra.mxu1 %v7061_v62  ;;  %2967 = vmatpush1.bf16.msra.mxu0 %v7064_v63  ;;  %v7151_v62 = vld [vmem:[#allocation6 + $0x388] ss:$200 sps:$4 sm:$0xff]  }
  0xe6   :  { %2845 = vmatprep.subr.bf16.mxu1 %v7069_v1  ;;  %2968 = vmatprep.subr.bf16.mxu0 %v7072_v2  ;;  %v7154_v63 = vld [vmem:[#allocation6 + $0x3a0] ss:$200 sps:$4 sm:$0xff]   ;;  %v7159_v1 = vld [vmem:[#allocation6 + $0x51c] ss:$200 sps:$4 sm:$0xff]  }
  0xe7   :  { %v7162_v2 = vld [vmem:[#allocation6 + $0x534] ss:$200 sps:$4 sm:$0xff]  }
  0xe9   :  { %2846 = vmatpush1.bf16.msra.mxu1 %v7067_v3  ;;  %2969 = vmatpush1.bf16.msra.mxu0 %v7070_v4  ;;  %v7157_v3 = vld [vmem:[#allocation6 + $0x518] ss:$200 sps:$4 sm:$0xff]  }
  0xea   :  { %2847 = vmatprep.subr.bf16.mxu1 %v7075_v5  ;;  %2970 = vmatprep.subr.bf16.mxu0 %v7078_v6  ;;  %v7160_v4 = vld [vmem:[#allocation6 + $0x530] ss:$200 sps:$4 sm:$0xff]   ;;  %v7165_v5 = vld [vmem:[#allocation6 + $0x6ac] ss:$200 sps:$4 sm:$0xff]  }
  0xeb   :  { %v7168_v6 = vld [vmem:[#allocation6 + $0x6c4] ss:$200 sps:$4 sm:$0xff]  }
  0xed   :  { %2848 = vmatpush1.bf16.msra.mxu1 %v7073_v7  ;;  %2971 = vmatpush1.bf16.msra.mxu0 %v7076_v8  ;;  %v7163_v7 = vld [vmem:[#allocation6 + $0x6a8] ss:$200 sps:$4 sm:$0xff]  }
  0xee   :  { %2849 = vmatprep.subr.bf16.mxu1 %v7081_v9  ;;  %2972 = vmatprep.subr.bf16.mxu0 %v7084_v10  ;;  %v7166_v8 = vld [vmem:[#allocation6 + $0x6c0] ss:$200 sps:$4 sm:$0xff]   ;;  %v7171_v9 = vld [vmem:[#allocation6 + $0x83c] ss:$200 sps:$4 sm:$0xff]  }
  0xef   :  { %v7174_v10 = vld [vmem:[#allocation6 + $0x854] ss:$200 sps:$4 sm:$0xff]  }
  0xf1   :  { %2850 = vmatpush1.bf16.msra.mxu1 %v7079_v11  ;;  %2973 = vmatpush1.bf16.msra.mxu0 %v7082_v12  ;;  %v7169_v11 = vld [vmem:[#allocation6 + $0x838] ss:$200 sps:$4 sm:$0xff]  }
  0xf2   :  { %2851 = vmatprep.subr.bf16.mxu1 %v7087_v13  ;;  %2974 = vmatprep.subr.bf16.mxu0 %v7090_v14  ;;  %v7172_v12 = vld [vmem:[#allocation6 + $0x850] ss:$200 sps:$4 sm:$0xff]   ;;  %v7177_v13 = vld [vmem:[#allocation6 + $0x9cc] ss:$200 sps:$4 sm:$0xff]  }
  0xf3   :  { %v7180_v14 = vld [vmem:[#allocation6 + $0x9e4] ss:$200 sps:$4 sm:$0xff]  }
  0xf5   :  { %2852 = vmatpush1.bf16.msra.mxu1 %v7085_v15  ;;  %2975 = vmatpush1.bf16.msra.mxu0 %v7088_v16  ;;  %v7175_v16 = vld [vmem:[#allocation6 + $0x9c8] ss:$200 sps:$4 sm:$0xff]  }
  0xf6   :  { %2919 = vmatprep.subr.bf16.mxu1 %v7093_v17  ;;  %3042 = vmatprep.subr.bf16.mxu0 %v7096_v18  ;;  %v7178_v18 = vld [vmem:[#allocation6 + $0x9e0] ss:$200 sps:$4 sm:$0xff]  }
  0xf8   :  { %2870 = vmatmul.mubr.bf16.vlgmr.msra.gmra.mrb[20].mxu1 %v8142_v43  ;;  %2993 = vmatmul.mubr.bf16.vlgmr.msra.gmra.mrb[20].mxu0 %v8142_v43 }
  0xf9   :  { %2920 = vmatpush1.bf16.msra.mxu1 %v7091_v19  ;;  %3043 = vmatpush1.bf16.msra.mxu0 %v7094_v20  ;;  %v7183_v20 = vld [vmem:[#allocation6 + $0xb5c] ss:$200 sps:$4 sm:$0xff]  }
  0xfa   :  { %2921 = vmatprep.subr.bf16.mxu1 %v7099_v21  ;;  %3044 = vmatprep.subr.bf16.mxu0 %v7102_v22  ;;  %v7186_v21 = vld [vmem:[#allocation6 + $0xb74] ss:$200 sps:$4 sm:$0xff]  }
  0xfb   :  { %2951 = vmatprep.mubr.bf16.mxu1 %v9765_v0  ;;  %3074 = vmatprep.mubr.bf16.mxu0 %v9765_v0 }
  0xfd   :  { %2922 = vmatpush1.bf16.msra.mxu1 %v7097_v23  ;;  %3045 = vmatpush1.bf16.msra.mxu0 %v7100_v24  ;;  %v7181_v23 = vld [vmem:[#allocation6 + $0xb58] ss:$200 sps:$4 sm:$0xff]  }
  0xfe   :  { %2923 = vmatprep.subr.bf16.mxu1 %v7105_v25  ;;  %3046 = vmatprep.subr.bf16.mxu0 %v7108_v26  ;;  %v7184_v24 = vld [vmem:[#allocation6 + $0xb70] ss:$200 sps:$4 sm:$0xff]   ;;  %v7189_v25 = vld [vmem:[#allocation6 + $0x7c] ss:$200 sps:$4 sm:$0xff]  }
  0xff   :  { %v7192_v26 = vld [vmem:[#allocation6 + $0x94] ss:$200 sps:$4 sm:$0xff]  }
 0x101   :  { %2924 = vmatpush1.bf16.msra.mxu1 %v7103_v27  ;;  %3047 = vmatpush1.bf16.msra.mxu0 %v7106_v28  ;;  %v7187_v27 = vld [vmem:[#allocation6 + $0x78] ss:$200 sps:$4 sm:$0xff]  }
 0x102   :  { %2925 = vmatprep.subr.bf16.mxu1 %v7111_v29  ;;  %3048 = vmatprep.subr.bf16.mxu0 %v7114_v30  ;;  %v7190_v28 = vld [vmem:[#allocation6 + $0x90] ss:$200 sps:$4 sm:$0xff]   ;;  %v7195_v29 = vld [vmem:[#allocation6 + $0x20c] ss:$200 sps:$4 sm:$0xff]  }
 0x103   :  { %v7198_v30 = vld [vmem:[#allocation6 + $0x224] ss:$200 sps:$4 sm:$0xff]  }
 0x105   :  { %2926 = vmatpush1.bf16.msra.mxu1 %v7109_v31  ;;  %3049 = vmatpush1.bf16.msra.mxu0 %v7112_v32  ;;  %v7193_v31 = vld [vmem:[#allocation6 + $0x208] ss:$200 sps:$4 sm:$0xff]  }
 0x106   :  { %2927 = vmatprep.subr.bf16.mxu1 %v7117_v33  ;;  %3050 = vmatprep.subr.bf16.mxu0 %v7120_v34  ;;  %v7196_v32 = vld [vmem:[#allocation6 + $0x220] ss:$200 sps:$4 sm:$0xff]   ;;  %v7201_v33 = vld [vmem:[#allocation6 + $0x39c] ss:$200 sps:$4 sm:$0xff]  }
 0x107   :  { %v7204_v34 = vld [vmem:[#allocation6 + $0x3b4] ss:$200 sps:$4 sm:$0xff]  }
 0x109   :  { %2928 = vmatpush1.bf16.msra.mxu1 %v7115_v36  ;;  %3051 = vmatpush1.bf16.msra.mxu0 %v7118_v37  ;;  %v7199_v36 = vld [vmem:[#allocation6 + $0x398] ss:$200 sps:$4 sm:$0xff]  }
 0x10a   :  { %2929 = vmatprep.subr.bf16.mxu1 %v7123_v38  ;;  %3052 = vmatprep.subr.bf16.mxu0 %v7126_v39  ;;  %v7202_v37 = vld [vmem:[#allocation6 + $0x3b0] ss:$200 sps:$4 sm:$0xff]   ;;  %v7207_v38 = vld [vmem:[#allocation6 + $0x52c] ss:$200 sps:$4 sm:$0xff]  }
 0x10b   :  { %v7210_v39 = vld [vmem:[#allocation6 + $0x544] ss:$200 sps:$4 sm:$0xff]  }
 0x10d   :  { %2930 = vmatpush1.bf16.msra.mxu1 %v7121_v40  ;;  %3053 = vmatpush1.bf16.msra.mxu0 %v7124_v42  ;;  %v7205_v40 = vld [vmem:[#allocation6 + $0x528] ss:$200 sps:$4 sm:$0xff]  }
 0x10e   :  { %2931 = vmatprep.subr.bf16.mxu1 %v7129_v44  ;;  %3054 = vmatprep.subr.bf16.mxu0 %v7132_v45  ;;  %v7208_v42 = vld [vmem:[#allocation6 + $0x540] ss:$200 sps:$4 sm:$0xff]   ;;  %v7213_v44 = vld [vmem:[#allocation6 + $0x6bc] ss:$200 sps:$4 sm:$0xff]  }
 0x10f   :  { %v7216_v45 = vld [vmem:[#allocation6 + $0x6d4] ss:$200 sps:$4 sm:$0xff]  }
 0x111   :  { %2932 = vmatpush1.bf16.msra.mxu1 %v7127_v46  ;;  %3055 = vmatpush1.bf16.msra.mxu0 %v7130_v47  ;;  %v7211_v46 = vld [vmem:[#allocation6 + $0x6b8] ss:$200 sps:$4 sm:$0xff]  }
 0x112   :  { %2933 = vmatprep.subr.bf16.mxu1 %v7135_v48  ;;  %3056 = vmatprep.subr.bf16.mxu0 %v7138_v49  ;;  %v7214_v47 = vld [vmem:[#allocation6 + $0x6d0] ss:$200 sps:$4 sm:$0xff]   ;;  %v7219_v48 = vld [vmem:[#allocation6 + $0x84c] ss:$200 sps:$4 sm:$0xff]  }
 0x113   :  { %v7222_v49 = vld [vmem:[#allocation6 + $0x864] ss:$200 sps:$4 sm:$0xff]  }
 0x115   :  { %2934 = vmatpush1.bf16.msra.mxu1 %v7133_v50  ;;  %3057 = vmatpush1.bf16.msra.mxu0 %v7136_v51  ;;  %v7217_v50 = vld [vmem:[#allocation6 + $0x848] ss:$200 sps:$4 sm:$0xff]  }
 0x116   :  { %3001 = vmatprep.subr.bf16.mxu1 %v7141_v52  ;;  %3124 = vmatprep.subr.bf16.mxu0 %v7144_v53  ;;  %v7220_v51 = vld [vmem:[#allocation6 + $0x860] ss:$200 sps:$4 sm:$0xff]   ;;  %v7225_v52 = vld [vmem:[#allocation6 + $0x9dc] ss:$200 sps:$4 sm:$0xff]  }
 0x117   :  { %v7228_v53 = vld [vmem:[#allocation6 + $0x9f4] ss:$200 sps:$4 sm:$0xff]  }
 0x118   :  { %2952 = vmatmul.mubr.bf16.vlgmr.msra.gmra.mrb[24].mxu1 %v8142_v43  ;;  %3075 = vmatmul.mubr.bf16.vlgmr.msra.gmra.mrb[24].mxu0 %v8142_v43 }
 0x119   :  { %3002 = vmatpush1.bf16.msra.mxu1 %v7139_v54  ;;  %3125 = vmatpush1.bf16.msra.mxu0 %v7142_v55  ;;  %v7223_v54 = vld [vmem:[#allocation6 + $0x9d8] ss:$200 sps:$4 sm:$0xff]  }
 0x11a   :  { %3003 = vmatprep.subr.bf16.mxu1 %v7147_v56  ;;  %3126 = vmatprep.subr.bf16.mxu0 %v7150_v57  ;;  %v7226_v55 = vld [vmem:[#allocation6 + $0x9f0] ss:$200 sps:$4 sm:$0xff]   ;;  %v7231_v56 = vld [vmem:[#allocation6 + $0xb6c] ss:$200 sps:$4 sm:$0xff]  }
 0x11b   :  { %3033 = vmatprep.mubr.bf16.mxu1 %v9765_v0  ;;  %3156 = vmatprep.mubr.bf16.mxu0 %v9765_v0  ;;  %v7234_v57 = vld [vmem:[#allocation6 + $0xb84] ss:$200 sps:$4 sm:$0xff]  }
 0x11d   :  { %3004 = vmatpush1.bf16.msra.mxu1 %v7145_v58  ;;  %3127 = vmatpush1.bf16.msra.mxu0 %v7148_v59  ;;  %v7229_v58 = vld [vmem:[#allocation6 + $0xb68] ss:$200 sps:$4 sm:$0xff]  }
 0x11e   :  { %3005 = vmatprep.subr.bf16.mxu1 %v7153_v60  ;;  %3128 = vmatprep.subr.bf16.mxu0 %v7156_v61  ;;  %v7232_v59 = vld [vmem:[#allocation6 + $0xb80] ss:$200 sps:$4 sm:$0xff]   ;;  %v7237_v60 = vld [vmem:[#allocation6 + $0x8c] ss:$200 sps:$4 sm:$0xff]  }
 0x11f   :  { %v7240_v61 = vld [vmem:[#allocation6 + $0xa4] ss:$200 sps:$4 sm:$0xff]  }
 0x121   :  { %3006 = vmatpush1.bf16.msra.mxu1 %v7151_v62  ;;  %3129 = vmatpush1.bf16.msra.mxu0 %v7154_v63  ;;  %v7235_v62 = vld [vmem:[#allocation6 + $0x88] ss:$200 sps:$4 sm:$0xff]  }
 0x122   :  { %3007 = vmatprep.subr.bf16.mxu1 %v7159_v1  ;;  %3130 = vmatprep.subr.bf16.mxu0 %v7162_v2  ;;  %v7238_v63 = vld [vmem:[#allocation6 + $0xa0] ss:$200 sps:$4 sm:$0xff]   ;;  %v7243_v1 = vld [vmem:[#allocation6 + $0x21c] ss:$200 sps:$4 sm:$0xff]  }
 0x123   :  { %v7246_v2 = vld [vmem:[#allocation6 + $0x234] ss:$200 sps:$4 sm:$0xff]  }
 0x125   :  { %3008 = vmatpush1.bf16.msra.mxu1 %v7157_v3  ;;  %3131 = vmatpush1.bf16.msra.mxu0 %v7160_v4  ;;  %v7241_v3 = vld [vmem:[#allocation6 + $0x218] ss:$200 sps:$4 sm:$0xff]  }
 0x126   :  { %3009 = vmatprep.subr.bf16.mxu1 %v7165_v5  ;;  %3132 = vmatprep.subr.bf16.mxu0 %v7168_v6  ;;  %v7244_v4 = vld [vmem:[#allocation6 + $0x230] ss:$200 sps:$4 sm:$0xff]   ;;  %v7249_v5 = vld [vmem:[#allocation6 + $0x3ac] ss:$200 sps:$4 sm:$0xff]  }
 0x127   :  { %v7252_v6 = vld [vmem:[#allocation6 + $0x3c4] ss:$200 sps:$4 sm:$0xff]  }
 0x129   :  { %3010 = vmatpush1.bf16.msra.mxu1 %v7163_v7  ;;  %3133 = vmatpush1.bf16.msra.mxu0 %v7166_v8  ;;  %v7247_v7 = vld [vmem:[#allocation6 + $0x3a8] ss:$200 sps:$4 sm:$0xff]  }
 0x12a   :  { %3011 = vmatprep.subr.bf16.mxu1 %v7171_v9  ;;  %3134 = vmatprep.subr.bf16.mxu0 %v7174_v10  ;;  %v7250_v8 = vld [vmem:[#allocation6 + $0x3c0] ss:$200 sps:$4 sm:$0xff]   ;;  %v7255_v9 = vld [vmem:[#allocation6 + $0x53c] ss:$200 sps:$4 sm:$0xff]  }
 0x12b   :  { %v8172_v15 = vpop.f32.mrb[0].mxu1  ;;  %v7258_v10 = vld [vmem:[#allocation6 + $0x554] ss:$200 sps:$4 sm:$0xff]  }
 0x12c   :  { %10049 = vst [vmem:[#allocation15_spill] sm:$0xff] %v8172_v15  ;;  %v8174_v17 = vpop.f32.mrb[1].mxu1  ;;  %v8375_v15 = vld [vmem:[#allocation6 + $0x640] ss:$200 sps:$4 sm:$0xff]  }
 0x12d   :  { %10050 = vst [vmem:[#allocation16_spill] sm:$0xff] %v8174_v17  ;;  %3012 = vmatpush1.bf16.msra.mxu1 %v7169_v11  ;;  %3135 = vmatpush1.bf16.msra.mxu0 %v7172_v12  ;;  %v2506_v19 = vpop.f32.mrb[2].mxu1  ;;  %v7253_v11 = vld [vmem:[#allocation6 + $0x538] ss:$200 sps:$4 sm:$0xff]   ;;  %v8372_v17 = vld [vmem:[#allocation6 + $0x88c] ss:$200 sps:$4 sm:$0xff]  }
 0x12e   :  { %3013 = vmatprep.subr.bf16.mxu1 %v7177_v13  ;;  %3136 = vmatprep.subr.bf16.mxu0 %v7180_v14  ;;  %v2507_v22 = vpop.f32.mrb[3].mxu1  ;;  %v7256_v12 = vld [vmem:[#allocation6 + $0x550] ss:$200 sps:$4 sm:$0xff]   ;;  %v7261_v13 = vld [vmem:[#allocation6 + $0x6cc] ss:$200 sps:$4 sm:$0xff]   ;;  %10061 = vst [vmem:[#allocation27_spill] sm:$0xff] %v8375_v15 }
 0x12f   :  { %v7264_v14 = vld [vmem:[#allocation6 + $0x6e4] ss:$200 sps:$4 sm:$0xff]   ;;  %v7268_v22 = vld [vmem:[#allocation6 + $0x870] ss:$200 sps:$4 sm:$0xff]  }
 0x130   :  { %v7267_v19 = vld [vmem:[#allocation6 + $0x85c] ss:$200 sps:$4 sm:$0xff]  }
 0x131   :  { %3014 = vmatpush1.bf16.msra.mxu1 %v7175_v16  ;;  %3137 = vmatpush1.bf16.msra.mxu0 %v7178_v18  ;;  %v7259_v16 = vld [vmem:[#allocation6 + $0x6c8] ss:$200 sps:$4 sm:$0xff]  }
 0x132   :  { %3015 = vmatprep.subr.bf16.mxu1 %v7183_v20  ;;  %3138 = vmatprep.subr.bf16.mxu0 %v7186_v21  ;;  %v7262_v18 = vld [vmem:[#allocation6 + $0x6e0] ss:$200 sps:$4 sm:$0xff]   ;;  %v7270_v20 = vld [vmem:[#allocation6 + $0x874] ss:$200 sps:$4 sm:$0xff]  }
 0x133   :  { %v7265_v21 = vld [vmem:[#allocation6 + $0x858] ss:$200 sps:$4 sm:$0xff]  }
 0x135   :  { %3016 = vmatpush1.bf16.msra.mxu1 %v7181_v23  ;;  %3139 = vmatpush1.bf16.msra.mxu0 %v7184_v24  ;;  %v7273_v23 = vld [vmem:[#allocation6 + $0x9ec] ss:$200 sps:$4 sm:$0xff]  }
 0x136   :  { %3083 = vmatprep.subr.bf16.mxu1 %v7189_v25  ;;  %3206 = vmatprep.subr.bf16.mxu0 %v7192_v26  ;;  %v7276_v24 = vld [vmem:[#allocation6 + $0xa04] ss:$200 sps:$4 sm:$0xff]   ;;  %v7271_v25 = vld [vmem:[#allocation6 + $0x9e8] ss:$200 sps:$4 sm:$0xff]  }
 0x137   :  { %v7274_v26 = vld [vmem:[#allocation6 + $0xa00] ss:$200 sps:$4 sm:$0xff]  }
 0x138   :  { %3034 = vmatmul.mubr.bf16.vlgmr.msra.gmra.mrb[28].mxu1 %v8142_v43  ;;  %3157 = vmatmul.mubr.bf16.vlgmr.msra.gmra.mrb[28].mxu0 %v8142_v43 }
 0x139   :  { %3084 = vmatpush1.bf16.msra.mxu1 %v7187_v27  ;;  %3207 = vmatpush1.bf16.msra.mxu0 %v7190_v28  ;;  %v7279_v27 = vld [vmem:[#allocation6 + $0xb7c] ss:$200 sps:$4 sm:$0xff]  }
 0x13a   :  { %3085 = vmatprep.subr.bf16.mxu1 %v7195_v29  ;;  %3208 = vmatprep.subr.bf16.mxu0 %v7198_v30  ;;  %v7282_v28 = vld [vmem:[#allocation6 + $0xb94] ss:$200 sps:$4 sm:$0xff]   ;;  %v7277_v29 = vld [vmem:[#allocation6 + $0xb78] ss:$200 sps:$4 sm:$0xff]  }
 0x13b   :  { %3115 = vmatprep.mubr.bf16.mxu1 %v9765_v0  ;;  %3238 = vmatprep.mubr.bf16.mxu0 %v9765_v0  ;;  %v7280_v30 = vld [vmem:[#allocation6 + $0xb90] ss:$200 sps:$4 sm:$0xff]  }
 0x13d   :  { %3086 = vmatpush1.bf16.msra.mxu1 %v7193_v31  ;;  %3209 = vmatpush1.bf16.msra.mxu0 %v7196_v32  ;;  %v7285_v31 = vld [vmem:[#allocation6 + $0x9c] ss:$200 sps:$4 sm:$0xff]  }
 0x13e   :  { %3087 = vmatprep.subr.bf16.mxu1 %v7201_v33  ;;  %3210 = vmatprep.subr.bf16.mxu0 %v7204_v34  ;;  %v7288_v32 = vld [vmem:[#allocation6 + $0xb4] ss:$200 sps:$4 sm:$0xff]   ;;  %v7283_v33 = vld [vmem:[#allocation6 + $0x98] ss:$200 sps:$4 sm:$0xff]  }
 0x13f   :  { %v7286_v34 = vld [vmem:[#allocation6 + $0xb0] ss:$200 sps:$4 sm:$0xff]  }
 0x141   :  { %3088 = vmatpush1.bf16.msra.mxu1 %v7199_v36  ;;  %3211 = vmatpush1.bf16.msra.mxu0 %v7202_v37  ;;  %v7291_v36 = vld [vmem:[#allocation6 + $0x22c] ss:$200 sps:$4 sm:$0xff]  }
 0x142   :  { %3089 = vmatprep.subr.bf16.mxu1 %v7207_v38  ;;  %3212 = vmatprep.subr.bf16.mxu0 %v7210_v39  ;;  %v7294_v37 = vld [vmem:[#allocation6 + $0x244] ss:$200 sps:$4 sm:$0xff]   ;;  %v8186_v38 = vld [vmem:[#allocation6 + $0x228] ss:$200 sps:$4 sm:$0xff]  }
 0x143   :  { %v7292_v39 = vld [vmem:[#allocation6 + $0x240] ss:$200 sps:$4 sm:$0xff]  }
 0x145   :  { %3090 = vmatpush1.bf16.msra.mxu1 %v7205_v40  ;;  %3213 = vmatpush1.bf16.msra.mxu0 %v7208_v42  ;;  %v8188_v40 = vld [vmem:[#allocation6 + $0x3bc] ss:$200 sps:$4 sm:$0xff]  }
 0x146   :  { %3091 = vmatprep.subr.bf16.mxu1 %v7213_v44  ;;  %3214 = vmatprep.subr.bf16.mxu0 %v7216_v45  ;;  %v7300_v42 = vld [vmem:[#allocation6 + $0x3d4] ss:$200 sps:$4 sm:$0xff]   ;;  %v8193_v44 = vld [vmem:[#allocation6 + $0x3b8] ss:$200 sps:$4 sm:$0xff]  }
 0x147   :  { %v7298_v45 = vld [vmem:[#allocation6 + $0x3d0] ss:$200 sps:$4 sm:$0xff]  }
 0x149   :  { %3092 = vmatpush1.bf16.msra.mxu1 %v7211_v46  ;;  %3215 = vmatpush1.bf16.msra.mxu0 %v7214_v47  ;;  %v8196_v46 = vld [vmem:[#allocation6 + $0x54c] ss:$200 sps:$4 sm:$0xff]  }
 0x14a   :  { %3093 = vmatprep.subr.bf16.mxu1 %v7219_v48  ;;  %3216 = vmatprep.subr.bf16.mxu0 %v7222_v49  ;;  %v7306_v47 = vld [vmem:[#allocation6 + $0x564] ss:$200 sps:$4 sm:$0xff]   ;;  %v8199_v48 = vld [vmem:[#allocation6 + $0x548] ss:$200 sps:$4 sm:$0xff]  }
 0x14b   :  { %v7304_v49 = vld [vmem:[#allocation6 + $0x560] ss:$200 sps:$4 sm:$0xff]  }
 0x14d   :  { %3094 = vmatpush1.bf16.msra.mxu1 %v7217_v50  ;;  %3217 = vmatpush1.bf16.msra.mxu0 %v7220_v51  ;;  %v8202_v50 = vld [vmem:[#allocation6 + $0x6dc] ss:$200 sps:$4 sm:$0xff]  }
 0x14e   :  { %3095 = vmatprep.subr.bf16.mxu1 %v7225_v52  ;;  %3218 = vmatprep.subr.bf16.mxu0 %v7228_v53  ;;  %v7312_v51 = vld [vmem:[#allocation6 + $0x6f4] ss:$200 sps:$4 sm:$0xff]   ;;  %v8205_v52 = vld [vmem:[#allocation6 + $0x6d8] ss:$200 sps:$4 sm:$0xff]  }
 0x14f   :  { %v7310_v53 = vld [vmem:[#allocation6 + $0x6f0] ss:$200 sps:$4 sm:$0xff]  }
 0x151   :  { %3096 = vmatpush1.bf16.msra.mxu1 %v7223_v54  ;;  %3219 = vmatpush1.bf16.msra.mxu0 %v7226_v55  ;;  %v8208_v54 = vld [vmem:[#allocation6 + $0x86c] ss:$200 sps:$4 sm:$0xff]  }
 0x152   :  { %3097 = vmatprep.subr.bf16.mxu1 %v7231_v56  ;;  %3220 = vmatprep.subr.bf16.mxu0 %v7234_v57  ;;  %v7318_v55 = vld [vmem:[#allocation6 + $0x884] ss:$200 sps:$4 sm:$0xff]   ;;  %v8211_v56 = vld [vmem:[#allocation6 + $0x868] ss:$200 sps:$4 sm:$0xff]  }
 0x153   :  { %v7316_v57 = vld [vmem:[#allocation6 + $0x880] ss:$200 sps:$4 sm:$0xff]  }
 0x155   :  { %3098 = vmatpush1.bf16.msra.mxu1 %v7229_v58  ;;  %3221 = vmatpush1.bf16.msra.mxu0 %v7232_v59  ;;  %v8214_v58 = vld [vmem:[#allocation6 + $0x9fc] ss:$200 sps:$4 sm:$0xff]  }
 0x156   :  { %3165 = vmatprep.subr.bf16.mxu1 %v7237_v60  ;;  %3288 = vmatprep.subr.bf16.mxu0 %v7240_v61  ;;  %v7324_v59 = vld [vmem:[#allocation6 + $0xa14] ss:$200 sps:$4 sm:$0xff]   ;;  %v8217_v60 = vld [vmem:[#allocation6 + $0x9f8] ss:$200 sps:$4 sm:$0xff]  }
 0x157   :  { %v7322_v61 = vld [vmem:[#allocation6 + $0xa10] ss:$200 sps:$4 sm:$0xff]  }
 0x158   :  { %3116 = vmatmul.mubr.bf16.vlgmr.msra.gmra.mrb[32].mxu1 %v8142_v43  ;;  %3239 = vmatmul.mubr.bf16.vlgmr.msra.gmra.mrb[32].mxu0 %v8142_v43 }
 0x159   :  { %3166 = vmatpush1.bf16.msra.mxu1 %v7235_v62  ;;  %3289 = vmatpush1.bf16.msra.mxu0 %v7238_v63  ;;  %v8220_v62 = vld [vmem:[#allocation6 + $0xb8c] ss:$200 sps:$4 sm:$0xff]  }
 0x15a   :  { %3167 = vmatprep.subr.bf16.mxu1 %v7243_v1  ;;  %3290 = vmatprep.subr.bf16.mxu0 %v7246_v2  ;;  %v7330_v63 = vld [vmem:[#allocation6 + $0xba4] ss:$200 sps:$4 sm:$0xff]   ;;  %v8223_v1 = vld [vmem:[#allocation6 + $0xb88] ss:$200 sps:$4 sm:$0xff]  }
 0x15b   :  { %3197 = vmatprep.mubr.bf16.mxu1 %v9765_v0  ;;  %3320 = vmatprep.mubr.bf16.mxu0 %v9765_v0  ;;  %v7328_v2 = vld [vmem:[#allocation6 + $0xba0] ss:$200 sps:$4 sm:$0xff]  }
 0x15d   :  { %3168 = vmatpush1.bf16.msra.mxu1 %v7241_v3  ;;  %3291 = vmatpush1.bf16.msra.mxu0 %v7244_v4  ;;  %v8226_v3 = vld [vmem:[#allocation6 + $0xac] ss:$200 sps:$4 sm:$0xff]  }
 0x15e   :  { %3169 = vmatprep.subr.bf16.mxu1 %v7249_v5  ;;  %3292 = vmatprep.subr.bf16.mxu0 %v7252_v6  ;;  %v7336_v4 = vld [vmem:[#allocation6 + $0xc4] ss:$200 sps:$4 sm:$0xff]   ;;  %v8229_v5 = vld [vmem:[#allocation6 + $0xa8] ss:$200 sps:$4 sm:$0xff]  }
 0x15f   :  { %v7334_v6 = vld [vmem:[#allocation6 + $0xc0] ss:$200 sps:$4 sm:$0xff]  }
 0x161   :  { %3170 = vmatpush1.bf16.msra.mxu1 %v7247_v7  ;;  %3293 = vmatpush1.bf16.msra.mxu0 %v7250_v8  ;;  %v8232_v7 = vld [vmem:[#allocation6 + $0x23c] ss:$200 sps:$4 sm:$0xff]  }
 0x162   :  { %3171 = vmatprep.subr.bf16.mxu1 %v7255_v9  ;;  %3294 = vmatprep.subr.bf16.mxu0 %v7258_v10  ;;  %v7342_v8 = vld [vmem:[#allocation6 + $0x254] ss:$200 sps:$4 sm:$0xff]   ;;  %v8237_v9 = vld [vmem:[#allocation6 + $0x238] ss:$200 sps:$4 sm:$0xff]  }
 0x163   :  { %v7340_v10 = vld [vmem:[#allocation6 + $0x250] ss:$200 sps:$4 sm:$0xff]  }
 0x165   :  { %3172 = vmatpush1.bf16.msra.mxu1 %v7253_v11  ;;  %3295 = vmatpush1.bf16.msra.mxu0 %v7256_v12  ;;  %v8240_v11 = vld [vmem:[#allocation6 + $0x3cc] ss:$200 sps:$4 sm:$0xff]  }
 0x166   :  { %3173 = vmatprep.subr.bf16.mxu1 %v7261_v13  ;;  %3296 = vmatprep.subr.bf16.mxu0 %v7264_v14  ;;  %v7348_v12 = vld [vmem:[#allocation6 + $0x3e4] ss:$200 sps:$4 sm:$0xff]   ;;  %v8245_v13 = vld [vmem:[#allocation6 + $0x3c8] ss:$200 sps:$4 sm:$0xff]  }
 0x167   :  { %v8247_v14 = vld [vmem:[#allocation6 + $0x3e0] ss:$200 sps:$4 sm:$0xff]  }
 0x169   :  { %3174 = vmatpush1.bf16.msra.mxu1 %v7259_v16  ;;  %3297 = vmatpush1.bf16.msra.mxu0 %v7262_v18  ;;  %v8250_v16 = vld [vmem:[#allocation6 + $0x55c] ss:$200 sps:$4 sm:$0xff]  }
 0x16a   :  { %3175 = vmatprep.subr.bf16.mxu1 %v7267_v19  ;;  %3298 = vmatprep.subr.bf16.mxu0 %v7270_v20  ;;  %v8252_v18 = vld [vmem:[#allocation6 + $0x574] ss:$200 sps:$4 sm:$0xff]   ;;  %v8256_v19 = vld [vmem:[#allocation6 + $0x558] ss:$200 sps:$4 sm:$0xff]  }
 0x16b   :  { %v8258_v20 = vld [vmem:[#allocation6 + $0x570] ss:$200 sps:$4 sm:$0xff]  }
 0x16d   :  { %3176 = vmatpush1.bf16.msra.mxu1 %v7265_v21  ;;  %3299 = vmatpush1.bf16.msra.mxu0 %v7268_v22  ;;  %v8262_v21 = vld [vmem:[#allocation6 + $0x6ec] ss:$200 sps:$4 sm:$0xff]  }
 0x16e   :  { %3177 = vmatprep.subr.bf16.mxu1 %v7273_v23  ;;  %3300 = vmatprep.subr.bf16.mxu0 %v7276_v24  ;;  %v8264_v22 = vld [vmem:[#allocation6 + $0x704] ss:$200 sps:$4 sm:$0xff]   ;;  %v8268_v23 = vld [vmem:[#allocation6 + $0x6e8] ss:$200 sps:$4 sm:$0xff]  }
 0x16f   :  { %v8270_v24 = vld [vmem:[#allocation6 + $0x700] ss:$200 sps:$4 sm:$0xff]  }
 0x171   :  { %3178 = vmatpush1.bf16.msra.mxu1 %v7271_v25  ;;  %3301 = vmatpush1.bf16.msra.mxu0 %v7274_v26  ;;  %v8274_v25 = vld [vmem:[#allocation6 + $0x87c] ss:$200 sps:$4 sm:$0xff]  }
 0x172   :  { %3179 = vmatprep.subr.bf16.mxu1 %v7279_v27  ;;  %3302 = vmatprep.subr.bf16.mxu0 %v7282_v28  ;;  %v8276_v26 = vld [vmem:[#allocation6 + $0x894] ss:$200 sps:$4 sm:$0xff]   ;;  %v8280_v27 = vld [vmem:[#allocation6 + $0x878] ss:$200 sps:$4 sm:$0xff]  }
 0x173   :  { %v8282_v28 = vld [vmem:[#allocation6 + $0x890] ss:$200 sps:$4 sm:$0xff]  }
 0x175   :  { %3180 = vmatpush1.bf16.msra.mxu1 %v7277_v29  ;;  %3303 = vmatpush1.bf16.msra.mxu0 %v7280_v30  ;;  %v8286_v29 = vld [vmem:[#allocation6 + $0xa0c] ss:$200 sps:$4 sm:$0xff]  }
 0x176   :  { %3247 = vmatprep.subr.bf16.mxu1 %v7285_v31  ;;  %3370 = vmatprep.subr.bf16.mxu0 %v7288_v32  ;;  %v8288_v30 = vld [vmem:[#allocation6 + $0xa24] ss:$200 sps:$4 sm:$0xff]   ;;  %v8292_v31 = vld [vmem:[#allocation6 + $0xa08] ss:$200 sps:$4 sm:$0xff]  }
 0x177   :  { %v8294_v32 = vld [vmem:[#allocation6 + $0xa20] ss:$200 sps:$4 sm:$0xff]  }
 0x178   :  { %3198 = vmatmul.mubr.bf16.vlgmr.msra.gmra.mrb[36].mxu1 %v8142_v43  ;;  %3321 = vmatmul.mubr.bf16.vlgmr.msra.gmra.mrb[36].mxu0 %v8142_v43 }
 0x179   :  { %3248 = vmatpush1.bf16.msra.mxu1 %v7283_v33  ;;  %3371 = vmatpush1.bf16.msra.mxu0 %v7286_v34  ;;  %v8298_v33 = vld [vmem:[#allocation6 + $0xb9c] ss:$200 sps:$4 sm:$0xff]  }
 0x17a   :  { %3249 = vmatprep.subr.bf16.mxu1 %v7291_v36  ;;  %3372 = vmatprep.subr.bf16.mxu0 %v7294_v37  ;;  %v8300_v34 = vld [vmem:[#allocation6 + $0xbb4] ss:$200 sps:$4 sm:$0xff]   ;;  %v8304_v36 = vld [vmem:[#allocation6 + $0xb98] ss:$200 sps:$4 sm:$0xff]  }
 0x17b   :  { %3279 = vmatprep.mubr.bf16.mxu1 %v9765_v0  ;;  %3402 = vmatprep.mubr.bf16.mxu0 %v9765_v0  ;;  %v8306_v37 = vld [vmem:[#allocation6 + $0xbb0] ss:$200 sps:$4 sm:$0xff]  }
 0x17c   :  { %10051 = vst [vmem:[#allocation17_spill] sm:$0xff] %v8306_v37 }
 0x17d   :  { %3250 = vmatpush1.bf16.msra.mxu1 %v8186_v38  ;;  %3373 = vmatpush1.bf16.msra.mxu0 %v7292_v39  ;;  %v8310_v39 = vld [vmem:[#allocation6 + $0xbc] ss:$200 sps:$4 sm:$0xff]  }
 0x17e   :  { %3251 = vmatprep.subr.bf16.mxu1 %v8188_v40  ;;  %3374 = vmatprep.subr.bf16.mxu0 %v7300_v42  ;;  %v8314_v42 = vld [vmem:[#allocation6 + $0xb8] ss:$200 sps:$4 sm:$0xff]  }
 0x181   :  { %3252 = vmatpush1.bf16.msra.mxu1 %v8193_v44  ;;  %3375 = vmatpush1.bf16.msra.mxu0 %v7298_v45  ;;  %v8317_v45 = vld [vmem:[#allocation6 + $0x4] ss:$200 sps:$4 sm:$0xff]  }
 0x182   :  { %3253 = vmatprep.subr.bf16.mxu1 %v8196_v46  ;;  %3376 = vmatprep.subr.bf16.mxu0 %v7306_v47  ;;  %10052 = vst [vmem:[#allocation18_spill] sm:$0xff] %v8317_v45  ;;  %v8320_v47 = vld [vmem:[#allocation6 + $0x24c] ss:$200 sps:$4 sm:$0xff]  }
 0x185   :  { %3254 = vmatpush1.bf16.msra.mxu1 %v8199_v48  ;;  %3377 = vmatpush1.bf16.msra.mxu0 %v7304_v49  ;;  %v8325_v49 = vld [vmem:[#allocation6] ss:$200 sps:$4 sm:$0xff]  }
 0x186   :  { %3255 = vmatprep.subr.bf16.mxu1 %v8202_v50  ;;  %3378 = vmatprep.subr.bf16.mxu0 %v7312_v51  ;;  %10053 = vst [vmem:[#allocation19_spill] sm:$0xff] %v8325_v49  ;;  %v8328_v51 = vld [vmem:[#allocation6 + $0x248] ss:$200 sps:$4 sm:$0xff]  }
 0x189   :  { %3256 = vmatpush1.bf16.msra.mxu1 %v8205_v52  ;;  %3379 = vmatpush1.bf16.msra.mxu0 %v7310_v53  ;;  %v8331_v53 = vld [vmem:[#allocation6 + $0x194] ss:$200 sps:$4 sm:$0xff]  }
 0x18a   :  { %3257 = vmatprep.subr.bf16.mxu1 %v8208_v54  ;;  %3380 = vmatprep.subr.bf16.mxu0 %v7318_v55  ;;  %10054 = vst [vmem:[#allocation20_spill] sm:$0xff] %v8331_v53  ;;  %v8334_v55 = vld [vmem:[#allocation6 + $0x3dc] ss:$200 sps:$4 sm:$0xff]  }
 0x18d   :  { %3258 = vmatpush1.bf16.msra.mxu1 %v8211_v56  ;;  %3381 = vmatpush1.bf16.msra.mxu0 %v7316_v57  ;;  %v8339_v57 = vld [vmem:[#allocation6 + $0x190] ss:$200 sps:$4 sm:$0xff]  }
 0x18e   :  { %3259 = vmatprep.subr.bf16.mxu1 %v8214_v58  ;;  %3382 = vmatprep.subr.bf16.mxu0 %v7324_v59  ;;  %10055 = vst [vmem:[#allocation21_spill] sm:$0xff] %v8339_v57  ;;  %v8342_v59 = vld [vmem:[#allocation6 + $0x3d8] ss:$200 sps:$4 sm:$0xff]  }
 0x191   :  { %3260 = vmatpush1.bf16.msra.mxu1 %v8217_v60  ;;  %3383 = vmatpush1.bf16.msra.mxu0 %v7322_v61  ;;  %v8345_v61 = vld [vmem:[#allocation6 + $0x324] ss:$200 sps:$4 sm:$0xff]  }
 0x192   :  { %3261 = vmatprep.subr.bf16.mxu1 %v8220_v62  ;;  %3384 = vmatprep.subr.bf16.mxu0 %v7330_v63  ;;  %10056 = vst [vmem:[#allocation22_spill] sm:$0xff] %v8345_v61  ;;  %v8348_v63 = vld [vmem:[#allocation6 + $0x56c] ss:$200 sps:$4 sm:$0xff]  }
 0x195   :  { %3262 = vmatpush1.bf16.msra.mxu1 %v8223_v1  ;;  %3385 = vmatpush1.bf16.msra.mxu0 %v7328_v2  ;;  %v8351_v2 = vld [vmem:[#allocation6 + $0x320] ss:$200 sps:$4 sm:$0xff]  }
 0x196   :  { %3329 = vmatprep.subr.bf16.mxu1 %v8226_v3  ;;  %3452 = vmatprep.subr.bf16.mxu0 %v7336_v4  ;;  %10057 = vst [vmem:[#allocation23_spill] sm:$0xff] %v8351_v2  ;;  %v8354_v4 = vld [vmem:[#allocation6 + $0x568] ss:$200 sps:$4 sm:$0xff]  }
 0x198   :  { %3280 = vmatmul.mubr.bf16.vlgmr.msra.gmra.mrb[40].mxu1 %v8142_v43  ;;  %3403 = vmatmul.mubr.bf16.vlgmr.msra.gmra.mrb[40].mxu0 %v8142_v43 }
 0x199   :  { %3330 = vmatpush1.bf16.msra.mxu1 %v8229_v5  ;;  %3453 = vmatpush1.bf16.msra.mxu0 %v7334_v6  ;;  %v8357_v6 = vld [vmem:[#allocation6 + $0x4b4] ss:$200 sps:$4 sm:$0xff]  }
 0x19a   :  { %3331 = vmatprep.subr.bf16.mxu1 %v8232_v7  ;;  %3454 = vmatprep.subr.bf16.mxu0 %v7342_v8  ;;  %10058 = vst [vmem:[#allocation24_spill] sm:$0xff] %v8357_v6  ;;  %v8360_v8 = vld [vmem:[#allocation6 + $0x6fc] ss:$200 sps:$4 sm:$0xff]  }
 0x19b   :  { %3361 = vmatprep.mubr.bf16.mxu1 %v9765_v0  ;;  %3484 = vmatprep.mubr.bf16.mxu0 %v9765_v0 }
 0x19d   :  { %3332 = vmatpush1.bf16.msra.mxu1 %v8237_v9  ;;  %3455 = vmatpush1.bf16.msra.mxu0 %v7340_v10  ;;  %v8363_v10 = vld [vmem:[#allocation6 + $0x4b0] ss:$200 sps:$4 sm:$0xff]  }
 0x19e   :  { %3333 = vmatprep.subr.bf16.mxu1 %v8240_v11  ;;  %3456 = vmatprep.subr.bf16.mxu0 %v7348_v12  ;;  %10059 = vst [vmem:[#allocation25_spill] sm:$0xff] %v8363_v10  ;;  %v8366_v12 = vld [vmem:[#allocation6 + $0x6f8] ss:$200 sps:$4 sm:$0xff]  }
 0x1a1   :  { %3334 = vmatpush1.bf16.msra.mxu1 %v8245_v13  ;;  %3457 = vmatpush1.bf16.msra.mxu0 %v8247_v14 }
 0x1a2   :  { %3335 = vmatprep.subr.bf16.mxu1 %v8250_v16  ;;  %3458 = vmatprep.subr.bf16.mxu0 %v8252_v18 }
 0x1a5   :  { %3336 = vmatpush1.bf16.msra.mxu1 %v8256_v19  ;;  %3459 = vmatpush1.bf16.msra.mxu0 %v8258_v20 }
 0x1a6   :  { %3337 = vmatprep.subr.bf16.mxu1 %v8262_v21  ;;  %3460 = vmatprep.subr.bf16.mxu0 %v8264_v22 }
 0x1a9   :  { %3338 = vmatpush1.bf16.msra.mxu1 %v8268_v23  ;;  %3461 = vmatpush1.bf16.msra.mxu0 %v8270_v24 }
 0x1aa   :  { %3339 = vmatprep.subr.bf16.mxu1 %v8274_v25  ;;  %3462 = vmatprep.subr.bf16.mxu0 %v8276_v26 }
 0x1ad   :  { %3340 = vmatpush1.bf16.msra.mxu1 %v8280_v27  ;;  %3463 = vmatpush1.bf16.msra.mxu0 %v8282_v28 }
 0x1ae   :  { %3341 = vmatprep.subr.bf16.mxu1 %v8286_v29  ;;  %3464 = vmatprep.subr.bf16.mxu0 %v8288_v30 }
 0x1b1   :  { %3342 = vmatpush1.bf16.msra.mxu1 %v8292_v31  ;;  %3465 = vmatpush1.bf16.msra.mxu0 %v8294_v32 }
 0x1b2   :  { %3343 = vmatprep.subr.bf16.mxu1 %v8298_v33  ;;  %3466 = vmatprep.subr.bf16.mxu0 %v8300_v34 }
 0x1b5   :  { %3344 = vmatpush1.bf16.msra.mxu1 %v8304_v36  ;;  %3467 = vmatpush1.bf16.msra.mxu0 %v8306_v37  ;;  %v9146_v37 = vld [vmem:[#allocation6 + $0x52c] ss:$200 sps:$4 sm:$0xff]  }
 0x1b6   :  { %3411 = vmatprep.subr.bf16.mxu1 %v8310_v39  ;;  %3493 = vmatprep.subr.bf16.mxu0 %v8317_v45  ;;  %v8449_v45 = vld [vmem:[#allocation6 + $0x330] ss:$200 sps:$4 sm:$0xff]   ;;  %10304 = vst [vmem:[#allocation269_spill] sm:$0xff] %v9146_v37 }
 0x1b7   :  { %10081 = vst [vmem:[#allocation46_spill] sm:$0xff] %v8449_v45 }
 0x1b8   :  { %3362 = vmatmul.mubr.bf16.vlgmr.msra.gmra.mrb[44].mxu1 %v8142_v43  ;;  %3485 = vmatmul.mubr.bf16.vlgmr.msra.gmra.mrb[44].mxu0 %v8142_v43 }
 0x1b9   :  { %3412 = vmatpush1.bf16.msra.mxu1 %v8314_v42  ;;  %3494 = vmatpush1.bf16.msra.mxu0 %v8325_v49  ;;  %v8415_v49 = vld [vmem:[#allocation6 + $0x14] ss:$200 sps:$4 sm:$0xff]  }
 0x1ba   :  { %3413 = vmatprep.subr.bf16.mxu1 %v8320_v47  ;;  %3495 = vmatprep.subr.bf16.mxu0 %v8331_v53  ;;  %v8409_v53 = vld [vmem:[#allocation6 + $0xaf0] ss:$200 sps:$4 sm:$0xff]   ;;  %10070 = vst [vmem:[#allocation36_spill] sm:$0xff] %v8415_v49 }
 0x1bb   :  { %3443 = vmatprep.mubr.bf16.mxu1 %v9765_v0  ;;  %3525 = vmatprep.mubr.bf16.mxu0 %v9765_v0  ;;  %v8369_v0 = vld [vmem:[#allocation6 + $0x644] ss:$200 sps:$4 sm:$0xff]   ;;  %10068 = vst [vmem:[#allocation34_spill] sm:$0xff] %v8409_v53 }
 0x1bc   :  { %10060 = vst [vmem:[#allocation26_spill] sm:$0xff] %v8369_v0 }
 0x1bd   :  { %3414 = vmatpush1.bf16.msra.mxu1 %v8328_v51  ;;  %3496 = vmatpush1.bf16.msra.mxu0 %v8339_v57  ;;  %v8402_v57 = vld [vmem:[#allocation6 + $0xba8] ss:$200 sps:$4 sm:$0xff]  }
 0x1be   :  { %3415 = vmatprep.subr.bf16.mxu1 %v8334_v55  ;;  %3497 = vmatprep.subr.bf16.mxu0 %v8345_v61  ;;  %v8396_v61 = vld [vmem:[#allocation6 + $0xbac] ss:$200 sps:$4 sm:$0xff]   ;;  %10066 = vst [vmem:[#allocation32_spill] sm:$0xff] %v8402_v57 }
 0x1c1   :  { %3416 = vmatpush1.bf16.msra.mxu1 %v8342_v59  ;;  %3498 = vmatpush1.bf16.msra.mxu0 %v8351_v2  ;;  %v8390_v2 = vld [vmem:[#allocation6 + $0xa18] ss:$200 sps:$4 sm:$0xff]  }
 0x1c2   :  { %3417 = vmatprep.subr.bf16.mxu1 %v8348_v63  ;;  %3499 = vmatprep.subr.bf16.mxu0 %v8357_v6  ;;  %v8384_v6 = vld [vmem:[#allocation6 + $0xa1c] ss:$200 sps:$4 sm:$0xff]  }
 0x1c5   :  { %3418 = vmatpush1.bf16.msra.mxu1 %v8354_v4  ;;  %3500 = vmatpush1.bf16.msra.mxu0 %v8363_v10  ;;  %v8381_v10 = vld [vmem:[#allocation6 + $0x7d4] ss:$200 sps:$4 sm:$0xff]  }
 0x1c6   :  { %3419 = vmatprep.subr.bf16.mxu1 %v8360_v8  ;;  %3501 = vmatprep.subr.bf16.mxu0 %v8369_v0  ;;  %10062 = vst [vmem:[#allocation28_spill] sm:$0xff] %v8381_v10  ;;  %v8387_v0 = vld [vmem:[#allocation6 + $0x7d0] ss:$200 sps:$4 sm:$0xff]  }
 0x1c7   :  { %10063 = vst [vmem:[#allocation29_spill] sm:$0xff] %v8387_v0 }
 0x1c9   :  { %3420 = vmatpush1.bf16.msra.mxu1 %v8366_v12  ;;  %3502 = vmatpush1.bf16.msra.mxu0 %v8375_v15  ;;  %v8393_v15 = vld [vmem:[#allocation6 + $0x964] ss:$200 sps:$4 sm:$0xff]  }
 0x1ca   :  { %3421 = vmatprep.subr.bf16.mxu1 %v8372_v17  ;;  %3503 = vmatprep.subr.bf16.mxu0 %v8381_v10  ;;  %10064 = vst [vmem:[#allocation30_spill] sm:$0xff] %v8393_v15  ;;  %v8399_v10 = vld [vmem:[#allocation6 + $0x960] ss:$200 sps:$4 sm:$0xff]  }
 0x1cb   :  { %10065 = vst [vmem:[#allocation31_spill] sm:$0xff] %v8399_v10 }
 0x1cd   :  { %3422 = vmatpush1.bf16.msra.mxu1 %v8378_v41  ;;  %3504 = vmatpush1.bf16.msra.mxu0 %v8387_v0  ;;  %v8405_v0 = vld [vmem:[#allocation6 + $0xaf4] ss:$200 sps:$4 sm:$0xff]  }
 0x1ce   :  { %3423 = vmatprep.subr.bf16.mxu1 %v8384_v6  ;;  %3505 = vmatprep.subr.bf16.mxu0 %v8393_v15  ;;  %10067 = vst [vmem:[#allocation33_spill] sm:$0xff] %v8405_v0  ;;  %v8412_v15 = vld [vmem:[#allocation6 + $0xc] ss:$200 sps:$4 sm:$0xff]  }
 0x1cf   :  { %10069 = vst [vmem:[#allocation35_spill] sm:$0xff] %v8412_v15 }
 0x1d1   :  { %3424 = vmatpush1.bf16.msra.mxu1 %v8390_v2  ;;  %3506 = vmatpush1.bf16.msra.mxu0 %v8399_v10  ;;  %v8420_v10 = vld [vmem:[#allocation6 + $0x8] ss:$200 sps:$4 sm:$0xff]  }
 0x1d2   :  { %3425 = vmatprep.subr.bf16.mxu1 %v8396_v61  ;;  %3507 = vmatprep.subr.bf16.mxu0 %v8405_v0  ;;  %10071 = vst [vmem:[#allocation37_spill] sm:$0xff] %v8420_v10  ;;  %v8423_v0 = vld [vmem:[#allocation6 + $0x10] ss:$200 sps:$4 sm:$0xff]  }
 0x1d3   :  { %10072 = vst [vmem:[#allocation38_spill] sm:$0xff] %v8423_v0 }
 0x1d5   :  { %3426 = vmatpush1.bf16.msra.mxu1 %v8402_v57  ;;  %3508 = vmatpush1.bf16.msra.mxu0 %v8409_v53  ;;  %v8426_v53 = vld [vmem:[#allocation6 + $0x19c] ss:$200 sps:$4 sm:$0xff]   ;;  %v9149_v57 = vld [vmem:[#allocation6 + $0x528] ss:$200 sps:$4 sm:$0xff]  }
 0x1d6   :  { %3534 = vmatprep.subr.bf16.mxu1 %v8412_v15  ;;  %3575 = vmatprep.subr.bf16.mxu0 %v8415_v49  ;;  %10073 = vst [vmem:[#allocation39_spill] sm:$0xff] %v8426_v53  ;;  %v8429_v15 = vld [vmem:[#allocation6 + $0x1a4] ss:$200 sps:$4 sm:$0xff]   ;;  %v10075_v49 = vmov 0   ;;  %10305 = vst [vmem:[#allocation270_spill] sm:$0xff] %v9149_v57 }
 0x1d7   :  { %10074 = vst [vmem:[#allocation40_spill] sm:$0xff] %v8429_v15 }
 0x1d8   :  { %3444 = vmatmul.mubr.bf16.vlgmr.msra.gmra.mrb[48].mxu1 %v8142_v43  ;;  %3526 = vmatmul.mubr.bf16.vlgmr.msra.gmra.mrb[48].mxu0 %v8135_v35  ;;  %v8434_v43 = vld [vmem:[#allocation6 + $0x198] ss:$200 sps:$4 sm:$0xff]  }
 0x1d9   :  { %3535 = vmatpush1.bf16.msra.mxu1 %v8420_v10  ;;  %3576 = vmatpush1.bf16.msra.mxu0 %v8423_v0  ;;  %10076 = vst [vmem:[#allocation41_spill] sm:$0xff] %v8434_v43  ;;  %v8437_v10 = vld [vmem:[#allocation6 + $0x1a0] ss:$200 sps:$4 sm:$0xff]   ;;  %v8440_v0 = vld [vmem:[#allocation6 + $0x32c] ss:$200 sps:$4 sm:$0xff]  }
 0x1da   :  { %3536 = vmatprep.subr.bf16.mxu1 %v8426_v53  ;;  %3577 = vmatprep.subr.bf16.mxu0 %v8429_v15  ;;  %10077 = vst [vmem:[#allocation42_spill] sm:$0xff] %v8437_v10  ;;  %10078 = vst [vmem:[#allocation43_spill] sm:$0xff] %v8440_v0  ;;  %v8443_v53 = vld [vmem:[#allocation6 + $0x334] ss:$200 sps:$4 sm:$0xff]   ;;  %v8446_v15 = vld [vmem:[#allocation6 + $0x328] ss:$200 sps:$4 sm:$0xff]  }
 0x1db   :  { %3566 = vmatprep.mubr.bf16.mxu1 %v10075_v49  ;;  %3607 = vmatprep.mubr.bf16.mxu0 %v10075_v49  ;;  %10079 = vst [vmem:[#allocation44_spill] sm:$0xff] %v8443_v53  ;;  %10080 = vst [vmem:[#allocation45_spill] sm:$0xff] %v8446_v15 }
 0x1dd   :  { %3537 = vmatpush1.bf16.msra.mxu1 %v8434_v43  ;;  %3578 = vmatpush1.bf16.msra.mxu0 %v8437_v10  ;;  %v8452_v43 = vld [vmem:[#allocation6 + $0x4bc] ss:$200 sps:$4 sm:$0xff]  }
 0x1de   :  { %3538 = vmatprep.subr.bf16.mxu1 %v8440_v0  ;;  %3579 = vmatprep.subr.bf16.mxu0 %v8443_v53  ;;  %10082 = vst [vmem:[#allocation47_spill] sm:$0xff] %v8452_v43  ;;  %v8455_v10 = vld [vmem:[#allocation6 + $0x4c4] ss:$200 sps:$4 sm:$0xff]   ;;  %v8458_v0 = vld [vmem:[#allocation6 + $0x4b8] ss:$200 sps:$4 sm:$0xff]  }
 0x1df   :  { %10083 = vst [vmem:[#allocation48_spill] sm:$0xff] %v8455_v10  ;;  %10084 = vst [vmem:[#allocation49_spill] sm:$0xff] %v8458_v0  ;;  %v8461_v53 = vld [vmem:[#allocation6 + $0x4c0] ss:$200 sps:$4 sm:$0xff]  }
 0x1e0   :  { %10085 = vst [vmem:[#allocation50_spill] sm:$0xff] %v8461_v53 }
 0x1e1   :  { %3539 = vmatpush1.bf16.msra.mxu1 %v8446_v15  ;;  %3580 = vmatpush1.bf16.msra.mxu0 %v8449_v45  ;;  %v8464_v15 = vld [vmem:[#allocation6 + $0x64c] ss:$200 sps:$4 sm:$0xff]  }
 0x1e2   :  { %3540 = vmatprep.subr.bf16.mxu1 %v8452_v43  ;;  %3581 = vmatprep.subr.bf16.mxu0 %v8455_v10  ;;  %10086 = vst [vmem:[#allocation51_spill] sm:$0xff] %v8464_v15  ;;  %v8467_v45 = vld [vmem:[#allocation6 + $0x654] ss:$200 sps:$4 sm:$0xff]   ;;  %v8470_v43 = vld [vmem:[#allocation6 + $0x648] ss:$200 sps:$4 sm:$0xff]  }
 0x1e3   :  { %10087 = vst [vmem:[#allocation52_spill] sm:$0xff] %v8467_v45  ;;  %10088 = vst [vmem:[#allocation53_spill] sm:$0xff] %v8470_v43  ;;  %v8473_v10 = vld [vmem:[#allocation6 + $0x650] ss:$200 sps:$4 sm:$0xff]  }
 0x1e4   :  { %10089 = vst [vmem:[#allocation54_spill] sm:$0xff] %v8473_v10 }
 0x1e5   :  { %3541 = vmatpush1.bf16.msra.mxu1 %v8458_v0  ;;  %3582 = vmatpush1.bf16.msra.mxu0 %v8461_v53  ;;  %v8476_v0 = vld [vmem:[#allocation6 + $0x7dc] ss:$200 sps:$4 sm:$0xff]  }
 0x1e6   :  { %3542 = vmatprep.subr.bf16.mxu1 %v8464_v15  ;;  %3583 = vmatprep.subr.bf16.mxu0 %v8467_v45  ;;  %10090 = vst [vmem:[#allocation55_spill] sm:$0xff] %v8476_v0  ;;  %v8479_v53 = vld [vmem:[#allocation6 + $0x7e4] ss:$200 sps:$4 sm:$0xff]   ;;  %v8482_v15 = vld [vmem:[#allocation6 + $0x7d8] ss:$200 sps:$4 sm:$0xff]  }
 0x1e7   :  { %10091 = vst [vmem:[#allocation56_spill] sm:$0xff] %v8479_v53  ;;  %10092 = vst [vmem:[#allocation57_spill] sm:$0xff] %v8482_v15  ;;  %v8485_v45 = vld [vmem:[#allocation6 + $0x7e0] ss:$200 sps:$4 sm:$0xff]  }
 0x1e8   :  { %10093 = vst [vmem:[#allocation58_spill] sm:$0xff] %v8485_v45 }
 0x1e9   :  { %3543 = vmatpush1.bf16.msra.mxu1 %v8470_v43  ;;  %3584 = vmatpush1.bf16.msra.mxu0 %v8473_v10  ;;  %v8488_v43 = vld [vmem:[#allocation6 + $0x96c] ss:$200 sps:$4 sm:$0xff]  }
 0x1ea   :  { %3544 = vmatprep.subr.bf16.mxu1 %v8476_v0  ;;  %3585 = vmatprep.subr.bf16.mxu0 %v8479_v53  ;;  %10094 = vst [vmem:[#allocation59_spill] sm:$0xff] %v8488_v43  ;;  %v8491_v10 = vld [vmem:[#allocation6 + $0x974] ss:$200 sps:$4 sm:$0xff]   ;;  %v8494_v0 = vld [vmem:[#allocation6 + $0x968] ss:$200 sps:$4 sm:$0xff]  }
 0x1eb   :  { %10095 = vst [vmem:[#allocation60_spill] sm:$0xff] %v8491_v10  ;;  %10096 = vst [vmem:[#allocation61_spill] sm:$0xff] %v8494_v0  ;;  %v8497_v53 = vld [vmem:[#allocation6 + $0x970] ss:$200 sps:$4 sm:$0xff]  }
 0x1ec   :  { %10097 = vst [vmem:[#allocation62_spill] sm:$0xff] %v8497_v53 }
 0x1ed   :  { %3545 = vmatpush1.bf16.msra.mxu1 %v8482_v15  ;;  %3586 = vmatpush1.bf16.msra.mxu0 %v8485_v45  ;;  %v8500_v15 = vld [vmem:[#allocation6 + $0xafc] ss:$200 sps:$4 sm:$0xff]  }
 0x1ee   :  { %3546 = vmatprep.subr.bf16.mxu1 %v8488_v43  ;;  %3587 = vmatprep.subr.bf16.mxu0 %v8491_v10  ;;  %10098 = vst [vmem:[#allocation63_spill] sm:$0xff] %v8500_v15  ;;  %v8503_v45 = vld [vmem:[#allocation6 + $0xb04] ss:$200 sps:$4 sm:$0xff]   ;;  %v8506_v43 = vld [vmem:[#allocation6 + $0xaf8] ss:$200 sps:$4 sm:$0xff]  }
 0x1ef   :  { %10099 = vst [vmem:[#allocation64_spill] sm:$0xff] %v8503_v45  ;;  %10100 = vst [vmem:[#allocation65_spill] sm:$0xff] %v8506_v43  ;;  %v8509_v10 = vld [vmem:[#allocation6 + $0xb00] ss:$200 sps:$4 sm:$0xff]  }
 0x1f0   :  { %10101 = vst [vmem:[#allocation66_spill] sm:$0xff] %v8509_v10 }
 0x1f1   :  { %3547 = vmatpush1.bf16.msra.mxu1 %v8494_v0  ;;  %3588 = vmatpush1.bf16.msra.mxu0 %v8497_v53  ;;  %v8512_v0 = vld [vmem:[#allocation6 + $0x1c] ss:$200 sps:$4 sm:$0xff]  }
 0x1f2   :  { %3548 = vmatprep.subr.bf16.mxu1 %v8500_v15  ;;  %3589 = vmatprep.subr.bf16.mxu0 %v8503_v45  ;;  %10102 = vst [vmem:[#allocation67_spill] sm:$0xff] %v8512_v0  ;;  %v8515_v53 = vld [vmem:[#allocation6 + $0x24] ss:$200 sps:$4 sm:$0xff]   ;;  %v8520_v45 = vld [vmem:[#allocation6 + $0x18] ss:$200 sps:$4 sm:$0xff]  }
 0x1f3   :  { %10103 = vst [vmem:[#allocation68_spill] sm:$0xff] %v8515_v53  ;;  %10104 = vst [vmem:[#allocation69_spill] sm:$0xff] %v8520_v45  ;;  %v8549_v15 = vld [vmem:[#allocation6 + $0x340] ss:$200 sps:$4 sm:$0xff]  }
 0x1f4   :  { %10113 = vst [vmem:[#allocation78_spill] sm:$0xff] %v8549_v15 }
 0x1f5   :  { %3549 = vmatpush1.bf16.msra.mxu1 %v8506_v43  ;;  %3590 = vmatpush1.bf16.msra.mxu0 %v8509_v10  ;;  %v8523_v43 = vld [vmem:[#allocation6 + $0x20] ss:$200 sps:$4 sm:$0xff]   ;;  %v8526_v10 = vld [vmem:[#allocation6 + $0x1ac] ss:$200 sps:$4 sm:$0xff]  }
 0x1f6   :  { %3616 = vmatprep.subr.bf16.mxu1 %v8512_v0  ;;  %3657 = vmatprep.subr.bf16.mxu0 %v8515_v53  ;;  %10105 = vst [vmem:[#allocation70_spill] sm:$0xff] %v8523_v43  ;;  %10106 = vst [vmem:[#allocation71_spill] sm:$0xff] %v8526_v10  ;;  %v8529_v0 = vld [vmem:[#allocation6 + $0x1b4] ss:$200 sps:$4 sm:$0xff]   ;;  %v8534_v53 = vld [vmem:[#allocation6 + $0x1a8] ss:$200 sps:$4 sm:$0xff]  }
 0x1f7   :  { %10107 = vst [vmem:[#allocation72_spill] sm:$0xff] %v8529_v0  ;;  %10108 = vst [vmem:[#allocation73_spill] sm:$0xff] %v8534_v53 }
 0x1f8   :  { %3567 = vmatmul.mubr.bf16.vlgmr.msra.gmra.mrb[4].mxu1 %v8135_v35  ;;  %3608 = vmatmul.mubr.bf16.vlgmr.msra.gmra.mrb[0].mxu0 %v8135_v35 }
 0x1f9   :  { %3617 = vmatpush1.bf16.msra.mxu1 %v8520_v45  ;;  %3658 = vmatpush1.bf16.msra.mxu0 %v8523_v43  ;;  %v8537_v45 = vld [vmem:[#allocation6 + $0x1b0] ss:$200 sps:$4 sm:$0xff]   ;;  %v8540_v43 = vld [vmem:[#allocation6 + $0x33c] ss:$200 sps:$4 sm:$0xff]  }
 0x1fa   :  { %3618 = vmatprep.subr.bf16.mxu1 %v8526_v10  ;;  %3659 = vmatprep.subr.bf16.mxu0 %v8529_v0  ;;  %10109 = vst [vmem:[#allocation74_spill] sm:$0xff] %v8537_v45  ;;  %10110 = vst [vmem:[#allocation75_spill] sm:$0xff] %v8540_v43  ;;  %v8543_v10 = vld [vmem:[#allocation6 + $0x344] ss:$200 sps:$4 sm:$0xff]   ;;  %v8546_v0 = vld [vmem:[#allocation6 + $0x338] ss:$200 sps:$4 sm:$0xff]  }
 0x1fb   :  { %3648 = vmatprep.mubr.bf16.mxu1 %v10075_v49  ;;  %3689 = vmatprep.mubr.bf16.mxu0 %v10075_v49  ;;  %10111 = vst [vmem:[#allocation76_spill] sm:$0xff] %v8543_v10  ;;  %10112 = vst [vmem:[#allocation77_spill] sm:$0xff] %v8546_v0 }
 0x1fd   :  { %3619 = vmatpush1.bf16.msra.mxu1 %v8534_v53  ;;  %3660 = vmatpush1.bf16.msra.mxu0 %v8537_v45  ;;  %v8552_v53 = vld [vmem:[#allocation6 + $0x4cc] ss:$200 sps:$4 sm:$0xff]  }
 0x1fe   :  { %3620 = vmatprep.subr.bf16.mxu1 %v8540_v43  ;;  %3661 = vmatprep.subr.bf16.mxu0 %v8543_v10  ;;  %10114 = vst [vmem:[#allocation79_spill] sm:$0xff] %v8552_v53  ;;  %v8555_v45 = vld [vmem:[#allocation6 + $0x4d4] ss:$200 sps:$4 sm:$0xff]   ;;  %v8558_v43 = vld [vmem:[#allocation6 + $0x4c8] ss:$200 sps:$4 sm:$0xff]  }
 0x1ff   :  { %10115 = vst [vmem:[#allocation80_spill] sm:$0xff] %v8555_v45  ;;  %10116 = vst [vmem:[#allocation81_spill] sm:$0xff] %v8558_v43  ;;  %v8561_v10 = vld [vmem:[#allocation6 + $0x4d0] ss:$200 sps:$4 sm:$0xff]  }
 0x200   :  { %10117 = vst [vmem:[#allocation82_spill] sm:$0xff] %v8561_v10 }
 0x201   :  { %3621 = vmatpush1.bf16.msra.mxu1 %v8546_v0  ;;  %3662 = vmatpush1.bf16.msra.mxu0 %v8549_v15  ;;  %v8564_v0 = vld [vmem:[#allocation6 + $0x65c] ss:$200 sps:$4 sm:$0xff]  }
 0x202   :  { %3622 = vmatprep.subr.bf16.mxu1 %v8552_v53  ;;  %3663 = vmatprep.subr.bf16.mxu0 %v8555_v45  ;;  %10118 = vst [vmem:[#allocation83_spill] sm:$0xff] %v8564_v0  ;;  %v8567_v15 = vld [vmem:[#allocation6 + $0x664] ss:$200 sps:$4 sm:$0xff]   ;;  %v8570_v53 = vld [vmem:[#allocation6 + $0x658] ss:$200 sps:$4 sm:$0xff]  }
 0x203   :  { %10119 = vst [vmem:[#allocation84_spill] sm:$0xff] %v8567_v15  ;;  %10120 = vst [vmem:[#allocation85_spill] sm:$0xff] %v8570_v53  ;;  %v8573_v45 = vld [vmem:[#allocation6 + $0x660] ss:$200 sps:$4 sm:$0xff]  }
 0x204   :  { %10121 = vst [vmem:[#allocation86_spill] sm:$0xff] %v8573_v45 }
 0x205   :  { %3623 = vmatpush1.bf16.msra.mxu1 %v8558_v43  ;;  %3664 = vmatpush1.bf16.msra.mxu0 %v8561_v10  ;;  %v8576_v43 = vld [vmem:[#allocation6 + $0x7ec] ss:$200 sps:$4 sm:$0xff]  }
 0x206   :  { %3624 = vmatprep.subr.bf16.mxu1 %v8564_v0  ;;  %3665 = vmatprep.subr.bf16.mxu0 %v8567_v15  ;;  %10122 = vst [vmem:[#allocation87_spill] sm:$0xff] %v8576_v43  ;;  %v8579_v10 = vld [vmem:[#allocation6 + $0x7f4] ss:$200 sps:$4 sm:$0xff]   ;;  %v8582_v0 = vld [vmem:[#allocation6 + $0x7e8] ss:$200 sps:$4 sm:$0xff]  }
 0x207   :  { %10123 = vst [vmem:[#allocation88_spill] sm:$0xff] %v8579_v10  ;;  %10124 = vst [vmem:[#allocation89_spill] sm:$0xff] %v8582_v0  ;;  %v8585_v15 = vld [vmem:[#allocation6 + $0x7f0] ss:$200 sps:$4 sm:$0xff]  }
 0x208   :  { %10125 = vst [vmem:[#allocation90_spill] sm:$0xff] %v8585_v15 }
 0x209   :  { %3625 = vmatpush1.bf16.msra.mxu1 %v8570_v53  ;;  %3666 = vmatpush1.bf16.msra.mxu0 %v8573_v45  ;;  %v8588_v53 = vld [vmem:[#allocation6 + $0x97c] ss:$200 sps:$4 sm:$0xff]  }
 0x20a   :  { %3626 = vmatprep.subr.bf16.mxu1 %v8576_v43  ;;  %3667 = vmatprep.subr.bf16.mxu0 %v8579_v10  ;;  %10126 = vst [vmem:[#allocation91_spill] sm:$0xff] %v8588_v53  ;;  %v8591_v45 = vld [vmem:[#allocation6 + $0x984] ss:$200 sps:$4 sm:$0xff]   ;;  %v8594_v43 = vld [vmem:[#allocation6 + $0x978] ss:$200 sps:$4 sm:$0xff]  }
 0x20b   :  { %10127 = vst [vmem:[#allocation92_spill] sm:$0xff] %v8591_v45  ;;  %10128 = vst [vmem:[#allocation93_spill] sm:$0xff] %v8594_v43  ;;  %v8597_v10 = vld [vmem:[#allocation6 + $0x980] ss:$200 sps:$4 sm:$0xff]  }
 0x20c   :  { %10129 = vst [vmem:[#allocation94_spill] sm:$0xff] %v8597_v10 }
 0x20d   :  { %3627 = vmatpush1.bf16.msra.mxu1 %v8582_v0  ;;  %3668 = vmatpush1.bf16.msra.mxu0 %v8585_v15  ;;  %v8600_v0 = vld [vmem:[#allocation6 + $0xb0c] ss:$200 sps:$4 sm:$0xff]  }
 0x20e   :  { %3628 = vmatprep.subr.bf16.mxu1 %v8588_v53  ;;  %3669 = vmatprep.subr.bf16.mxu0 %v8591_v45  ;;  %10130 = vst [vmem:[#allocation95_spill] sm:$0xff] %v8600_v0  ;;  %v8603_v15 = vld [vmem:[#allocation6 + $0xb14] ss:$200 sps:$4 sm:$0xff]   ;;  %v8606_v53 = vld [vmem:[#allocation6 + $0xb08] ss:$200 sps:$4 sm:$0xff]  }
 0x20f   :  { %10131 = vst [vmem:[#allocation96_spill] sm:$0xff] %v8603_v15  ;;  %10132 = vst [vmem:[#allocation97_spill] sm:$0xff] %v8606_v53  ;;  %v8609_v45 = vld [vmem:[#allocation6 + $0xb10] ss:$200 sps:$4 sm:$0xff]  }
 0x210   :  { %10133 = vst [vmem:[#allocation98_spill] sm:$0xff] %v8609_v45 }
 0x211   :  { %3629 = vmatpush1.bf16.msra.mxu1 %v8594_v43  ;;  %3670 = vmatpush1.bf16.msra.mxu0 %v8597_v10  ;;  %v8612_v43 = vld [vmem:[#allocation6 + $0x2c] ss:$200 sps:$4 sm:$0xff]  }
 0x212   :  { %3630 = vmatprep.subr.bf16.mxu1 %v8600_v0  ;;  %3671 = vmatprep.subr.bf16.mxu0 %v8603_v15  ;;  %10134 = vst [vmem:[#allocation99_spill] sm:$0xff] %v8612_v43  ;;  %v8615_v10 = vld [vmem:[#allocation6 + $0x34] ss:$200 sps:$4 sm:$0xff]   ;;  %v8620_v15 = vld [vmem:[#allocation6 + $0x28] ss:$200 sps:$4 sm:$0xff]  }
 0x213   :  { %10135 = vst [vmem:[#allocation100_spill] sm:$0xff] %v8615_v10  ;;  %10136 = vst [vmem:[#allocation101_spill] sm:$0xff] %v8620_v15  ;;  %v8649_v0 = vld [vmem:[#allocation6 + $0x350] ss:$200 sps:$4 sm:$0xff]  }
 0x214   :  { %10145 = vst [vmem:[#allocation110_spill] sm:$0xff] %v8649_v0 }
 0x215   :  { %3631 = vmatpush1.bf16.msra.mxu1 %v8606_v53  ;;  %3672 = vmatpush1.bf16.msra.mxu0 %v8609_v45  ;;  %v8623_v53 = vld [vmem:[#allocation6 + $0x30] ss:$200 sps:$4 sm:$0xff]   ;;  %v8626_v45 = vld [vmem:[#allocation6 + $0x1bc] ss:$200 sps:$4 sm:$0xff]  }
 0x216   :  { %3698 = vmatprep.subr.bf16.mxu1 %v8612_v43  ;;  %3739 = vmatprep.subr.bf16.mxu0 %v8615_v10  ;;  %10137 = vst [vmem:[#allocation102_spill] sm:$0xff] %v8623_v53  ;;  %10138 = vst [vmem:[#allocation103_spill] sm:$0xff] %v8626_v45  ;;  %v8629_v43 = vld [vmem:[#allocation6 + $0x1c4] ss:$200 sps:$4 sm:$0xff]   ;;  %v8634_v10 = vld [vmem:[#allocation6 + $0x1b8] ss:$200 sps:$4 sm:$0xff]  }
 0x217   :  { %10139 = vst [vmem:[#allocation104_spill] sm:$0xff] %v8629_v43  ;;  %10140 = vst [vmem:[#allocation105_spill] sm:$0xff] %v8634_v10 }
 0x218   :  { %3649 = vmatmul.mubr.bf16.vlgmr.msra.gmra.mrb[8].mxu1 %v8135_v35  ;;  %3690 = vmatmul.mubr.bf16.vlgmr.msra.gmra.mrb[4].mxu0 %v8135_v35 }
 0x219   :  { %3699 = vmatpush1.bf16.msra.mxu1 %v8620_v15  ;;  %3740 = vmatpush1.bf16.msra.mxu0 %v8623_v53  ;;  %v8637_v15 = vld [vmem:[#allocation6 + $0x1c0] ss:$200 sps:$4 sm:$0xff]   ;;  %v8640_v53 = vld [vmem:[#allocation6 + $0x34c] ss:$200 sps:$4 sm:$0xff]  }
 0x21a   :  { %3700 = vmatprep.subr.bf16.mxu1 %v8626_v45  ;;  %3741 = vmatprep.subr.bf16.mxu0 %v8629_v43  ;;  %10141 = vst [vmem:[#allocation106_spill] sm:$0xff] %v8637_v15  ;;  %10142 = vst [vmem:[#allocation107_spill] sm:$0xff] %v8640_v53  ;;  %v8643_v45 = vld [vmem:[#allocation6 + $0x354] ss:$200 sps:$4 sm:$0xff]   ;;  %v8646_v43 = vld [vmem:[#allocation6 + $0x348] ss:$200 sps:$4 sm:$0xff]  }
 0x21b   :  { %3730 = vmatprep.mubr.bf16.mxu1 %v10075_v49  ;;  %3771 = vmatprep.mubr.bf16.mxu0 %v10075_v49  ;;  %10143 = vst [vmem:[#allocation108_spill] sm:$0xff] %v8643_v45  ;;  %10144 = vst [vmem:[#allocation109_spill] sm:$0xff] %v8646_v43 }
 0x21d   :  { %3701 = vmatpush1.bf16.msra.mxu1 %v8634_v10  ;;  %3742 = vmatpush1.bf16.msra.mxu0 %v8637_v15  ;;  %v8652_v10 = vld [vmem:[#allocation6 + $0x4dc] ss:$200 sps:$4 sm:$0xff]  }
 0x21e   :  { %3702 = vmatprep.subr.bf16.mxu1 %v8640_v53  ;;  %3743 = vmatprep.subr.bf16.mxu0 %v8643_v45  ;;  %10146 = vst [vmem:[#allocation111_spill] sm:$0xff] %v8652_v10  ;;  %v8655_v15 = vld [vmem:[#allocation6 + $0x4e4] ss:$200 sps:$4 sm:$0xff]   ;;  %v8658_v53 = vld [vmem:[#allocation6 + $0x4d8] ss:$200 sps:$4 sm:$0xff]  }
 0x21f   :  { %10147 = vst [vmem:[#allocation112_spill] sm:$0xff] %v8655_v15  ;;  %10148 = vst [vmem:[#allocation113_spill] sm:$0xff] %v8658_v53  ;;  %v8661_v45 = vld [vmem:[#allocation6 + $0x4e0] ss:$200 sps:$4 sm:$0xff]  }
 0x220   :  { %10149 = vst [vmem:[#allocation114_spill] sm:$0xff] %v8661_v45 }
 0x221   :  { %3703 = vmatpush1.bf16.msra.mxu1 %v8646_v43  ;;  %3744 = vmatpush1.bf16.msra.mxu0 %v8649_v0  ;;  %v8664_v43 = vld [vmem:[#allocation6 + $0x66c] ss:$200 sps:$4 sm:$0xff]  }
 0x222   :  { %3704 = vmatprep.subr.bf16.mxu1 %v8652_v10  ;;  %3745 = vmatprep.subr.bf16.mxu0 %v8655_v15  ;;  %10150 = vst [vmem:[#allocation115_spill] sm:$0xff] %v8664_v43  ;;  %v8667_v0 = vld [vmem:[#allocation6 + $0x674] ss:$200 sps:$4 sm:$0xff]   ;;  %v8670_v10 = vld [vmem:[#allocation6 + $0x668] ss:$200 sps:$4 sm:$0xff]  }
 0x223   :  { %10151 = vst [vmem:[#allocation116_spill] sm:$0xff] %v8667_v0  ;;  %10152 = vst [vmem:[#allocation117_spill] sm:$0xff] %v8670_v10  ;;  %v8673_v15 = vld [vmem:[#allocation6 + $0x670] ss:$200 sps:$4 sm:$0xff]  }
 0x224   :  { %10153 = vst [vmem:[#allocation118_spill] sm:$0xff] %v8673_v15 }
 0x225   :  { %3705 = vmatpush1.bf16.msra.mxu1 %v8658_v53  ;;  %3746 = vmatpush1.bf16.msra.mxu0 %v8661_v45  ;;  %v8676_v53 = vld [vmem:[#allocation6 + $0x7fc] ss:$200 sps:$4 sm:$0xff]  }
 0x226   :  { %3706 = vmatprep.subr.bf16.mxu1 %v8664_v43  ;;  %3747 = vmatprep.subr.bf16.mxu0 %v8667_v0  ;;  %10154 = vst [vmem:[#allocation119_spill] sm:$0xff] %v8676_v53  ;;  %v8679_v45 = vld [vmem:[#allocation6 + $0x804] ss:$200 sps:$4 sm:$0xff]   ;;  %v8682_v43 = vld [vmem:[#allocation6 + $0x7f8] ss:$200 sps:$4 sm:$0xff]  }
 0x227   :  { %10155 = vst [vmem:[#allocation120_spill] sm:$0xff] %v8679_v45  ;;  %10156 = vst [vmem:[#allocation121_spill] sm:$0xff] %v8682_v43  ;;  %v8685_v0 = vld [vmem:[#allocation6 + $0x800] ss:$200 sps:$4 sm:$0xff]  }
 0x228   :  { %10157 = vst [vmem:[#allocation122_spill] sm:$0xff] %v8685_v0 }
 0x229   :  { %3707 = vmatpush1.bf16.msra.mxu1 %v8670_v10  ;;  %3748 = vmatpush1.bf16.msra.mxu0 %v8673_v15  ;;  %v8688_v10 = vld [vmem:[#allocation6 + $0x98c] ss:$200 sps:$4 sm:$0xff]  }
 0x22a   :  { %3708 = vmatprep.subr.bf16.mxu1 %v8676_v53  ;;  %3749 = vmatprep.subr.bf16.mxu0 %v8679_v45  ;;  %10158 = vst [vmem:[#allocation123_spill] sm:$0xff] %v8688_v10  ;;  %v8691_v15 = vld [vmem:[#allocation6 + $0x994] ss:$200 sps:$4 sm:$0xff]   ;;  %v8694_v53 = vld [vmem:[#allocation6 + $0x988] ss:$200 sps:$4 sm:$0xff]  }
 0x22b   :  { %10159 = vst [vmem:[#allocation124_spill] sm:$0xff] %v8691_v15  ;;  %10160 = vst [vmem:[#allocation125_spill] sm:$0xff] %v8694_v53  ;;  %v8697_v45 = vld [vmem:[#allocation6 + $0x990] ss:$200 sps:$4 sm:$0xff]  }
 0x22c   :  { %10161 = vst [vmem:[#allocation126_spill] sm:$0xff] %v8697_v45 }
 0x22d   :  { %3709 = vmatpush1.bf16.msra.mxu1 %v8682_v43  ;;  %3750 = vmatpush1.bf16.msra.mxu0 %v8685_v0  ;;  %v8700_v43 = vld [vmem:[#allocation6 + $0xb1c] ss:$200 sps:$4 sm:$0xff]  }
 0x22e   :  { %3710 = vmatprep.subr.bf16.mxu1 %v8688_v10  ;;  %3751 = vmatprep.subr.bf16.mxu0 %v8691_v15  ;;  %10162 = vst [vmem:[#allocation127_spill] sm:$0xff] %v8700_v43  ;;  %v8703_v0 = vld [vmem:[#allocation6 + $0xb24] ss:$200 sps:$4 sm:$0xff]   ;;  %v8706_v10 = vld [vmem:[#allocation6 + $0xb18] ss:$200 sps:$4 sm:$0xff]  }
 0x22f   :  { %10163 = vst [vmem:[#allocation128_spill] sm:$0xff] %v8703_v0  ;;  %10164 = vst [vmem:[#allocation129_spill] sm:$0xff] %v8706_v10  ;;  %v8709_v15 = vld [vmem:[#allocation6 + $0xb20] ss:$200 sps:$4 sm:$0xff]  }
 0x230   :  { %10165 = vst [vmem:[#allocation130_spill] sm:$0xff] %v8709_v15 }
 0x231   :  { %3711 = vmatpush1.bf16.msra.mxu1 %v8694_v53  ;;  %3752 = vmatpush1.bf16.msra.mxu0 %v8697_v45  ;;  %v8712_v53 = vld [vmem:[#allocation6 + $0x3c] ss:$200 sps:$4 sm:$0xff]  }
 0x232   :  { %3712 = vmatprep.subr.bf16.mxu1 %v8700_v43  ;;  %3753 = vmatprep.subr.bf16.mxu0 %v8703_v0  ;;  %10166 = vst [vmem:[#allocation131_spill] sm:$0xff] %v8712_v53  ;;  %v8715_v45 = vld [vmem:[#allocation6 + $0x44] ss:$200 sps:$4 sm:$0xff]   ;;  %v8720_v0 = vld [vmem:[#allocation6 + $0x38] ss:$200 sps:$4 sm:$0xff]  }
 0x233   :  { %10167 = vst [vmem:[#allocation132_spill] sm:$0xff] %v8715_v45  ;;  %10168 = vst [vmem:[#allocation133_spill] sm:$0xff] %v8720_v0  ;;  %v8749_v43 = vld [vmem:[#allocation6 + $0x360] ss:$200 sps:$4 sm:$0xff]  }
 0x234   :  { %10177 = vst [vmem:[#allocation142_spill] sm:$0xff] %v8749_v43 }
 0x235   :  { %3713 = vmatpush1.bf16.msra.mxu1 %v8706_v10  ;;  %3754 = vmatpush1.bf16.msra.mxu0 %v8709_v15  ;;  %v8723_v10 = vld [vmem:[#allocation6 + $0x40] ss:$200 sps:$4 sm:$0xff]   ;;  %v8726_v15 = vld [vmem:[#allocation6 + $0x1cc] ss:$200 sps:$4 sm:$0xff]  }
 0x236   :  { %3780 = vmatprep.subr.bf16.mxu1 %v8712_v53  ;;  %3821 = vmatprep.subr.bf16.mxu0 %v8715_v45  ;;  %10169 = vst [vmem:[#allocation134_spill] sm:$0xff] %v8723_v10  ;;  %10170 = vst [vmem:[#allocation135_spill] sm:$0xff] %v8726_v15  ;;  %v8729_v53 = vld [vmem:[#allocation6 + $0x1d4] ss:$200 sps:$4 sm:$0xff]   ;;  %v8734_v45 = vld [vmem:[#allocation6 + $0x1c8] ss:$200 sps:$4 sm:$0xff]  }
 0x237   :  { %10171 = vst [vmem:[#allocation136_spill] sm:$0xff] %v8729_v53  ;;  %10172 = vst [vmem:[#allocation137_spill] sm:$0xff] %v8734_v45 }
 0x238   :  { %3731 = vmatmul.mubr.bf16.vlgmr.msra.gmra.mrb[12].mxu1 %v8135_v35  ;;  %3772 = vmatmul.mubr.bf16.vlgmr.msra.gmra.mrb[8].mxu0 %v8135_v35 }
 0x239   :  { %3781 = vmatpush1.bf16.msra.mxu1 %v8720_v0  ;;  %3822 = vmatpush1.bf16.msra.mxu0 %v8723_v10  ;;  %v8737_v0 = vld [vmem:[#allocation6 + $0x1d0] ss:$200 sps:$4 sm:$0xff]   ;;  %v8740_v10 = vld [vmem:[#allocation6 + $0x35c] ss:$200 sps:$4 sm:$0xff]  }
 0x23a   :  { %3782 = vmatprep.subr.bf16.mxu1 %v8726_v15  ;;  %3823 = vmatprep.subr.bf16.mxu0 %v8729_v53  ;;  %10173 = vst [vmem:[#allocation138_spill] sm:$0xff] %v8737_v0  ;;  %10174 = vst [vmem:[#allocation139_spill] sm:$0xff] %v8740_v10  ;;  %v8743_v15 = vld [vmem:[#allocation6 + $0x364] ss:$200 sps:$4 sm:$0xff]   ;;  %v8746_v53 = vld [vmem:[#allocation6 + $0x358] ss:$200 sps:$4 sm:$0xff]  }
 0x23b   :  { %3812 = vmatprep.mubr.bf16.mxu1 %v10075_v49  ;;  %3853 = vmatprep.mubr.bf16.mxu0 %v10075_v49  ;;  %10175 = vst [vmem:[#allocation140_spill] sm:$0xff] %v8743_v15  ;;  %10176 = vst [vmem:[#allocation141_spill] sm:$0xff] %v8746_v53 }
 0x23d   :  { %3783 = vmatpush1.bf16.msra.mxu1 %v8734_v45  ;;  %3824 = vmatpush1.bf16.msra.mxu0 %v8737_v0  ;;  %v8752_v45 = vld [vmem:[#allocation6 + $0x4ec] ss:$200 sps:$4 sm:$0xff]  }
 0x23e   :  { %3784 = vmatprep.subr.bf16.mxu1 %v8740_v10  ;;  %3825 = vmatprep.subr.bf16.mxu0 %v8743_v15  ;;  %10178 = vst [vmem:[#allocation143_spill] sm:$0xff] %v8752_v45  ;;  %v8755_v0 = vld [vmem:[#allocation6 + $0x4f4] ss:$200 sps:$4 sm:$0xff]   ;;  %v8758_v10 = vld [vmem:[#allocation6 + $0x4e8] ss:$200 sps:$4 sm:$0xff]  }
 0x23f   :  { %10179 = vst [vmem:[#allocation144_spill] sm:$0xff] %v8755_v0  ;;  %10180 = vst [vmem:[#allocation145_spill] sm:$0xff] %v8758_v10  ;;  %v8761_v15 = vld [vmem:[#allocation6 + $0x4f0] ss:$200 sps:$4 sm:$0xff]  }
 0x240   :  { %10181 = vst [vmem:[#allocation146_spill] sm:$0xff] %v8761_v15 }
 0x241   :  { %3785 = vmatpush1.bf16.msra.mxu1 %v8746_v53  ;;  %3826 = vmatpush1.bf16.msra.mxu0 %v8749_v43  ;;  %v8764_v53 = vld [vmem:[#allocation6 + $0x67c] ss:$200 sps:$4 sm:$0xff]  }
 0x242   :  { %3786 = vmatprep.subr.bf16.mxu1 %v8752_v45  ;;  %3827 = vmatprep.subr.bf16.mxu0 %v8755_v0  ;;  %10182 = vst [vmem:[#allocation147_spill] sm:$0xff] %v8764_v53  ;;  %v8767_v43 = vld [vmem:[#allocation6 + $0x684] ss:$200 sps:$4 sm:$0xff]   ;;  %v8770_v45 = vld [vmem:[#allocation6 + $0x678] ss:$200 sps:$4 sm:$0xff]  }
 0x243   :  { %10183 = vst [vmem:[#allocation148_spill] sm:$0xff] %v8767_v43  ;;  %10184 = vst [vmem:[#allocation149_spill] sm:$0xff] %v8770_v45  ;;  %v8773_v0 = vld [vmem:[#allocation6 + $0x680] ss:$200 sps:$4 sm:$0xff]  }
 0x244   :  { %10185 = vst [vmem:[#allocation150_spill] sm:$0xff] %v8773_v0 }
 0x245   :  { %3787 = vmatpush1.bf16.msra.mxu1 %v8758_v10  ;;  %3828 = vmatpush1.bf16.msra.mxu0 %v8761_v15  ;;  %v8776_v10 = vld [vmem:[#allocation6 + $0x80c] ss:$200 sps:$4 sm:$0xff]  }
 0x246   :  { %3788 = vmatprep.subr.bf16.mxu1 %v8764_v53  ;;  %3829 = vmatprep.subr.bf16.mxu0 %v8767_v43  ;;  %10186 = vst [vmem:[#allocation151_spill] sm:$0xff] %v8776_v10  ;;  %v8779_v15 = vld [vmem:[#allocation6 + $0x814] ss:$200 sps:$4 sm:$0xff]   ;;  %v8782_v53 = vld [vmem:[#allocation6 + $0x808] ss:$200 sps:$4 sm:$0xff]  }
 0x247   :  { %10187 = vst [vmem:[#allocation152_spill] sm:$0xff] %v8779_v15  ;;  %10188 = vst [vmem:[#allocation153_spill] sm:$0xff] %v8782_v53  ;;  %v8785_v43 = vld [vmem:[#allocation6 + $0x810] ss:$200 sps:$4 sm:$0xff]  }
 0x248   :  { %10189 = vst [vmem:[#allocation154_spill] sm:$0xff] %v8785_v43 }
 0x249   :  { %3789 = vmatpush1.bf16.msra.mxu1 %v8770_v45  ;;  %3830 = vmatpush1.bf16.msra.mxu0 %v8773_v0  ;;  %v8788_v45 = vld [vmem:[#allocation6 + $0x99c] ss:$200 sps:$4 sm:$0xff]  }
 0x24a   :  { %3790 = vmatprep.subr.bf16.mxu1 %v8776_v10  ;;  %3831 = vmatprep.subr.bf16.mxu0 %v8779_v15  ;;  %10190 = vst [vmem:[#allocation155_spill] sm:$0xff] %v8788_v45  ;;  %v8791_v0 = vld [vmem:[#allocation6 + $0x9a4] ss:$200 sps:$4 sm:$0xff]   ;;  %v8794_v10 = vld [vmem:[#allocation6 + $0x998] ss:$200 sps:$4 sm:$0xff]  }
 0x24b   :  { %10191 = vst [vmem:[#allocation156_spill] sm:$0xff] %v8791_v0  ;;  %10192 = vst [vmem:[#allocation157_spill] sm:$0xff] %v8794_v10  ;;  %v8797_v15 = vld [vmem:[#allocation6 + $0x9a0] ss:$200 sps:$4 sm:$0xff]  }
 0x24c   :  { %10193 = vst [vmem:[#allocation158_spill] sm:$0xff] %v8797_v15 }
 0x24d   :  { %3791 = vmatpush1.bf16.msra.mxu1 %v8782_v53  ;;  %3832 = vmatpush1.bf16.msra.mxu0 %v8785_v43  ;;  %v8800_v53 = vld [vmem:[#allocation6 + $0xb2c] ss:$200 sps:$4 sm:$0xff]  }
 0x24e   :  { %3792 = vmatprep.subr.bf16.mxu1 %v8788_v45  ;;  %3833 = vmatprep.subr.bf16.mxu0 %v8791_v0  ;;  %10194 = vst [vmem:[#allocation159_spill] sm:$0xff] %v8800_v53  ;;  %v8803_v43 = vld [vmem:[#allocation6 + $0xb34] ss:$200 sps:$4 sm:$0xff]   ;;  %v8806_v45 = vld [vmem:[#allocation6 + $0xb28] ss:$200 sps:$4 sm:$0xff]  }
 0x24f   :  { %10195 = vst [vmem:[#allocation160_spill] sm:$0xff] %v8803_v43  ;;  %10196 = vst [vmem:[#allocation161_spill] sm:$0xff] %v8806_v45  ;;  %v8809_v0 = vld [vmem:[#allocation6 + $0xb30] ss:$200 sps:$4 sm:$0xff]  }
 0x250   :  { %10197 = vst [vmem:[#allocation162_spill] sm:$0xff] %v8809_v0 }
 0x251   :  { %3793 = vmatpush1.bf16.msra.mxu1 %v8794_v10  ;;  %3834 = vmatpush1.bf16.msra.mxu0 %v8797_v15  ;;  %v8812_v10 = vld [vmem:[#allocation6 + $0x4c] ss:$200 sps:$4 sm:$0xff]  }
 0x252   :  { %3794 = vmatprep.subr.bf16.mxu1 %v8800_v53  ;;  %3835 = vmatprep.subr.bf16.mxu0 %v8803_v43  ;;  %10198 = vst [vmem:[#allocation163_spill] sm:$0xff] %v8812_v10  ;;  %v8815_v15 = vld [vmem:[#allocation6 + $0x54] ss:$200 sps:$4 sm:$0xff]   ;;  %v8820_v43 = vld [vmem:[#allocation6 + $0x48] ss:$200 sps:$4 sm:$0xff]  }
 0x253   :  { %10199 = vst [vmem:[#allocation164_spill] sm:$0xff] %v8815_v15  ;;  %10200 = vst [vmem:[#allocation165_spill] sm:$0xff] %v8820_v43  ;;  %v8849_v53 = vld [vmem:[#allocation6 + $0x370] ss:$200 sps:$4 sm:$0xff]  }
 0x254   :  { %10209 = vst [vmem:[#allocation174_spill] sm:$0xff] %v8849_v53 }
 0x255   :  { %3795 = vmatpush1.bf16.msra.mxu1 %v8806_v45  ;;  %3836 = vmatpush1.bf16.msra.mxu0 %v8809_v0  ;;  %v8823_v45 = vld [vmem:[#allocation6 + $0x50] ss:$200 sps:$4 sm:$0xff]   ;;  %v8826_v0 = vld [vmem:[#allocation6 + $0x1dc] ss:$200 sps:$4 sm:$0xff]  }
 0x256   :  { %3862 = vmatprep.subr.bf16.mxu1 %v8812_v10  ;;  %3903 = vmatprep.subr.bf16.mxu0 %v8815_v15  ;;  %10201 = vst [vmem:[#allocation166_spill] sm:$0xff] %v8823_v45  ;;  %10202 = vst [vmem:[#allocation167_spill] sm:$0xff] %v8826_v0  ;;  %v8829_v10 = vld [vmem:[#allocation6 + $0x1e4] ss:$200 sps:$4 sm:$0xff]   ;;  %v8834_v15 = vld [vmem:[#allocation6 + $0x1d8] ss:$200 sps:$4 sm:$0xff]  }
 0x257   :  { %10203 = vst [vmem:[#allocation168_spill] sm:$0xff] %v8829_v10  ;;  %10204 = vst [vmem:[#allocation169_spill] sm:$0xff] %v8834_v15 }
 0x258   :  { %3813 = vmatmul.mubr.bf16.vlgmr.msra.gmra.mrb[16].mxu1 %v8135_v35  ;;  %3854 = vmatmul.mubr.bf16.vlgmr.msra.gmra.mrb[12].mxu0 %v8135_v35 }
 0x259   :  { %3863 = vmatpush1.bf16.msra.mxu1 %v8820_v43  ;;  %3904 = vmatpush1.bf16.msra.mxu0 %v8823_v45  ;;  %v8837_v43 = vld [vmem:[#allocation6 + $0x1e0] ss:$200 sps:$4 sm:$0xff]   ;;  %v8840_v45 = vld [vmem:[#allocation6 + $0x36c] ss:$200 sps:$4 sm:$0xff]  }
 0x25a   :  { %3864 = vmatprep.subr.bf16.mxu1 %v8826_v0  ;;  %3905 = vmatprep.subr.bf16.mxu0 %v8829_v10  ;;  %10205 = vst [vmem:[#allocation170_spill] sm:$0xff] %v8837_v43  ;;  %10206 = vst [vmem:[#allocation171_spill] sm:$0xff] %v8840_v45  ;;  %v8843_v0 = vld [vmem:[#allocation6 + $0x374] ss:$200 sps:$4 sm:$0xff]   ;;  %v8846_v10 = vld [vmem:[#allocation6 + $0x368] ss:$200 sps:$4 sm:$0xff]  }
 0x25b   :  { %3894 = vmatprep.mubr.bf16.mxu1 %v10075_v49  ;;  %3935 = vmatprep.mubr.bf16.mxu0 %v10075_v49  ;;  %10207 = vst [vmem:[#allocation172_spill] sm:$0xff] %v8843_v0  ;;  %10208 = vst [vmem:[#allocation173_spill] sm:$0xff] %v8846_v10 }
 0x25d   :  { %3865 = vmatpush1.bf16.msra.mxu1 %v8834_v15  ;;  %3906 = vmatpush1.bf16.msra.mxu0 %v8837_v43  ;;  %v8852_v15 = vld [vmem:[#allocation6 + $0x4fc] ss:$200 sps:$4 sm:$0xff]  }
 0x25e   :  { %3866 = vmatprep.subr.bf16.mxu1 %v8840_v45  ;;  %3907 = vmatprep.subr.bf16.mxu0 %v8843_v0  ;;  %10210 = vst [vmem:[#allocation175_spill] sm:$0xff] %v8852_v15  ;;  %v8855_v43 = vld [vmem:[#allocation6 + $0x504] ss:$200 sps:$4 sm:$0xff]   ;;  %v8858_v45 = vld [vmem:[#allocation6 + $0x4f8] ss:$200 sps:$4 sm:$0xff]  }
 0x25f   :  { %10211 = vst [vmem:[#allocation176_spill] sm:$0xff] %v8855_v43  ;;  %10212 = vst [vmem:[#allocation177_spill] sm:$0xff] %v8858_v45  ;;  %v8861_v0 = vld [vmem:[#allocation6 + $0x500] ss:$200 sps:$4 sm:$0xff]  }
 0x260   :  { %10213 = vst [vmem:[#allocation178_spill] sm:$0xff] %v8861_v0 }
 0x261   :  { %3867 = vmatpush1.bf16.msra.mxu1 %v8846_v10  ;;  %3908 = vmatpush1.bf16.msra.mxu0 %v8849_v53  ;;  %v8864_v10 = vld [vmem:[#allocation6 + $0x68c] ss:$200 sps:$4 sm:$0xff]  }
 0x262   :  { %3868 = vmatprep.subr.bf16.mxu1 %v8852_v15  ;;  %3909 = vmatprep.subr.bf16.mxu0 %v8855_v43  ;;  %10214 = vst [vmem:[#allocation179_spill] sm:$0xff] %v8864_v10  ;;  %v8867_v53 = vld [vmem:[#allocation6 + $0x694] ss:$200 sps:$4 sm:$0xff]   ;;  %v8870_v15 = vld [vmem:[#allocation6 + $0x688] ss:$200 sps:$4 sm:$0xff]  }
 0x263   :  { %10215 = vst [vmem:[#allocation180_spill] sm:$0xff] %v8867_v53  ;;  %10216 = vst [vmem:[#allocation181_spill] sm:$0xff] %v8870_v15  ;;  %v8873_v43 = vld [vmem:[#allocation6 + $0x690] ss:$200 sps:$4 sm:$0xff]  }
 0x264   :  { %10217 = vst [vmem:[#allocation182_spill] sm:$0xff] %v8873_v43 }
 0x265   :  { %3869 = vmatpush1.bf16.msra.mxu1 %v8858_v45  ;;  %3910 = vmatpush1.bf16.msra.mxu0 %v8861_v0  ;;  %v8876_v45 = vld [vmem:[#allocation6 + $0x81c] ss:$200 sps:$4 sm:$0xff]  }
 0x266   :  { %3870 = vmatprep.subr.bf16.mxu1 %v8864_v10  ;;  %3911 = vmatprep.subr.bf16.mxu0 %v8867_v53  ;;  %10218 = vst [vmem:[#allocation183_spill] sm:$0xff] %v8876_v45  ;;  %v8879_v0 = vld [vmem:[#allocation6 + $0x824] ss:$200 sps:$4 sm:$0xff]   ;;  %v8882_v10 = vld [vmem:[#allocation6 + $0x818] ss:$200 sps:$4 sm:$0xff]  }
 0x267   :  { %10219 = vst [vmem:[#allocation184_spill] sm:$0xff] %v8879_v0  ;;  %10220 = vst [vmem:[#allocation185_spill] sm:$0xff] %v8882_v10  ;;  %v8885_v53 = vld [vmem:[#allocation6 + $0x820] ss:$200 sps:$4 sm:$0xff]  }
 0x268   :  { %10221 = vst [vmem:[#allocation186_spill] sm:$0xff] %v8885_v53 }
 0x269   :  { %3871 = vmatpush1.bf16.msra.mxu1 %v8870_v15  ;;  %3912 = vmatpush1.bf16.msra.mxu0 %v8873_v43  ;;  %v8888_v15 = vld [vmem:[#allocation6 + $0x9ac] ss:$200 sps:$4 sm:$0xff]  }
 0x26a   :  { %3872 = vmatprep.subr.bf16.mxu1 %v8876_v45  ;;  %3913 = vmatprep.subr.bf16.mxu0 %v8879_v0  ;;  %10222 = vst [vmem:[#allocation187_spill] sm:$0xff] %v8888_v15  ;;  %v8891_v43 = vld [vmem:[#allocation6 + $0x9b4] ss:$200 sps:$4 sm:$0xff]   ;;  %v8894_v45 = vld [vmem:[#allocation6 + $0x9a8] ss:$200 sps:$4 sm:$0xff]  }
 0x26b   :  { %10223 = vst [vmem:[#allocation188_spill] sm:$0xff] %v8891_v43  ;;  %10224 = vst [vmem:[#allocation189_spill] sm:$0xff] %v8894_v45  ;;  %v8897_v0 = vld [vmem:[#allocation6 + $0x9b0] ss:$200 sps:$4 sm:$0xff]  }
 0x26c   :  { %10225 = vst [vmem:[#allocation190_spill] sm:$0xff] %v8897_v0 }
 0x26d   :  { %3873 = vmatpush1.bf16.msra.mxu1 %v8882_v10  ;;  %3914 = vmatpush1.bf16.msra.mxu0 %v8885_v53  ;;  %v8900_v10 = vld [vmem:[#allocation6 + $0xb3c] ss:$200 sps:$4 sm:$0xff]  }
 0x26e   :  { %3874 = vmatprep.subr.bf16.mxu1 %v8888_v15  ;;  %3915 = vmatprep.subr.bf16.mxu0 %v8891_v43  ;;  %10226 = vst [vmem:[#allocation191_spill] sm:$0xff] %v8900_v10  ;;  %v8903_v53 = vld [vmem:[#allocation6 + $0xb44] ss:$200 sps:$4 sm:$0xff]   ;;  %v8906_v15 = vld [vmem:[#allocation6 + $0xb38] ss:$200 sps:$4 sm:$0xff]  }
 0x26f   :  { %10227 = vst [vmem:[#allocation192_spill] sm:$0xff] %v8903_v53  ;;  %10228 = vst [vmem:[#allocation193_spill] sm:$0xff] %v8906_v15  ;;  %v8909_v43 = vld [vmem:[#allocation6 + $0xb40] ss:$200 sps:$4 sm:$0xff]  }
 0x270   :  { %10229 = vst [vmem:[#allocation194_spill] sm:$0xff] %v8909_v43 }
 0x271   :  { %3875 = vmatpush1.bf16.msra.mxu1 %v8894_v45  ;;  %3916 = vmatpush1.bf16.msra.mxu0 %v8897_v0  ;;  %v8912_v45 = vld [vmem:[#allocation6 + $0x5c] ss:$200 sps:$4 sm:$0xff]  }
 0x272   :  { %3876 = vmatprep.subr.bf16.mxu1 %v8900_v10  ;;  %3917 = vmatprep.subr.bf16.mxu0 %v8903_v53  ;;  %10230 = vst [vmem:[#allocation195_spill] sm:$0xff] %v8912_v45  ;;  %v8915_v0 = vld [vmem:[#allocation6 + $0x64] ss:$200 sps:$4 sm:$0xff]   ;;  %v8920_v53 = vld [vmem:[#allocation6 + $0x58] ss:$200 sps:$4 sm:$0xff]  }
 0x273   :  { %10231 = vst [vmem:[#allocation196_spill] sm:$0xff] %v8915_v0  ;;  %10232 = vst [vmem:[#allocation197_spill] sm:$0xff] %v8920_v53  ;;  %v8949_v10 = vld [vmem:[#allocation6 + $0x380] ss:$200 sps:$4 sm:$0xff]  }
 0x274   :  { %10241 = vst [vmem:[#allocation206_spill] sm:$0xff] %v8949_v10 }
 0x275   :  { %3877 = vmatpush1.bf16.msra.mxu1 %v8906_v15  ;;  %3918 = vmatpush1.bf16.msra.mxu0 %v8909_v43  ;;  %v8923_v15 = vld [vmem:[#allocation6 + $0x60] ss:$200 sps:$4 sm:$0xff]   ;;  %v8926_v43 = vld [vmem:[#allocation6 + $0x1ec] ss:$200 sps:$4 sm:$0xff]  }
 0x276   :  { %3944 = vmatprep.subr.bf16.mxu1 %v8912_v45  ;;  %3985 = vmatprep.subr.bf16.mxu0 %v8915_v0  ;;  %10233 = vst [vmem:[#allocation198_spill] sm:$0xff] %v8923_v15  ;;  %10234 = vst [vmem:[#allocation199_spill] sm:$0xff] %v8926_v43  ;;  %v8929_v45 = vld [vmem:[#allocation6 + $0x1f4] ss:$200 sps:$4 sm:$0xff]   ;;  %v8934_v0 = vld [vmem:[#allocation6 + $0x1e8] ss:$200 sps:$4 sm:$0xff]  }
 0x277   :  { %10235 = vst [vmem:[#allocation200_spill] sm:$0xff] %v8929_v45  ;;  %10236 = vst [vmem:[#allocation201_spill] sm:$0xff] %v8934_v0 }
 0x278   :  { %3895 = vmatmul.mubr.bf16.vlgmr.msra.gmra.mrb[20].mxu1 %v8135_v35  ;;  %3936 = vmatmul.mubr.bf16.vlgmr.msra.gmra.mrb[16].mxu0 %v8135_v35 }
 0x279   :  { %3945 = vmatpush1.bf16.msra.mxu1 %v8920_v53  ;;  %3986 = vmatpush1.bf16.msra.mxu0 %v8923_v15  ;;  %v8937_v53 = vld [vmem:[#allocation6 + $0x1f0] ss:$200 sps:$4 sm:$0xff]   ;;  %v8940_v15 = vld [vmem:[#allocation6 + $0x37c] ss:$200 sps:$4 sm:$0xff]  }
 0x27a   :  { %3946 = vmatprep.subr.bf16.mxu1 %v8926_v43  ;;  %3987 = vmatprep.subr.bf16.mxu0 %v8929_v45  ;;  %10237 = vst [vmem:[#allocation202_spill] sm:$0xff] %v8937_v53  ;;  %10238 = vst [vmem:[#allocation203_spill] sm:$0xff] %v8940_v15  ;;  %v8943_v43 = vld [vmem:[#allocation6 + $0x384] ss:$200 sps:$4 sm:$0xff]   ;;  %v8946_v45 = vld [vmem:[#allocation6 + $0x378] ss:$200 sps:$4 sm:$0xff]  }
 0x27b   :  { %3976 = vmatprep.mubr.bf16.mxu1 %v10075_v49  ;;  %4017 = vmatprep.mubr.bf16.mxu0 %v10075_v49  ;;  %10239 = vst [vmem:[#allocation204_spill] sm:$0xff] %v8943_v43  ;;  %10240 = vst [vmem:[#allocation205_spill] sm:$0xff] %v8946_v45 }
 0x27d   :  { %3947 = vmatpush1.bf16.msra.mxu1 %v8934_v0  ;;  %3988 = vmatpush1.bf16.msra.mxu0 %v8937_v53  ;;  %v8952_v0 = vld [vmem:[#allocation6 + $0x50c] ss:$200 sps:$4 sm:$0xff]  }
 0x27e   :  { %3948 = vmatprep.subr.bf16.mxu1 %v8940_v15  ;;  %3989 = vmatprep.subr.bf16.mxu0 %v8943_v43  ;;  %10242 = vst [vmem:[#allocation207_spill] sm:$0xff] %v8952_v0  ;;  %v8955_v53 = vld [vmem:[#allocation6 + $0x514] ss:$200 sps:$4 sm:$0xff]   ;;  %v8958_v15 = vld [vmem:[#allocation6 + $0x508] ss:$200 sps:$4 sm:$0xff]  }
 0x27f   :  { %10243 = vst [vmem:[#allocation208_spill] sm:$0xff] %v8955_v53  ;;  %10244 = vst [vmem:[#allocation209_spill] sm:$0xff] %v8958_v15  ;;  %v8961_v43 = vld [vmem:[#allocation6 + $0x510] ss:$200 sps:$4 sm:$0xff]  }
 0x280   :  { %10245 = vst [vmem:[#allocation210_spill] sm:$0xff] %v8961_v43 }
 0x281   :  { %3949 = vmatpush1.bf16.msra.mxu1 %v8946_v45  ;;  %3990 = vmatpush1.bf16.msra.mxu0 %v8949_v10  ;;  %v8964_v45 = vld [vmem:[#allocation6 + $0x69c] ss:$200 sps:$4 sm:$0xff]  }
 0x282   :  { %3950 = vmatprep.subr.bf16.mxu1 %v8952_v0  ;;  %3991 = vmatprep.subr.bf16.mxu0 %v8955_v53  ;;  %10246 = vst [vmem:[#allocation211_spill] sm:$0xff] %v8964_v45  ;;  %v8967_v10 = vld [vmem:[#allocation6 + $0x6a4] ss:$200 sps:$4 sm:$0xff]   ;;  %v8970_v0 = vld [vmem:[#allocation6 + $0x698] ss:$200 sps:$4 sm:$0xff]  }
 0x283   :  { %10247 = vst [vmem:[#allocation212_spill] sm:$0xff] %v8967_v10  ;;  %10248 = vst [vmem:[#allocation213_spill] sm:$0xff] %v8970_v0  ;;  %v8973_v53 = vld [vmem:[#allocation6 + $0x6a0] ss:$200 sps:$4 sm:$0xff]  }
 0x284   :  { %10249 = vst [vmem:[#allocation214_spill] sm:$0xff] %v8973_v53 }
 0x285   :  { %3951 = vmatpush1.bf16.msra.mxu1 %v8958_v15  ;;  %3992 = vmatpush1.bf16.msra.mxu0 %v8961_v43  ;;  %v8976_v15 = vld [vmem:[#allocation6 + $0x82c] ss:$200 sps:$4 sm:$0xff]  }
 0x286   :  { %3952 = vmatprep.subr.bf16.mxu1 %v8964_v45  ;;  %3993 = vmatprep.subr.bf16.mxu0 %v8967_v10  ;;  %10250 = vst [vmem:[#allocation215_spill] sm:$0xff] %v8976_v15  ;;  %v8979_v43 = vld [vmem:[#allocation6 + $0x834] ss:$200 sps:$4 sm:$0xff]   ;;  %v8982_v45 = vld [vmem:[#allocation6 + $0x828] ss:$200 sps:$4 sm:$0xff]  }
 0x287   :  { %10251 = vst [vmem:[#allocation216_spill] sm:$0xff] %v8979_v43  ;;  %10252 = vst [vmem:[#allocation217_spill] sm:$0xff] %v8982_v45  ;;  %v8985_v10 = vld [vmem:[#allocation6 + $0x830] ss:$200 sps:$4 sm:$0xff]  }
 0x288   :  { %10253 = vst [vmem:[#allocation218_spill] sm:$0xff] %v8985_v10 }
 0x289   :  { %3953 = vmatpush1.bf16.msra.mxu1 %v8970_v0  ;;  %3994 = vmatpush1.bf16.msra.mxu0 %v8973_v53  ;;  %v8988_v0 = vld [vmem:[#allocation6 + $0x9bc] ss:$200 sps:$4 sm:$0xff]  }
 0x28a   :  { %3954 = vmatprep.subr.bf16.mxu1 %v8976_v15  ;;  %3995 = vmatprep.subr.bf16.mxu0 %v8979_v43  ;;  %10254 = vst [vmem:[#allocation219_spill] sm:$0xff] %v8988_v0  ;;  %v8991_v53 = vld [vmem:[#allocation6 + $0x9c4] ss:$200 sps:$4 sm:$0xff]   ;;  %v8994_v15 = vld [vmem:[#allocation6 + $0x9b8] ss:$200 sps:$4 sm:$0xff]  }
 0x28b   :  { %10255 = vst [vmem:[#allocation220_spill] sm:$0xff] %v8991_v53  ;;  %10256 = vst [vmem:[#allocation221_spill] sm:$0xff] %v8994_v15  ;;  %v8997_v43 = vld [vmem:[#allocation6 + $0x9c0] ss:$200 sps:$4 sm:$0xff]  }
 0x28c   :  { %10257 = vst [vmem:[#allocation222_spill] sm:$0xff] %v8997_v43 }
 0x28d   :  { %3955 = vmatpush1.bf16.msra.mxu1 %v8982_v45  ;;  %3996 = vmatpush1.bf16.msra.mxu0 %v8985_v10  ;;  %v9000_v45 = vld [vmem:[#allocation6 + $0xb4c] ss:$200 sps:$4 sm:$0xff]  }
 0x28e   :  { %3956 = vmatprep.subr.bf16.mxu1 %v8988_v0  ;;  %3997 = vmatprep.subr.bf16.mxu0 %v8991_v53  ;;  %10258 = vst [vmem:[#allocation223_spill] sm:$0xff] %v9000_v45  ;;  %v9003_v10 = vld [vmem:[#allocation6 + $0xb54] ss:$200 sps:$4 sm:$0xff]   ;;  %v9006_v0 = vld [vmem:[#allocation6 + $0xb48] ss:$200 sps:$4 sm:$0xff]  }
 0x28f   :  { %10259 = vst [vmem:[#allocation224_spill] sm:$0xff] %v9003_v10  ;;  %10260 = vst [vmem:[#allocation225_spill] sm:$0xff] %v9006_v0  ;;  %v9009_v53 = vld [vmem:[#allocation6 + $0xb50] ss:$200 sps:$4 sm:$0xff]  }
 0x290   :  { %10261 = vst [vmem:[#allocation226_spill] sm:$0xff] %v9009_v53 }
 0x291   :  { %3957 = vmatpush1.bf16.msra.mxu1 %v8994_v15  ;;  %3998 = vmatpush1.bf16.msra.mxu0 %v8997_v43  ;;  %v9012_v15 = vld [vmem:[#allocation6 + $0x6c] ss:$200 sps:$4 sm:$0xff]  }
 0x292   :  { %3958 = vmatprep.subr.bf16.mxu1 %v9000_v45  ;;  %3999 = vmatprep.subr.bf16.mxu0 %v9003_v10  ;;  %10262 = vst [vmem:[#allocation227_spill] sm:$0xff] %v9012_v15  ;;  %v9015_v43 = vld [vmem:[#allocation6 + $0x74] ss:$200 sps:$4 sm:$0xff]   ;;  %v9020_v10 = vld [vmem:[#allocation6 + $0x68] ss:$200 sps:$4 sm:$0xff]  }
 0x293   :  { %10263 = vst [vmem:[#allocation228_spill] sm:$0xff] %v9015_v43  ;;  %10264 = vst [vmem:[#allocation229_spill] sm:$0xff] %v9020_v10  ;;  %v9049_v45 = vld [vmem:[#allocation6 + $0x390] ss:$200 sps:$4 sm:$0xff]  }
 0x294   :  { %10273 = vst [vmem:[#allocation238_spill] sm:$0xff] %v9049_v45 }
 0x295   :  { %3959 = vmatpush1.bf16.msra.mxu1 %v9006_v0  ;;  %4000 = vmatpush1.bf16.msra.mxu0 %v9009_v53  ;;  %v9023_v0 = vld [vmem:[#allocation6 + $0x70] ss:$200 sps:$4 sm:$0xff]   ;;  %v9026_v53 = vld [vmem:[#allocation6 + $0x1fc] ss:$200 sps:$4 sm:$0xff]  }
 0x296   :  { %4026 = vmatprep.subr.bf16.mxu1 %v9012_v15  ;;  %4067 = vmatprep.subr.bf16.mxu0 %v9015_v43  ;;  %10265 = vst [vmem:[#allocation230_spill] sm:$0xff] %v9023_v0  ;;  %10266 = vst [vmem:[#allocation231_spill] sm:$0xff] %v9026_v53  ;;  %v9029_v15 = vld [vmem:[#allocation6 + $0x204] ss:$200 sps:$4 sm:$0xff]   ;;  %v9034_v43 = vld [vmem:[#allocation6 + $0x1f8] ss:$200 sps:$4 sm:$0xff]  }
 0x297   :  { %10267 = vst [vmem:[#allocation232_spill] sm:$0xff] %v9029_v15  ;;  %10268 = vst [vmem:[#allocation233_spill] sm:$0xff] %v9034_v43 }
 0x298   :  { %3977 = vmatmul.mubr.bf16.vlgmr.msra.gmra.mrb[24].mxu1 %v8135_v35  ;;  %4018 = vmatmul.mubr.bf16.vlgmr.msra.gmra.mrb[20].mxu0 %v8135_v35 }
 0x299   :  { %4027 = vmatpush1.bf16.msra.mxu1 %v9020_v10  ;;  %4068 = vmatpush1.bf16.msra.mxu0 %v9023_v0  ;;  %v9037_v10 = vld [vmem:[#allocation6 + $0x200] ss:$200 sps:$4 sm:$0xff]   ;;  %v9040_v0 = vld [vmem:[#allocation6 + $0x38c] ss:$200 sps:$4 sm:$0xff]  }
 0x29a   :  { %4028 = vmatprep.subr.bf16.mxu1 %v9026_v53  ;;  %4069 = vmatprep.subr.bf16.mxu0 %v9029_v15  ;;  %10269 = vst [vmem:[#allocation234_spill] sm:$0xff] %v9037_v10  ;;  %10270 = vst [vmem:[#allocation235_spill] sm:$0xff] %v9040_v0  ;;  %v9043_v53 = vld [vmem:[#allocation6 + $0x394] ss:$200 sps:$4 sm:$0xff]   ;;  %v9046_v15 = vld [vmem:[#allocation6 + $0x388] ss:$200 sps:$4 sm:$0xff]  }
 0x29b   :  { %4058 = vmatprep.mubr.bf16.mxu1 %v10075_v49  ;;  %4099 = vmatprep.mubr.bf16.mxu0 %v10075_v49  ;;  %10271 = vst [vmem:[#allocation236_spill] sm:$0xff] %v9043_v53  ;;  %10272 = vst [vmem:[#allocation237_spill] sm:$0xff] %v9046_v15 }
 0x29d   :  { %4029 = vmatpush1.bf16.msra.mxu1 %v9034_v43  ;;  %4070 = vmatpush1.bf16.msra.mxu0 %v9037_v10  ;;  %v9052_v43 = vld [vmem:[#allocation6 + $0x51c] ss:$200 sps:$4 sm:$0xff]  }
 0x29e   :  { %4030 = vmatprep.subr.bf16.mxu1 %v9040_v0  ;;  %4071 = vmatprep.subr.bf16.mxu0 %v9043_v53  ;;  %10274 = vst [vmem:[#allocation239_spill] sm:$0xff] %v9052_v43  ;;  %v9055_v10 = vld [vmem:[#allocation6 + $0x524] ss:$200 sps:$4 sm:$0xff]   ;;  %v9058_v0 = vld [vmem:[#allocation6 + $0x518] ss:$200 sps:$4 sm:$0xff]  }
 0x29f   :  { %10275 = vst [vmem:[#allocation240_spill] sm:$0xff] %v9055_v10  ;;  %10276 = vst [vmem:[#allocation241_spill] sm:$0xff] %v9058_v0  ;;  %v9061_v53 = vld [vmem:[#allocation6 + $0x520] ss:$200 sps:$4 sm:$0xff]  }
 0x2a0   :  { %10277 = vst [vmem:[#allocation242_spill] sm:$0xff] %v9061_v53 }
 0x2a1   :  { %4031 = vmatpush1.bf16.msra.mxu1 %v9046_v15  ;;  %4072 = vmatpush1.bf16.msra.mxu0 %v9049_v45  ;;  %v9064_v15 = vld [vmem:[#allocation6 + $0x6ac] ss:$200 sps:$4 sm:$0xff]  }
 0x2a2   :  { %4032 = vmatprep.subr.bf16.mxu1 %v9052_v43  ;;  %4073 = vmatprep.subr.bf16.mxu0 %v9055_v10  ;;  %10278 = vst [vmem:[#allocation243_spill] sm:$0xff] %v9064_v15  ;;  %v9067_v45 = vld [vmem:[#allocation6 + $0x6b4] ss:$200 sps:$4 sm:$0xff]   ;;  %v9070_v43 = vld [vmem:[#allocation6 + $0x6a8] ss:$200 sps:$4 sm:$0xff]  }
 0x2a3   :  { %10279 = vst [vmem:[#allocation244_spill] sm:$0xff] %v9067_v45  ;;  %10280 = vst [vmem:[#allocation245_spill] sm:$0xff] %v9070_v43  ;;  %v9073_v10 = vld [vmem:[#allocation6 + $0x6b0] ss:$200 sps:$4 sm:$0xff]  }
 0x2a4   :  { %10281 = vst [vmem:[#allocation246_spill] sm:$0xff] %v9073_v10 }
 0x2a5   :  { %4033 = vmatpush1.bf16.msra.mxu1 %v9058_v0  ;;  %4074 = vmatpush1.bf16.msra.mxu0 %v9061_v53  ;;  %v9076_v0 = vld [vmem:[#allocation6 + $0x83c] ss:$200 sps:$4 sm:$0xff]  }
 0x2a6   :  { %4034 = vmatprep.subr.bf16.mxu1 %v9064_v15  ;;  %4075 = vmatprep.subr.bf16.mxu0 %v9067_v45  ;;  %10282 = vst [vmem:[#allocation247_spill] sm:$0xff] %v9076_v0  ;;  %v9079_v53 = vld [vmem:[#allocation6 + $0x844] ss:$200 sps:$4 sm:$0xff]   ;;  %v9082_v15 = vld [vmem:[#allocation6 + $0x838] ss:$200 sps:$4 sm:$0xff]  }
 0x2a7   :  { %10283 = vst [vmem:[#allocation248_spill] sm:$0xff] %v9079_v53  ;;  %10284 = vst [vmem:[#allocation249_spill] sm:$0xff] %v9082_v15  ;;  %v9085_v45 = vld [vmem:[#allocation6 + $0x840] ss:$200 sps:$4 sm:$0xff]  }
 0x2a8   :  { %10285 = vst [vmem:[#allocation250_spill] sm:$0xff] %v9085_v45 }
 0x2a9   :  { %4035 = vmatpush1.bf16.msra.mxu1 %v9070_v43  ;;  %4076 = vmatpush1.bf16.msra.mxu0 %v9073_v10  ;;  %v9088_v43 = vld [vmem:[#allocation6 + $0x9cc] ss:$200 sps:$4 sm:$0xff]  }
 0x2aa   :  { %4036 = vmatprep.subr.bf16.mxu1 %v9076_v0  ;;  %4077 = vmatprep.subr.bf16.mxu0 %v9079_v53  ;;  %10286 = vst [vmem:[#allocation251_spill] sm:$0xff] %v9088_v43  ;;  %v9091_v10 = vld [vmem:[#allocation6 + $0x9d4] ss:$200 sps:$4 sm:$0xff]   ;;  %v9094_v0 = vld [vmem:[#allocation6 + $0x9c8] ss:$200 sps:$4 sm:$0xff]  }
 0x2ab   :  { %10287 = vst [vmem:[#allocation252_spill] sm:$0xff] %v9091_v10  ;;  %10288 = vst [vmem:[#allocation253_spill] sm:$0xff] %v9094_v0  ;;  %v9097_v53 = vld [vmem:[#allocation6 + $0x9d0] ss:$200 sps:$4 sm:$0xff]  }
 0x2ac   :  { %10289 = vst [vmem:[#allocation254_spill] sm:$0xff] %v9097_v53 }
 0x2ad   :  { %4037 = vmatpush1.bf16.msra.mxu1 %v9082_v15  ;;  %4078 = vmatpush1.bf16.msra.mxu0 %v9085_v45  ;;  %v9100_v15 = vld [vmem:[#allocation6 + $0xb5c] ss:$200 sps:$4 sm:$0xff]  }
 0x2ae   :  { %4038 = vmatprep.subr.bf16.mxu1 %v9088_v43  ;;  %4079 = vmatprep.subr.bf16.mxu0 %v9091_v10  ;;  %10290 = vst [vmem:[#allocation255_spill] sm:$0xff] %v9100_v15  ;;  %v9103_v45 = vld [vmem:[#allocation6 + $0xb64] ss:$200 sps:$4 sm:$0xff]   ;;  %v9106_v43 = vld [vmem:[#allocation6 + $0xb58] ss:$200 sps:$4 sm:$0xff]  }
 0x2af   :  { %10291 = vst [vmem:[#allocation256_spill] sm:$0xff] %v9103_v45  ;;  %10292 = vst [vmem:[#allocation257_spill] sm:$0xff] %v9106_v43  ;;  %v9109_v10 = vld [vmem:[#allocation6 + $0xb60] ss:$200 sps:$4 sm:$0xff]  }
 0x2b0   :  { %10293 = vst [vmem:[#allocation258_spill] sm:$0xff] %v9109_v10 }
 0x2b1   :  { %4039 = vmatpush1.bf16.msra.mxu1 %v9094_v0  ;;  %4080 = vmatpush1.bf16.msra.mxu0 %v9097_v53  ;;  %v9112_v0 = vld [vmem:[#allocation6 + $0x7c] ss:$200 sps:$4 sm:$0xff]  }
 0x2b2   :  { %4040 = vmatprep.subr.bf16.mxu1 %v9100_v15  ;;  %4081 = vmatprep.subr.bf16.mxu0 %v9103_v45  ;;  %10294 = vst [vmem:[#allocation259_spill] sm:$0xff] %v9112_v0  ;;  %v9115_v53 = vld [vmem:[#allocation6 + $0x84] ss:$200 sps:$4 sm:$0xff]   ;;  %v9120_v45 = vld [vmem:[#allocation6 + $0x78] ss:$200 sps:$4 sm:$0xff]  }
 0x2b3   :  { %10295 = vst [vmem:[#allocation260_spill] sm:$0xff] %v9115_v53  ;;  %10296 = vst [vmem:[#allocation261_spill] sm:$0xff] %v9120_v45  ;;  %v9143_v15 = vld [vmem:[#allocation6 + $0x398] ss:$200 sps:$4 sm:$0xff]  }
 0x2b4   :  { %10303 = vst [vmem:[#allocation268_spill] sm:$0xff] %v9143_v15 }
 0x2b5   :  { %4041 = vmatpush1.bf16.msra.mxu1 %v9106_v43  ;;  %4082 = vmatpush1.bf16.msra.mxu0 %v9109_v10  ;;  %v9123_v43 = vld [vmem:[#allocation6 + $0x80] ss:$200 sps:$4 sm:$0xff]   ;;  %v9126_v10 = vld [vmem:[#allocation6 + $0x20c] ss:$200 sps:$4 sm:$0xff]  }
 0x2b6   :  { %4108 = vmatprep.subr.bf16.mxu1 %v9112_v0  ;;  %4149 = vmatprep.subr.bf16.mxu0 %v9115_v53  ;;  %10297 = vst [vmem:[#allocation262_spill] sm:$0xff] %v9123_v43  ;;  %10298 = vst [vmem:[#allocation263_spill] sm:$0xff] %v9126_v10  ;;  %v9129_v0 = vld [vmem:[#allocation6 + $0x214] ss:$200 sps:$4 sm:$0xff]   ;;  %v9134_v53 = vld [vmem:[#allocation6 + $0x208] ss:$200 sps:$4 sm:$0xff]  }
 0x2b7   :  { %10299 = vst [vmem:[#allocation264_spill] sm:$0xff] %v9129_v0  ;;  %10300 = vst [vmem:[#allocation265_spill] sm:$0xff] %v9134_v53 }
 0x2b8   :  { %4059 = vmatmul.mubr.bf16.vlgmr.msra.gmra.mrb[28].mxu1 %v8135_v35  ;;  %4100 = vmatmul.mubr.bf16.vlgmr.msra.gmra.mrb[24].mxu0 %v8135_v35 }
 0x2b9   :  { %4109 = vmatpush1.bf16.msra.mxu1 %v9120_v45  ;;  %4150 = vmatpush1.bf16.msra.mxu0 %v9123_v43  ;;  %v9137_v45 = vld [vmem:[#allocation6 + $0x210] ss:$200 sps:$4 sm:$0xff]   ;;  %v9140_v43 = vld [vmem:[#allocation6 + $0x39c] ss:$200 sps:$4 sm:$0xff]  }
 0x2ba   :  { %4110 = vmatprep.subr.bf16.mxu1 %v9126_v10  ;;  %4151 = vmatprep.subr.bf16.mxu0 %v9129_v0  ;;  %10301 = vst [vmem:[#allocation266_spill] sm:$0xff] %v9137_v45  ;;  %10302 = vst [vmem:[#allocation267_spill] sm:$0xff] %v9140_v43  ;;  %v7752_v10 = vld [vmem:[#allocation6 + $0x3a4] ss:$200 sps:$4 sm:$0xff]   ;;  %v7754_v0 = vld [vmem:[#allocation6 + $0x3a0] ss:$200 sps:$4 sm:$0xff]  }
 0x2bb   :  { %4140 = vmatprep.mubr.bf16.mxu1 %v10075_v49  ;;  %4181 = vmatprep.mubr.bf16.mxu0 %v10075_v49 }
 0x2bd   :  { %4111 = vmatpush1.bf16.msra.mxu1 %v9134_v53  ;;  %4152 = vmatpush1.bf16.msra.mxu0 %v9137_v45  ;;  %v7756_v53 = vld [vmem:[#allocation6 + $0x534] ss:$200 sps:$4 sm:$0xff]   ;;  %v7758_v45 = vld [vmem:[#allocation6 + $0x530] ss:$200 sps:$4 sm:$0xff]  }
 0x2be   :  { %4112 = vmatprep.subr.bf16.mxu1 %v9140_v43  ;;  %4153 = vmatprep.subr.bf16.mxu0 %v7752_v10  ;;  %v9152_v43 = vld [vmem:[#allocation6 + $0x6bc] ss:$200 sps:$4 sm:$0xff]  }
 0x2bf   :  { %10306 = vst [vmem:[#allocation271_spill] sm:$0xff] %v9152_v43  ;;  %v7760_v10 = vld [vmem:[#allocation6 + $0x6c4] ss:$200 sps:$4 sm:$0xff]  }
 0x2c1   :  { %4113 = vmatpush1.bf16.msra.mxu1 %v9143_v15  ;;  %4154 = vmatpush1.bf16.msra.mxu0 %v7754_v0  ;;  %v9155_v15 = vld [vmem:[#allocation6 + $0x6b8] ss:$200 sps:$4 sm:$0xff]  }
 0x2c2   :  { %4114 = vmatprep.subr.bf16.mxu1 %v9146_v37  ;;  %4155 = vmatprep.subr.bf16.mxu0 %v7756_v53  ;;  %10307 = vst [vmem:[#allocation272_spill] sm:$0xff] %v9155_v15  ;;  %v7762_v0 = vld [vmem:[#allocation6 + $0x6c0] ss:$200 sps:$4 sm:$0xff]   ;;  %v9158_v37 = vld [vmem:[#allocation6 + $0x84c] ss:$200 sps:$4 sm:$0xff]  }
 0x2c3   :  { %10308 = vst [vmem:[#allocation273_spill] sm:$0xff] %v9158_v37  ;;  %v7764_v53 = vld [vmem:[#allocation6 + $0x854] ss:$200 sps:$4 sm:$0xff]  }
 0x2c5   :  { %4115 = vmatpush1.bf16.msra.mxu1 %v9149_v57  ;;  %4156 = vmatpush1.bf16.msra.mxu0 %v7758_v45  ;;  %v9161_v57 = vld [vmem:[#allocation6 + $0x848] ss:$200 sps:$4 sm:$0xff]  }
 0x2c6   :  { %4116 = vmatprep.subr.bf16.mxu1 %v9152_v43  ;;  %4157 = vmatprep.subr.bf16.mxu0 %v7760_v10  ;;  %10309 = vst [vmem:[#allocation274_spill] sm:$0xff] %v9161_v57  ;;  %v7766_v45 = vld [vmem:[#allocation6 + $0x850] ss:$200 sps:$4 sm:$0xff]   ;;  %v9164_v43 = vld [vmem:[#allocation6 + $0x9dc] ss:$200 sps:$4 sm:$0xff]  }
 0x2c7   :  { %10310 = vst [vmem:[#allocation275_spill] sm:$0xff] %v9164_v43  ;;  %v7768_v10 = vld [vmem:[#allocation6 + $0x9e4] ss:$200 sps:$4 sm:$0xff]  }
 0x2c9   :  { %4117 = vmatpush1.bf16.msra.mxu1 %v9155_v15  ;;  %4158 = vmatpush1.bf16.msra.mxu0 %v7762_v0  ;;  %v9167_v15 = vld [vmem:[#allocation6 + $0x9d8] ss:$200 sps:$4 sm:$0xff]  }
 0x2ca   :  { %4118 = vmatprep.subr.bf16.mxu1 %v9158_v37  ;;  %4159 = vmatprep.subr.bf16.mxu0 %v7764_v53  ;;  %10311 = vst [vmem:[#allocation276_spill] sm:$0xff] %v9167_v15  ;;  %v7770_v0 = vld [vmem:[#allocation6 + $0x9e0] ss:$200 sps:$4 sm:$0xff]   ;;  %v9170_v37 = vld [vmem:[#allocation6 + $0xb6c] ss:$200 sps:$4 sm:$0xff]  }
 0x2cb   :  { %10312 = vst [vmem:[#allocation277_spill] sm:$0xff] %v9170_v37  ;;  %v7772_v53 = vld [vmem:[#allocation6 + $0xb74] ss:$200 sps:$4 sm:$0xff]  }
 0x2cd   :  { %4119 = vmatpush1.bf16.msra.mxu1 %v9161_v57  ;;  %4160 = vmatpush1.bf16.msra.mxu0 %v7766_v45  ;;  %v9173_v57 = vld [vmem:[#allocation6 + $0xb68] ss:$200 sps:$4 sm:$0xff]  }
 0x2ce   :  { %4120 = vmatprep.subr.bf16.mxu1 %v9164_v43  ;;  %4161 = vmatprep.subr.bf16.mxu0 %v7768_v10  ;;  %10313 = vst [vmem:[#allocation278_spill] sm:$0xff] %v9173_v57  ;;  %v7774_v45 = vld [vmem:[#allocation6 + $0xb70] ss:$200 sps:$4 sm:$0xff]   ;;  %v9176_v43 = vld [vmem:[#allocation6 + $0x8c] ss:$200 sps:$4 sm:$0xff]  }
 0x2cf   :  { %10314 = vst [vmem:[#allocation279_spill] sm:$0xff] %v9176_v43  ;;  %v7776_v10 = vld [vmem:[#allocation6 + $0x94] ss:$200 sps:$4 sm:$0xff]  }
 0x2d1   :  { %4121 = vmatpush1.bf16.msra.mxu1 %v9167_v15  ;;  %4162 = vmatpush1.bf16.msra.mxu0 %v7770_v0  ;;  %v9181_v0 = vld [vmem:[#allocation6 + $0x88] ss:$200 sps:$4 sm:$0xff]   ;;  %v7788_v15 = vld [vmem:[#allocation6 + $0x544] ss:$200 sps:$4 sm:$0xff]  }
 0x2d2   :  { %4122 = vmatprep.subr.bf16.mxu1 %v9170_v37  ;;  %4163 = vmatprep.subr.bf16.mxu0 %v7772_v53  ;;  %10315 = vst [vmem:[#allocation280_spill] sm:$0xff] %v9181_v0  ;;  %v7778_v53 = vld [vmem:[#allocation6 + $0x90] ss:$200 sps:$4 sm:$0xff]   ;;  %v9184_v37 = vld [vmem:[#allocation6 + $0x21c] ss:$200 sps:$4 sm:$0xff]  }
 0x2d3   :  { %10316 = vst [vmem:[#allocation281_spill] sm:$0xff] %v9184_v37 }
 0x2d5   :  { %4123 = vmatpush1.bf16.msra.mxu1 %v9173_v57  ;;  %4164 = vmatpush1.bf16.msra.mxu0 %v7774_v45  ;;  %v7780_v45 = vld [vmem:[#allocation6 + $0x224] ss:$200 sps:$4 sm:$0xff]  }
 0x2d6   :  { %4190 = vmatprep.subr.bf16.mxu1 %v9176_v43  ;;  %4231 = vmatprep.subr.bf16.mxu0 %v7776_v10  ;;  %v9189_v10 = vld [vmem:[#allocation6 + $0x218] ss:$200 sps:$4 sm:$0xff]   ;;  %v9192_v57 = vld [vmem:[#allocation6 + $0x3ac] ss:$200 sps:$4 sm:$0xff]  }
 0x2d7   :  { %10317 = vst [vmem:[#allocation282_spill] sm:$0xff] %v9189_v10  ;;  %v7782_v43 = vld [vmem:[#allocation6 + $0x220] ss:$200 sps:$4 sm:$0xff]   ;;  %10318 = vst [vmem:[#allocation283_spill] sm:$0xff] %v9192_v57 }
 0x2d8   :  { %4141 = vmatmul.mubr.bf16.vlgmr.msra.gmra.mrb[32].mxu1 %v8135_v35  ;;  %4182 = vmatmul.mubr.bf16.vlgmr.msra.gmra.mrb[28].mxu0 %v8135_v35 }
 0x2d9   :  { %4191 = vmatpush1.bf16.msra.mxu1 %v9181_v0  ;;  %4232 = vmatpush1.bf16.msra.mxu0 %v7778_v53  ;;  %v7784_v53 = vld [vmem:[#allocation6 + $0x3b4] ss:$200 sps:$4 sm:$0xff]   ;;  %v9195_v0 = vld [vmem:[#allocation6 + $0x3a8] ss:$200 sps:$4 sm:$0xff]  }
 0x2da   :  { %4192 = vmatprep.subr.bf16.mxu1 %v9184_v37  ;;  %4233 = vmatprep.subr.bf16.mxu0 %v7780_v45  ;;  %10319 = vst [vmem:[#allocation284_spill] sm:$0xff] %v9195_v0  ;;  %v7786_v45 = vld [vmem:[#allocation6 + $0x3b0] ss:$200 sps:$4 sm:$0xff]   ;;  %v9198_v37 = vld [vmem:[#allocation6 + $0x53c] ss:$200 sps:$4 sm:$0xff]  }
 0x2db   :  { %4222 = vmatprep.mubr.bf16.mxu1 %v10075_v49  ;;  %4263 = vmatprep.mubr.bf16.mxu0 %v10075_v49  ;;  %10320 = vst [vmem:[#allocation285_spill] sm:$0xff] %v9198_v37 }
 0x2dd   :  { %4193 = vmatpush1.bf16.msra.mxu1 %v9189_v10  ;;  %4234 = vmatpush1.bf16.msra.mxu0 %v7782_v43  ;;  %v9201_v10 = vld [vmem:[#allocation6 + $0x538] ss:$200 sps:$4 sm:$0xff]  }
 0x2de   :  { %4194 = vmatprep.subr.bf16.mxu1 %v9192_v57  ;;  %4235 = vmatprep.subr.bf16.mxu0 %v7784_v53  ;;  %10321 = vst [vmem:[#allocation286_spill] sm:$0xff] %v9201_v10  ;;  %v7790_v43 = vld [vmem:[#allocation6 + $0x540] ss:$200 sps:$4 sm:$0xff]   ;;  %v9204_v57 = vld [vmem:[#allocation6 + $0x6cc] ss:$200 sps:$4 sm:$0xff]  }
 0x2df   :  { %10322 = vst [vmem:[#allocation287_spill] sm:$0xff] %v9204_v57  ;;  %v7792_v53 = vld [vmem:[#allocation6 + $0x6d4] ss:$200 sps:$4 sm:$0xff]  }
 0x2e1   :  { %4195 = vmatpush1.bf16.msra.mxu1 %v9195_v0  ;;  %4236 = vmatpush1.bf16.msra.mxu0 %v7786_v45  ;;  %v9207_v0 = vld [vmem:[#allocation6 + $0x6c8] ss:$200 sps:$4 sm:$0xff]  }
 0x2e2   :  { %4196 = vmatprep.subr.bf16.mxu1 %v9198_v37  ;;  %4237 = vmatprep.subr.bf16.mxu0 %v7788_v15  ;;  %10323 = vst [vmem:[#allocation288_spill] sm:$0xff] %v9207_v0  ;;  %v7794_v45 = vld [vmem:[#allocation6 + $0x6d0] ss:$200 sps:$4 sm:$0xff]   ;;  %v9210_v37 = vld [vmem:[#allocation6 + $0x85c] ss:$200 sps:$4 sm:$0xff]  }
 0x2e3   :  { %10324 = vst [vmem:[#allocation289_spill] sm:$0xff] %v9210_v37  ;;  %v7796_v15 = vld [vmem:[#allocation6 + $0x864] ss:$200 sps:$4 sm:$0xff]  }
 0x2e5   :  { %4197 = vmatpush1.bf16.msra.mxu1 %v9201_v10  ;;  %4238 = vmatpush1.bf16.msra.mxu0 %v7790_v43  ;;  %v9213_v10 = vld [vmem:[#allocation6 + $0x858] ss:$200 sps:$4 sm:$0xff]  }
 0x2e6   :  { %4198 = vmatprep.subr.bf16.mxu1 %v9204_v57  ;;  %4239 = vmatprep.subr.bf16.mxu0 %v7792_v53  ;;  %10325 = vst [vmem:[#allocation290_spill] sm:$0xff] %v9213_v10  ;;  %v7798_v43 = vld [vmem:[#allocation6 + $0x860] ss:$200 sps:$4 sm:$0xff]   ;;  %v9216_v57 = vld [vmem:[#allocation6 + $0x9ec] ss:$200 sps:$4 sm:$0xff]  }
 0x2e7   :  { %10326 = vst [vmem:[#allocation291_spill] sm:$0xff] %v9216_v57  ;;  %v7800_v53 = vld [vmem:[#allocation6 + $0x9f4] ss:$200 sps:$4 sm:$0xff]  }
 0x2e9   :  { %4199 = vmatpush1.bf16.msra.mxu1 %v9207_v0  ;;  %4240 = vmatpush1.bf16.msra.mxu0 %v7794_v45  ;;  %v9219_v0 = vld [vmem:[#allocation6 + $0x9e8] ss:$200 sps:$4 sm:$0xff]  }
 0x2ea   :  { %4200 = vmatprep.subr.bf16.mxu1 %v9210_v37  ;;  %4241 = vmatprep.subr.bf16.mxu0 %v7796_v15  ;;  %v7802_v45 = vld [vmem:[#allocation6 + $0x9f0] ss:$200 sps:$4 sm:$0xff]   ;;  %v9222_v37 = vld [vmem:[#allocation6 + $0xb7c] ss:$200 sps:$4 sm:$0xff]  }
 0x2eb   :  { %10327 = vst [vmem:[#allocation292_spill] sm:$0xff] %v9222_v37  ;;  %v7804_v15 = vld [vmem:[#allocation6 + $0xb84] ss:$200 sps:$4 sm:$0xff]  }
 0x2ed   :  { %4201 = vmatpush1.bf16.msra.mxu1 %v9213_v10  ;;  %4242 = vmatpush1.bf16.msra.mxu0 %v7798_v43  ;;  %v9225_v10 = vld [vmem:[#allocation6 + $0xb78] ss:$200 sps:$4 sm:$0xff]  }
 0x2ee   :  { %4202 = vmatprep.subr.bf16.mxu1 %v9216_v57  ;;  %4243 = vmatprep.subr.bf16.mxu0 %v7800_v53  ;;  %v7806_v43 = vld [vmem:[#allocation6 + $0xb80] ss:$200 sps:$4 sm:$0xff]   ;;  %v9228_v57 = vld [vmem:[#allocation6 + $0x9c] ss:$200 sps:$4 sm:$0xff]  }
 0x2ef   :  { %10328 = vst [vmem:[#allocation293_spill] sm:$0xff] %v9228_v57  ;;  %v7808_v53 = vld [vmem:[#allocation6 + $0xa4] ss:$200 sps:$4 sm:$0xff]  }
 0x2f1   :  { %4203 = vmatpush1.bf16.msra.mxu1 %v9219_v0  ;;  %4244 = vmatpush1.bf16.msra.mxu0 %v7802_v45  ;;  %v9233_v45 = vld [vmem:[#allocation6 + $0x98] ss:$200 sps:$4 sm:$0xff]  }
 0x2f2   :  { %4204 = vmatprep.subr.bf16.mxu1 %v9222_v37  ;;  %4245 = vmatprep.subr.bf16.mxu0 %v7804_v15  ;;  %v7810_v15 = vld [vmem:[#allocation6 + $0xa0] ss:$200 sps:$4 sm:$0xff]   ;;  %v9236_v37 = vld [vmem:[#allocation6 + $0x22c] ss:$200 sps:$4 sm:$0xff]  }
 0x2f3   :  { %10329 = vst [vmem:[#allocation294_spill] sm:$0xff] %v9236_v37 }
 0x2f5   :  { %4205 = vmatpush1.bf16.msra.mxu1 %v9225_v10  ;;  %4246 = vmatpush1.bf16.msra.mxu0 %v7806_v43  ;;  %v7812_v43 = vld [vmem:[#allocation6 + $0x234] ss:$200 sps:$4 sm:$0xff]  }
 0x2f6   :  { %4272 = vmatprep.subr.bf16.mxu1 %v9228_v57  ;;  %4313 = vmatprep.subr.bf16.mxu0 %v7808_v53  ;;  %v7813_v53 = vld [vmem:[#allocation6 + $0x230] ss:$200 sps:$4 sm:$0xff]   ;;  %v7814_v57 = vld [vmem:[#allocation6 + $0x3c4] ss:$200 sps:$4 sm:$0xff]  }
 0x2f8   :  { %4223 = vmatmul.mubr.bf16.vlgmr.msra.gmra.mrb[36].mxu1 %v8135_v35  ;;  %4264 = vmatmul.mubr.bf16.vlgmr.msra.gmra.mrb[32].mxu0 %v8135_v35 }
 0x2f9   :  { %4273 = vmatpush1.bf16.msra.mxu1 %v9233_v45  ;;  %4314 = vmatpush1.bf16.msra.mxu0 %v7810_v15  ;;  %v7815_v15 = vld [vmem:[#allocation6 + $0x3c0] ss:$200 sps:$4 sm:$0xff]  }
 0x2fa   :  { %4274 = vmatprep.subr.bf16.mxu1 %v9236_v37  ;;  %4315 = vmatprep.subr.bf16.mxu0 %v7812_v43  ;;  %v7816_v37 = vld [vmem:[#allocation6 + $0x554] ss:$200 sps:$4 sm:$0xff]   ;;  %v7817_v43 = vld [vmem:[#allocation6 + $0x550] ss:$200 sps:$4 sm:$0xff]  }
 0x2fb   :  { %4304 = vmatprep.mubr.bf16.mxu1 %v10075_v49  ;;  %4345 = vmatprep.mubr.bf16.mxu0 %v10075_v49 }
 0x2fd   :  { %4275 = vmatpush1.bf16.msra.mxu1 %v8186_v38  ;;  %4316 = vmatpush1.bf16.msra.mxu0 %v7813_v53  ;;  %v7818_v38 = vld [vmem:[#allocation6 + $0x6e4] ss:$200 sps:$4 sm:$0xff]  }
 0x2fe   :  { %4276 = vmatprep.subr.bf16.mxu1 %v8188_v40  ;;  %4317 = vmatprep.subr.bf16.mxu0 %v7814_v57  ;;  %v7819_v40 = vld [vmem:[#allocation6 + $0x6e0] ss:$200 sps:$4 sm:$0xff]  }
 0x2ff   :  { %v10349_v57 = vld [vmem:[#allocation51_spill] sm:$0xff]  ;;  %v10357_v53 = vld [vmem:[#allocation30_spill] sm:$0xff] }
 0x301   :  { %4277 = vmatpush1.bf16.msra.mxu1 %v8193_v44  ;;  %4318 = vmatpush1.bf16.msra.mxu0 %v7815_v15  ;;  %v7820_v44 = vld [vmem:[#allocation6 + $0x874] ss:$200 sps:$4 sm:$0xff]   ;;  %v10358_v15 = vld [vmem:[#allocation59_spill] sm:$0xff] }
 0x302   :  { %4278 = vmatprep.subr.bf16.mxu1 %v8196_v46  ;;  %4319 = vmatprep.subr.bf16.mxu0 %v7816_v37  ;;  %v7821_v46 = vld [vmem:[#allocation6 + $0x870] ss:$200 sps:$4 sm:$0xff]  }
 0x303   :  { %v10343_v37 = vld [vmem:[#allocation45_spill] sm:$0xff] }
 0x305   :  { %4279 = vmatpush1.bf16.msra.mxu1 %v8199_v48  ;;  %4320 = vmatpush1.bf16.msra.mxu0 %v7817_v43  ;;  %v7822_v48 = vld [vmem:[#allocation6 + $0xa04] ss:$200 sps:$4 sm:$0xff]   ;;  %v10359_v43 = vld [vmem:[#allocation13_spill] sm:$0xff] }
 0x306   :  { %4280 = vmatprep.subr.bf16.mxu1 %v8202_v50  ;;  %4321 = vmatprep.subr.bf16.mxu0 %v7818_v38  ;;  %v7823_v50 = vld [vmem:[#allocation6 + $0xa00] ss:$200 sps:$4 sm:$0xff]  }
 0x309   :  { %4281 = vmatpush1.bf16.msra.mxu1 %v8205_v52  ;;  %4322 = vmatpush1.bf16.msra.mxu0 %v7819_v40  ;;  %v7824_v52 = vld [vmem:[#allocation6 + $0xb94] ss:$200 sps:$4 sm:$0xff]   ;;  %v10360_v40 = vld [vmem:[#allocation31_spill] sm:$0xff] }
 0x30a   :  { %4282 = vmatprep.subr.bf16.mxu1 %v8208_v54  ;;  %4323 = vmatprep.subr.bf16.mxu0 %v7820_v44  ;;  %v7825_v54 = vld [vmem:[#allocation6 + $0xb90] ss:$200 sps:$4 sm:$0xff]  }
 0x30b   :  { %v10361_v44 = vld [vmem:[#allocation61_spill] sm:$0xff] }
 0x30d   :  { %4283 = vmatpush1.bf16.msra.mxu1 %v8211_v56  ;;  %4324 = vmatpush1.bf16.msra.mxu0 %v7821_v46  ;;  %v7826_v56 = vld [vmem:[#allocation6 + $0xb4] ss:$200 sps:$4 sm:$0xff]  }
 0x30e   :  { %4284 = vmatprep.subr.bf16.mxu1 %v8214_v58  ;;  %4325 = vmatprep.subr.bf16.mxu0 %v7822_v48  ;;  %v7827_v58 = vld [vmem:[#allocation6 + $0xb0] ss:$200 sps:$4 sm:$0xff]  }
 0x30f   :  { %v10362_v46 = vld [vmem:[#allocation33_spill] sm:$0xff]  ;;  %v10363_v48 = vld [vmem:[#allocation63_spill] sm:$0xff] }
 0x311   :  { %4285 = vmatpush1.bf16.msra.mxu1 %v8217_v60  ;;  %4326 = vmatpush1.bf16.msra.mxu0 %v7823_v50  ;;  %v7828_v60 = vld [vmem:[#allocation6 + $0x244] ss:$200 sps:$4 sm:$0xff]  }
 0x312   :  { %4286 = vmatprep.subr.bf16.mxu1 %v8220_v62  ;;  %4327 = vmatprep.subr.bf16.mxu0 %v7824_v52  ;;  %v7829_v62 = vld [vmem:[#allocation6 + $0x240] ss:$200 sps:$4 sm:$0xff]  }
 0x313   :  { %v10364_v52 = vld [vmem:[#allocation34_spill] sm:$0xff] }
 0x315   :  { %4287 = vmatpush1.bf16.msra.mxu1 %v8223_v1  ;;  %4328 = vmatpush1.bf16.msra.mxu0 %v7825_v54  ;;  %v7830_v1 = vld [vmem:[#allocation6 + $0x3d4] ss:$200 sps:$4 sm:$0xff]  }
 0x316   :  { %4354 = vmatprep.subr.bf16.mxu1 %v8226_v3  ;;  %4395 = vmatprep.subr.bf16.mxu0 %v7826_v56  ;;  %v7831_v3 = vld [vmem:[#allocation6 + $0x3d0] ss:$200 sps:$4 sm:$0xff]  }
 0x317   :  { %v10365_v54 = vld [vmem:[#allocation65_spill] sm:$0xff]  ;;  %v10366_v56 = vld [vmem:[#allocation36_spill] sm:$0xff] }
 0x318   :  { %4305 = vmatmul.mubr.bf16.vlgmr.msra.gmra.mrb[40].mxu1 %v8135_v35  ;;  %4346 = vmatmul.mubr.bf16.vlgmr.msra.gmra.mrb[36].mxu0 %v8135_v35 }
 0x319   :  { %4355 = vmatpush1.bf16.msra.mxu1 %v8229_v5  ;;  %4396 = vmatpush1.bf16.msra.mxu0 %v7827_v58  ;;  %v7832_v5 = vld [vmem:[#allocation6 + $0x564] ss:$200 sps:$4 sm:$0xff]  }
 0x31a   :  { %4356 = vmatprep.subr.bf16.mxu1 %v8232_v7  ;;  %4397 = vmatprep.subr.bf16.mxu0 %v7828_v60  ;;  %v7833_v7 = vld [vmem:[#allocation6 + $0x560] ss:$200 sps:$4 sm:$0xff]  }
 0x31b   :  { %4386 = vmatprep.mubr.bf16.mxu1 %v10075_v49  ;;  %4427 = vmatprep.mubr.bf16.mxu0 %v10075_v49  ;;  %v10367_v58 = vld [vmem:[#allocation67_spill] sm:$0xff]  ;;  %v10368_v60 = vld [vmem:[#allocation38_spill] sm:$0xff] }
 0x31d   :  { %4357 = vmatpush1.bf16.msra.mxu1 %v8237_v9  ;;  %4398 = vmatpush1.bf16.msra.mxu0 %v7829_v62  ;;  %v7834_v9 = vld [vmem:[#allocation6 + $0x6f4] ss:$200 sps:$4 sm:$0xff]  }
 0x31e   :  { %4358 = vmatprep.subr.bf16.mxu1 %v8240_v11  ;;  %4399 = vmatprep.subr.bf16.mxu0 %v7830_v1  ;;  %v7835_v11 = vld [vmem:[#allocation6 + $0x6f0] ss:$200 sps:$4 sm:$0xff]  }
 0x31f   :  { %v10369_v62 = vld [vmem:[#allocation69_spill] sm:$0xff]  ;;  %v10370_v1 = vld [vmem:[#allocation40_spill] sm:$0xff] }
 0x321   :  { %4359 = vmatpush1.bf16.msra.mxu1 %v8245_v13  ;;  %4400 = vmatpush1.bf16.msra.mxu0 %v7831_v3  ;;  %v7836_v13 = vld [vmem:[#allocation6 + $0x884] ss:$200 sps:$4 sm:$0xff]  }
 0x322   :  { %4360 = vmatprep.subr.bf16.mxu1 %v8250_v16  ;;  %4401 = vmatprep.subr.bf16.mxu0 %v7832_v5  ;;  %v7837_v16 = vld [vmem:[#allocation6 + $0x880] ss:$200 sps:$4 sm:$0xff]  }
 0x323   :  { %v10371_v3 = vld [vmem:[#allocation71_spill] sm:$0xff]  ;;  %v10372_v5 = vld [vmem:[#allocation42_spill] sm:$0xff] }
 0x325   :  { %4361 = vmatpush1.bf16.msra.mxu1 %v8256_v19  ;;  %4402 = vmatpush1.bf16.msra.mxu0 %v7833_v7  ;;  %v7838_v19 = vld [vmem:[#allocation6 + $0xa14] ss:$200 sps:$4 sm:$0xff]  }
 0x326   :  { %4362 = vmatprep.subr.bf16.mxu1 %v8262_v21  ;;  %4403 = vmatprep.subr.bf16.mxu0 %v7834_v9  ;;  %v7839_v21 = vld [vmem:[#allocation6 + $0xa10] ss:$200 sps:$4 sm:$0xff]  }
 0x327   :  { %v10373_v7 = vld [vmem:[#allocation73_spill] sm:$0xff]  ;;  %v10374_v9 = vld [vmem:[#allocation44_spill] sm:$0xff] }
 0x329   :  { %4363 = vmatpush1.bf16.msra.mxu1 %v8268_v23  ;;  %4404 = vmatpush1.bf16.msra.mxu0 %v7835_v11  ;;  %v7840_v23 = vld [vmem:[#allocation6 + $0xba4] ss:$200 sps:$4 sm:$0xff]  }
 0x32a   :  { %4364 = vmatprep.subr.bf16.mxu1 %v8274_v25  ;;  %4405 = vmatprep.subr.bf16.mxu0 %v7836_v13  ;;  %v7841_v25 = vld [vmem:[#allocation6 + $0xba0] ss:$200 sps:$4 sm:$0xff]  }
 0x32b   :  { %v10375_v11 = vld [vmem:[#allocation75_spill] sm:$0xff]  ;;  %v10376_v13 = vld [vmem:[#allocation46_spill] sm:$0xff] }
 0x32d   :  { %4365 = vmatpush1.bf16.msra.mxu1 %v8280_v27  ;;  %4406 = vmatpush1.bf16.msra.mxu0 %v7837_v16  ;;  %v7842_v27 = vld [vmem:[#allocation6 + $0xc4] ss:$200 sps:$4 sm:$0xff]   ;;  %v10377_v16 = vld [vmem:[#allocation77_spill] sm:$0xff] }
 0x32e   :  { %4366 = vmatprep.subr.bf16.mxu1 %v8286_v29  ;;  %4407 = vmatprep.subr.bf16.mxu0 %v7838_v19  ;;  %v7843_v29 = vld [vmem:[#allocation6 + $0xc0] ss:$200 sps:$4 sm:$0xff]   ;;  %v10378_v19 = vld [vmem:[#allocation48_spill] sm:$0xff] }
 0x331   :  { %4367 = vmatpush1.bf16.msra.mxu1 %v8292_v31  ;;  %4408 = vmatpush1.bf16.msra.mxu0 %v7839_v21  ;;  %v7844_v31 = vld [vmem:[#allocation6 + $0x254] ss:$200 sps:$4 sm:$0xff]   ;;  %v10379_v21 = vld [vmem:[#allocation79_spill] sm:$0xff] }
 0x332   :  { %4368 = vmatprep.subr.bf16.mxu1 %v8298_v33  ;;  %4409 = vmatprep.subr.bf16.mxu0 %v7840_v23  ;;  %v7845_v33 = vld [vmem:[#allocation6 + $0x250] ss:$200 sps:$4 sm:$0xff]   ;;  %v10380_v23 = vld [vmem:[#allocation50_spill] sm:$0xff] }
 0x335   :  { %4369 = vmatpush1.bf16.msra.mxu1 %v8304_v36  ;;  %4410 = vmatpush1.bf16.msra.mxu0 %v7841_v25  ;;  %v7846_v36 = vld [vmem:[#allocation6 + $0x3e4] ss:$200 sps:$4 sm:$0xff]   ;;  %v10381_v25 = vld [vmem:[#allocation81_spill] sm:$0xff] }
 0x336   :  { %4436 = vmatprep.subr.bf16.mxu1 %v8310_v39  ;;  %4477 = vmatprep.subr.bf16.mxu0 %v7842_v27  ;;  %v10344_v39 = vld [vmem:[#allocation24_spill] sm:$0xff] }
 0x337   :  { %v10382_v27 = vld [vmem:[#allocation52_spill] sm:$0xff] }
 0x338   :  { %4387 = vmatmul.mubr.bf16.vlgmr.msra.gmra.mrb[44].mxu1 %v8135_v35  ;;  %4428 = vmatmul.mubr.bf16.vlgmr.msra.gmra.mrb[40].mxu0 %v8135_v35 }
 0x339   :  { %4437 = vmatpush1.bf16.msra.mxu1 %v8314_v42  ;;  %4478 = vmatpush1.bf16.msra.mxu0 %v7843_v29  ;;  %v10345_v42 = vld [vmem:[#allocation47_spill] sm:$0xff] }
 0x33a   :  { %4438 = vmatprep.subr.bf16.mxu1 %v8320_v47  ;;  %4479 = vmatprep.subr.bf16.mxu0 %v7844_v31  ;;  %v10346_v47 = vld [vmem:[#allocation25_spill] sm:$0xff]  ;;  %v10383_v29 = vld [vmem:[#allocation83_spill] sm:$0xff]  ;;  %v10384_v31 = vld [vmem:[#allocation54_spill] sm:$0xff] }
 0x33b   :  { %4468 = vmatprep.mubr.bf16.mxu1 %v10075_v49  ;;  %4509 = vmatprep.mubr.bf16.mxu0 %v10075_v49 }
 0x33d   :  { %4439 = vmatpush1.bf16.msra.mxu1 %v8328_v51  ;;  %4480 = vmatpush1.bf16.msra.mxu0 %v7845_v33  ;;  %v10347_v51 = vld [vmem:[#allocation49_spill] sm:$0xff] }
 0x33e   :  { %4440 = vmatprep.subr.bf16.mxu1 %v8334_v55  ;;  %4481 = vmatprep.subr.bf16.mxu0 %v7846_v36  ;;  %v10348_v55 = vld [vmem:[#allocation26_spill] sm:$0xff]  ;;  %v10385_v33 = vld [vmem:[#allocation85_spill] sm:$0xff]  ;;  %v10386_v36 = vld [vmem:[#allocation56_spill] sm:$0xff] }
 0x341   :  { %4441 = vmatpush1.bf16.msra.mxu1 %v8342_v59  ;;  %4482 = vmatpush1.bf16.msra.mxu0 %v8247_v14  ;;  %v10330_v14 = vld [vmem:[#allocation32_spill] sm:$0xff]  ;;  %v10350_v59 = vld [vmem:[#allocation27_spill] sm:$0xff] }
 0x342   :  { %4442 = vmatprep.subr.bf16.mxu1 %v8348_v63  ;;  %4483 = vmatprep.subr.bf16.mxu0 %v8252_v18  ;;  %v10332_v18 = vld [vmem:[#allocation18_spill] sm:$0xff]  ;;  %v10352_v63 = vld [vmem:[#allocation28_spill] sm:$0xff] }
 0x345   :  { %4443 = vmatpush1.bf16.msra.mxu1 %v8354_v4  ;;  %4484 = vmatpush1.bf16.msra.mxu0 %v8258_v20  ;;  %v10334_v20 = vld [vmem:[#allocation19_spill] sm:$0xff]  ;;  %v10354_v4 = vld [vmem:[#allocation14_spill] sm:$0xff] }
 0x346   :  { %4444 = vmatprep.subr.bf16.mxu1 %v8360_v8  ;;  %4485 = vmatprep.subr.bf16.mxu0 %v8264_v22  ;;  %v10335_v22 = vld [vmem:[#allocation37_spill] sm:$0xff] }
 0x347   :  { %v10355_v8 = vld [vmem:[#allocation29_spill] sm:$0xff] }
 0x349   :  { %4445 = vmatpush1.bf16.msra.mxu1 %v8366_v12  ;;  %4486 = vmatpush1.bf16.msra.mxu0 %v8270_v24  ;;  %v10336_v24 = vld [vmem:[#allocation20_spill] sm:$0xff]  ;;  %v10356_v12 = vld [vmem:[#allocation57_spill] sm:$0xff] }
 0x34a   :  { %4446 = vmatprep.subr.bf16.mxu1 %v8372_v17  ;;  %4487 = vmatprep.subr.bf16.mxu0 %v8276_v26  ;;  %v10331_v17 = vld [vmem:[#allocation17_spill] sm:$0xff]  ;;  %v10337_v26 = vld [vmem:[#allocation39_spill] sm:$0xff] }
 0x34d   :  { %4447 = vmatpush1.bf16.msra.mxu1 %v8378_v41  ;;  %4488 = vmatpush1.bf16.msra.mxu0 %v8282_v28  ;;  %v10333_v41 = vld [vmem:[#allocation35_spill] sm:$0xff]  ;;  %v10338_v28 = vld [vmem:[#allocation21_spill] sm:$0xff] }
 0x34e   :  { %4448 = vmatprep.subr.bf16.mxu1 %v8384_v6  ;;  %4489 = vmatprep.subr.bf16.mxu0 %v8288_v30  ;;  %v10339_v30 = vld [vmem:[#allocation41_spill] sm:$0xff]  ;;  %v65_v6 = vunpack.c.l.bf16 %v10354_v4  ;;  %v10411_v4 = vld [vmem:[#allocation111_spill] sm:$0xff] }
 0x350   :  { %v66_v38 = vsub.f32 %v10359_v43, %v65_v6  ;;  %v10412_v6 = vld [vmem:[#allocation82_spill] sm:$0xff]  ;;  %v10417_v43 = vld [vmem:[#allocation117_spill] sm:$0xff] }
 0x351   :  { %4449 = vmatpush1.bf16.msra.mxu1 %v8390_v2  ;;  %4490 = vmatpush1.bf16.msra.mxu0 %v8294_v32  ;;  %v10340_v32 = vld [vmem:[#allocation22_spill] sm:$0xff]  ;;  %v10353_v2 = vld [vmem:[#allocation55_spill] sm:$0xff] }
 0x352   :  { %4450 = vmatprep.subr.bf16.mxu1 %v8396_v61  ;;  %4491 = vmatprep.subr.bf16.mxu0 %v8300_v34  ;;  %v10341_v34 = vld [vmem:[#allocation43_spill] sm:$0xff]  ;;  %v10351_v61 = vld [vmem:[#allocation53_spill] sm:$0xff]  ;;  %v9341_v50 = vpack.c.bf16 %v66_v38, %v66_v38  ;;  %v10418_v38 = vld [vmem:[#allocation88_spill] sm:$0xff] }
 0x355   :  { %4451 = vmatpush1.bf16.msra.mxu1 %v10330_v14  ;;  %4492 = vmatpush1.bf16.msra.mxu0 %v10331_v17  ;;  %v10387_v14 = vld [vmem:[#allocation87_spill] sm:$0xff]  ;;  %v10388_v17 = vld [vmem:[#allocation58_spill] sm:$0xff] }
 0x356   :  { %4518 = vmatprep.subr.bf16.mxu0 %v10332_v18  ;;  %4559 = vmatprep.subr.bf16.mxu1 %v10333_v41  ;;  %v10389_v18 = vld [vmem:[#allocation89_spill] sm:$0xff]  ;;  %v10390_v41 = vld [vmem:[#allocation60_spill] sm:$0xff] }
 0x358   :  { %4469 = vmatmul.mubr.bf16.vlgmr.msra.gmra.mrb[48].mxu1 %v8135_v35  ;;  %4510 = vmatmul.mubr.bf16.vlgmr.msra.gmra.mrb[44].mxu0 %v8135_v35  ;;  %v10342_v35 = vld [vmem:[#allocation23_spill] sm:$0xff] }
 0x359   :  { %4519 = vmatpush1.bf16.msra.mxu0 %v10334_v20  ;;  %4560 = vmatpush1.bf16.msra.mxu1 %v10335_v22  ;;  %v10391_v20 = vld [vmem:[#allocation91_spill] sm:$0xff]  ;;  %v10392_v22 = vld [vmem:[#allocation62_spill] sm:$0xff] }
 0x35a   :  { %4520 = vmatprep.subr.bf16.mxu0 %v10336_v24  ;;  %4561 = vmatprep.subr.bf16.mxu1 %v10337_v26  ;;  %v10393_v24 = vld [vmem:[#allocation93_spill] sm:$0xff]  ;;  %v10394_v26 = vld [vmem:[#allocation64_spill] sm:$0xff] }
 0x35b   :  { %4550 = vmatprep.mubr.bf16.mxu0 %v10075_v49  ;;  %4591 = vmatprep.mubr.bf16.mxu1 %v10075_v49 }
 0x35d   :  { %4521 = vmatpush1.bf16.msra.mxu0 %v10338_v28  ;;  %4562 = vmatpush1.bf16.msra.mxu1 %v10339_v30  ;;  %v10395_v28 = vld [vmem:[#allocation95_spill] sm:$0xff]  ;;  %v10396_v30 = vld [vmem:[#allocation66_spill] sm:$0xff] }
 0x35e   :  { %4522 = vmatprep.subr.bf16.mxu0 %v10340_v32  ;;  %4563 = vmatprep.subr.bf16.mxu1 %v10341_v34  ;;  %v10397_v32 = vld [vmem:[#allocation97_spill] sm:$0xff]  ;;  %v10398_v34 = vld [vmem:[#allocation68_spill] sm:$0xff] }
 0x361   :  { %4523 = vmatpush1.bf16.msra.mxu0 %v10342_v35  ;;  %4564 = vmatpush1.bf16.msra.mxu1 %v10343_v37  ;;  %v10399_v35 = vld [vmem:[#allocation99_spill] sm:$0xff]  ;;  %v10400_v37 = vld [vmem:[#allocation70_spill] sm:$0xff] }
 0x362   :  { %4524 = vmatprep.subr.bf16.mxu0 %v10344_v39  ;;  %4565 = vmatprep.subr.bf16.mxu1 %v10345_v42  ;;  %v10401_v39 = vld [vmem:[#allocation101_spill] sm:$0xff]  ;;  %v10402_v42 = vld [vmem:[#allocation72_spill] sm:$0xff] }
 0x365   :  { %4525 = vmatpush1.bf16.msra.mxu0 %v10346_v47  ;;  %4566 = vmatpush1.bf16.msra.mxu1 %v10347_v51  ;;  %v10403_v47 = vld [vmem:[#allocation103_spill] sm:$0xff]  ;;  %v10404_v51 = vld [vmem:[#allocation74_spill] sm:$0xff] }
 0x366   :  { %4526 = vmatprep.subr.bf16.mxu0 %v10348_v55  ;;  %4567 = vmatprep.subr.bf16.mxu1 %v10349_v57  ;;  %v10405_v55 = vld [vmem:[#allocation105_spill] sm:$0xff]  ;;  %v10406_v57 = vld [vmem:[#allocation76_spill] sm:$0xff] }
 0x369   :  { %4527 = vmatpush1.bf16.msra.mxu0 %v10350_v59  ;;  %4568 = vmatpush1.bf16.msra.mxu1 %v10351_v61  ;;  %v10407_v59 = vld [vmem:[#allocation107_spill] sm:$0xff]  ;;  %v10408_v61 = vld [vmem:[#allocation78_spill] sm:$0xff] }
 0x36a   :  { %4528 = vmatprep.subr.bf16.mxu0 %v10352_v63  ;;  %4569 = vmatprep.subr.bf16.mxu1 %v10353_v2  ;;  %v10409_v63 = vld [vmem:[#allocation109_spill] sm:$0xff]  ;;  %v10410_v2 = vld [vmem:[#allocation80_spill] sm:$0xff] }
 0x36d   :  { %4529 = vmatpush1.bf16.msra.mxu0 %v10355_v8  ;;  %4570 = vmatpush1.bf16.msra.mxu1 %v10356_v12  ;;  %v10413_v8 = vld [vmem:[#allocation113_spill] sm:$0xff]  ;;  %v10414_v12 = vld [vmem:[#allocation84_spill] sm:$0xff] }
 0x36e   :  { %4530 = vmatprep.subr.bf16.mxu0 %v10357_v53  ;;  %4571 = vmatprep.subr.bf16.mxu1 %v10358_v15  ;;  %v10415_v53 = vld [vmem:[#allocation115_spill] sm:$0xff]  ;;  %v10416_v15 = vld [vmem:[#allocation86_spill] sm:$0xff] }
 0x371   :  { %4531 = vmatpush1.bf16.msra.mxu0 %v10360_v40  ;;  %4572 = vmatpush1.bf16.msra.mxu1 %v10361_v44  ;;  %v10419_v40 = vld [vmem:[#allocation119_spill] sm:$0xff]  ;;  %v10420_v44 = vld [vmem:[#allocation90_spill] sm:$0xff] }
 0x372   :  { %4532 = vmatprep.subr.bf16.mxu0 %v10362_v46  ;;  %4573 = vmatprep.subr.bf16.mxu1 %v10363_v48  ;;  %v10421_v46 = vld [vmem:[#allocation121_spill] sm:$0xff]  ;;  %v10422_v48 = vld [vmem:[#allocation92_spill] sm:$0xff] }
 0x375   :  { %4533 = vmatpush1.bf16.msra.mxu0 %v10364_v52  ;;  %4574 = vmatpush1.bf16.msra.mxu1 %v10365_v54  ;;  %v10423_v52 = vld [vmem:[#allocation123_spill] sm:$0xff]  ;;  %v10424_v54 = vld [vmem:[#allocation94_spill] sm:$0xff] }
 0x376   :  { %4600 = vmatprep.subr.bf16.mxu0 %v10366_v56  ;;  %4641 = vmatprep.subr.bf16.mxu1 %v10367_v58  ;;  %v10425_v56 = vld [vmem:[#allocation125_spill] sm:$0xff]  ;;  %v10426_v58 = vld [vmem:[#allocation96_spill] sm:$0xff] }
 0x378   :  { %4551 = vmatmul.mubr.bf16.vlgmr.msra.gmra.mrb[48].mxu0 %v9341_v50  ;;  %4592 = vmatmul.mubr.bf16.vlgmr.msra.gmra.mrb[4].mxu1 %v9341_v50 }
 0x379   :  { %4601 = vmatpush1.bf16.msra.mxu0 %v10368_v60  ;;  %4642 = vmatpush1.bf16.msra.mxu1 %v10369_v62  ;;  %v10427_v60 = vld [vmem:[#allocation127_spill] sm:$0xff]  ;;  %v10428_v62 = vld [vmem:[#allocation98_spill] sm:$0xff] }
 0x37a   :  { %4602 = vmatprep.subr.bf16.mxu0 %v10370_v1  ;;  %4643 = vmatprep.subr.bf16.mxu1 %v10371_v3  ;;  %v10429_v1 = vld [vmem:[#allocation129_spill] sm:$0xff]  ;;  %v10430_v3 = vld [vmem:[#allocation100_spill] sm:$0xff] }
 0x37b   :  { %4632 = vmatprep.mubr.bf16.mxu0 %v10075_v49  ;;  %4673 = vmatprep.mubr.bf16.mxu1 %v10075_v49 }
 0x37d   :  { %4603 = vmatpush1.bf16.msra.mxu0 %v10372_v5  ;;  %4644 = vmatpush1.bf16.msra.mxu1 %v10373_v7  ;;  %v10431_v5 = vld [vmem:[#allocation131_spill] sm:$0xff]  ;;  %v10432_v7 = vld [vmem:[#allocation102_spill] sm:$0xff] }
 0x37e   :  { %4604 = vmatprep.subr.bf16.mxu0 %v10374_v9  ;;  %4645 = vmatprep.subr.bf16.mxu1 %v10375_v11  ;;  %v10433_v9 = vld [vmem:[#allocation133_spill] sm:$0xff]  ;;  %v10434_v11 = vld [vmem:[#allocation104_spill] sm:$0xff] }
 0x381   :  { %4605 = vmatpush1.bf16.msra.mxu0 %v10376_v13  ;;  %4646 = vmatpush1.bf16.msra.mxu1 %v10377_v16  ;;  %v10435_v13 = vld [vmem:[#allocation135_spill] sm:$0xff]  ;;  %v10436_v16 = vld [vmem:[#allocation106_spill] sm:$0xff] }
 0x382   :  { %4606 = vmatprep.subr.bf16.mxu0 %v10378_v19  ;;  %4647 = vmatprep.subr.bf16.mxu1 %v10379_v21  ;;  %v10437_v19 = vld [vmem:[#allocation137_spill] sm:$0xff]  ;;  %v10438_v21 = vld [vmem:[#allocation108_spill] sm:$0xff] }
 0x385   :  { %4607 = vmatpush1.bf16.msra.mxu0 %v10380_v23  ;;  %4648 = vmatpush1.bf16.msra.mxu1 %v10381_v25  ;;  %v10439_v23 = vld [vmem:[#allocation139_spill] sm:$0xff]  ;;  %v10440_v25 = vld [vmem:[#allocation110_spill] sm:$0xff] }
 0x386   :  { %4608 = vmatprep.subr.bf16.mxu0 %v10382_v27  ;;  %4649 = vmatprep.subr.bf16.mxu1 %v10383_v29  ;;  %v10441_v27 = vld [vmem:[#allocation141_spill] sm:$0xff]  ;;  %v10442_v29 = vld [vmem:[#allocation112_spill] sm:$0xff] }
 0x389   :  { %4609 = vmatpush1.bf16.msra.mxu0 %v10384_v31  ;;  %4650 = vmatpush1.bf16.msra.mxu1 %v10385_v33  ;;  %v10443_v31 = vld [vmem:[#allocation143_spill] sm:$0xff]  ;;  %v10444_v33 = vld [vmem:[#allocation114_spill] sm:$0xff] }
 0x38a   :  { %4610 = vmatprep.subr.bf16.mxu0 %v10386_v36  ;;  %4651 = vmatprep.subr.bf16.mxu1 %v10387_v14  ;;  %v10445_v36 = vld [vmem:[#allocation145_spill] sm:$0xff]  ;;  %v10446_v14 = vld [vmem:[#allocation116_spill] sm:$0xff] }
 0x38d   :  { %4611 = vmatpush1.bf16.msra.mxu0 %v10388_v17  ;;  %4652 = vmatpush1.bf16.msra.mxu1 %v10389_v18  ;;  %v10447_v17 = vld [vmem:[#allocation147_spill] sm:$0xff]  ;;  %v10448_v18 = vld [vmem:[#allocation118_spill] sm:$0xff] }
 0x38e   :  { %4612 = vmatprep.subr.bf16.mxu0 %v10390_v41  ;;  %4653 = vmatprep.subr.bf16.mxu1 %v10391_v20  ;;  %v10449_v41 = vld [vmem:[#allocation149_spill] sm:$0xff]  ;;  %v10450_v20 = vld [vmem:[#allocation120_spill] sm:$0xff] }
 0x391   :  { %4613 = vmatpush1.bf16.msra.mxu0 %v10392_v22  ;;  %4654 = vmatpush1.bf16.msra.mxu1 %v10393_v24  ;;  %v10451_v22 = vld [vmem:[#allocation151_spill] sm:$0xff]  ;;  %v10452_v24 = vld [vmem:[#allocation122_spill] sm:$0xff] }
 0x392   :  { %4614 = vmatprep.subr.bf16.mxu0 %v10394_v26  ;;  %4655 = vmatprep.subr.bf16.mxu1 %v10395_v28  ;;  %v10453_v26 = vld [vmem:[#allocation153_spill] sm:$0xff]  ;;  %v10454_v28 = vld [vmem:[#allocation124_spill] sm:$0xff] }
 0x395   :  { %4615 = vmatpush1.bf16.msra.mxu0 %v10396_v30  ;;  %4656 = vmatpush1.bf16.msra.mxu1 %v10397_v32  ;;  %v10455_v30 = vld [vmem:[#allocation155_spill] sm:$0xff]  ;;  %v10456_v32 = vld [vmem:[#allocation126_spill] sm:$0xff] }
 0x396   :  { %4682 = vmatprep.subr.bf16.mxu0 %v10398_v34  ;;  %4723 = vmatprep.subr.bf16.mxu1 %v10399_v35  ;;  %v10457_v34 = vld [vmem:[#allocation157_spill] sm:$0xff]  ;;  %v10458_v35 = vld [vmem:[#allocation128_spill] sm:$0xff] }
 0x398   :  { %4633 = vmatmul.mubr.bf16.vlgmr.msra.gmra.mrb[0].mxu0 %v9341_v50  ;;  %4674 = vmatmul.mubr.bf16.vlgmr.msra.gmra.mrb[8].mxu1 %v9341_v50 }
 0x399   :  { %4683 = vmatpush1.bf16.msra.mxu0 %v10400_v37  ;;  %4724 = vmatpush1.bf16.msra.mxu1 %v10401_v39  ;;  %v10459_v37 = vld [vmem:[#allocation159_spill] sm:$0xff]  ;;  %v10460_v39 = vld [vmem:[#allocation130_spill] sm:$0xff] }
 0x39a   :  { %4684 = vmatprep.subr.bf16.mxu0 %v10402_v42  ;;  %4725 = vmatprep.subr.bf16.mxu1 %v10403_v47  ;;  %v10461_v42 = vld [vmem:[#allocation161_spill] sm:$0xff]  ;;  %v10462_v47 = vld [vmem:[#allocation132_spill] sm:$0xff] }
 0x39b   :  { %4714 = vmatprep.mubr.bf16.mxu0 %v10075_v49  ;;  %4755 = vmatprep.mubr.bf16.mxu1 %v10075_v49 }
 0x39d   :  { %4685 = vmatpush1.bf16.msra.mxu0 %v10404_v51  ;;  %4726 = vmatpush1.bf16.msra.mxu1 %v10405_v55  ;;  %v10463_v51 = vld [vmem:[#allocation163_spill] sm:$0xff]  ;;  %v10464_v55 = vld [vmem:[#allocation134_spill] sm:$0xff] }
 0x39e   :  { %4686 = vmatprep.subr.bf16.mxu0 %v10406_v57  ;;  %4727 = vmatprep.subr.bf16.mxu1 %v10407_v59  ;;  %v10465_v57 = vld [vmem:[#allocation165_spill] sm:$0xff]  ;;  %v10466_v59 = vld [vmem:[#allocation136_spill] sm:$0xff] }
 0x3a1   :  { %4687 = vmatpush1.bf16.msra.mxu0 %v10408_v61  ;;  %4728 = vmatpush1.bf16.msra.mxu1 %v10409_v63  ;;  %v10467_v61 = vld [vmem:[#allocation167_spill] sm:$0xff]  ;;  %v10468_v63 = vld [vmem:[#allocation138_spill] sm:$0xff] }
 0x3a2   :  { %4688 = vmatprep.subr.bf16.mxu0 %v10410_v2  ;;  %4729 = vmatprep.subr.bf16.mxu1 %v10411_v4  ;;  %v10469_v2 = vld [vmem:[#allocation169_spill] sm:$0xff]  ;;  %v10470_v4 = vld [vmem:[#allocation140_spill] sm:$0xff] }
 0x3a5   :  { %4689 = vmatpush1.bf16.msra.mxu0 %v10412_v6  ;;  %4730 = vmatpush1.bf16.msra.mxu1 %v10413_v8  ;;  %v10471_v6 = vld [vmem:[#allocation171_spill] sm:$0xff]  ;;  %v10472_v8 = vld [vmem:[#allocation142_spill] sm:$0xff] }
 0x3a6   :  { %4690 = vmatprep.subr.bf16.mxu0 %v10414_v12  ;;  %4731 = vmatprep.subr.bf16.mxu1 %v10415_v53  ;;  %v10473_v12 = vld [vmem:[#allocation173_spill] sm:$0xff]  ;;  %v10474_v53 = vld [vmem:[#allocation144_spill] sm:$0xff] }
 0x3a9   :  { %4691 = vmatpush1.bf16.msra.mxu0 %v10416_v15  ;;  %4732 = vmatpush1.bf16.msra.mxu1 %v10417_v43  ;;  %v10475_v15 = vld [vmem:[#allocation175_spill] sm:$0xff]  ;;  %v10476_v43 = vld [vmem:[#allocation146_spill] sm:$0xff] }
 0x3aa   :  { %4692 = vmatprep.subr.bf16.mxu0 %v10418_v38  ;;  %4733 = vmatprep.subr.bf16.mxu1 %v10419_v40  ;;  %v10477_v38 = vld [vmem:[#allocation177_spill] sm:$0xff]  ;;  %v10478_v40 = vld [vmem:[#allocation148_spill] sm:$0xff] }
 0x3ad   :  { %4693 = vmatpush1.bf16.msra.mxu0 %v10420_v44  ;;  %4734 = vmatpush1.bf16.msra.mxu1 %v10421_v46  ;;  %v10479_v44 = vld [vmem:[#allocation179_spill] sm:$0xff]  ;;  %v10480_v46 = vld [vmem:[#allocation150_spill] sm:$0xff] }
 0x3ae   :  { %4694 = vmatprep.subr.bf16.mxu0 %v10422_v48  ;;  %4735 = vmatprep.subr.bf16.mxu1 %v10423_v52  ;;  %v10481_v48 = vld [vmem:[#allocation181_spill] sm:$0xff]  ;;  %v10482_v52 = vld [vmem:[#allocation152_spill] sm:$0xff] }
 0x3b1   :  { %4695 = vmatpush1.bf16.msra.mxu0 %v10424_v54  ;;  %4736 = vmatpush1.bf16.msra.mxu1 %v10425_v56  ;;  %v10483_v54 = vld [vmem:[#allocation183_spill] sm:$0xff]  ;;  %v10484_v56 = vld [vmem:[#allocation154_spill] sm:$0xff] }
 0x3b2   :  { %4696 = vmatprep.subr.bf16.mxu0 %v10426_v58  ;;  %4737 = vmatprep.subr.bf16.mxu1 %v10427_v60  ;;  %v10485_v58 = vld [vmem:[#allocation185_spill] sm:$0xff]  ;;  %v10486_v60 = vld [vmem:[#allocation156_spill] sm:$0xff] }
 0x3b5   :  { %4697 = vmatpush1.bf16.msra.mxu0 %v10428_v62  ;;  %4738 = vmatpush1.bf16.msra.mxu1 %v10429_v1  ;;  %v10487_v62 = vld [vmem:[#allocation187_spill] sm:$0xff]  ;;  %v10488_v1 = vld [vmem:[#allocation158_spill] sm:$0xff] }
 0x3b6   :  { %4764 = vmatprep.subr.bf16.mxu0 %v10430_v3  ;;  %4805 = vmatprep.subr.bf16.mxu1 %v10431_v5  ;;  %v10489_v3 = vld [vmem:[#allocation189_spill] sm:$0xff]  ;;  %v10490_v5 = vld [vmem:[#allocation160_spill] sm:$0xff] }
 0x3b8   :  { %4715 = vmatmul.mubr.bf16.vlgmr.msra.gmra.mrb[4].mxu0 %v9341_v50  ;;  %4756 = vmatmul.mubr.bf16.vlgmr.msra.gmra.mrb[12].mxu1 %v9341_v50 }
 0x3b9   :  { %4765 = vmatpush1.bf16.msra.mxu0 %v10432_v7  ;;  %4806 = vmatpush1.bf16.msra.mxu1 %v10433_v9  ;;  %v10491_v7 = vld [vmem:[#allocation191_spill] sm:$0xff]  ;;  %v10492_v9 = vld [vmem:[#allocation162_spill] sm:$0xff] }
 0x3ba   :  { %4766 = vmatprep.subr.bf16.mxu0 %v10434_v11  ;;  %4807 = vmatprep.subr.bf16.mxu1 %v10435_v13  ;;  %v10493_v11 = vld [vmem:[#allocation193_spill] sm:$0xff]  ;;  %v10494_v13 = vld [vmem:[#allocation164_spill] sm:$0xff] }
 0x3bb   :  { %4796 = vmatprep.mubr.bf16.mxu0 %v10075_v49  ;;  %4837 = vmatprep.mubr.bf16.mxu1 %v10075_v49 }
 0x3bd   :  { %4767 = vmatpush1.bf16.msra.mxu0 %v10436_v16  ;;  %4808 = vmatpush1.bf16.msra.mxu1 %v10437_v19  ;;  %v10495_v16 = vld [vmem:[#allocation195_spill] sm:$0xff]  ;;  %v10496_v19 = vld [vmem:[#allocation166_spill] sm:$0xff] }
 0x3be   :  { %4768 = vmatprep.subr.bf16.mxu0 %v10438_v21  ;;  %4809 = vmatprep.subr.bf16.mxu1 %v10439_v23  ;;  %v10497_v21 = vld [vmem:[#allocation197_spill] sm:$0xff]  ;;  %v10498_v23 = vld [vmem:[#allocation168_spill] sm:$0xff] }
 0x3c1   :  { %4769 = vmatpush1.bf16.msra.mxu0 %v10440_v25  ;;  %4810 = vmatpush1.bf16.msra.mxu1 %v10441_v27  ;;  %v10499_v25 = vld [vmem:[#allocation199_spill] sm:$0xff]  ;;  %v10500_v27 = vld [vmem:[#allocation170_spill] sm:$0xff] }
 0x3c2   :  { %4770 = vmatprep.subr.bf16.mxu0 %v10442_v29  ;;  %4811 = vmatprep.subr.bf16.mxu1 %v10443_v31  ;;  %v10501_v29 = vld [vmem:[#allocation201_spill] sm:$0xff]  ;;  %v10502_v31 = vld [vmem:[#allocation172_spill] sm:$0xff] }
 0x3c5   :  { %4771 = vmatpush1.bf16.msra.mxu0 %v10444_v33  ;;  %4812 = vmatpush1.bf16.msra.mxu1 %v10445_v36  ;;  %v10503_v33 = vld [vmem:[#allocation203_spill] sm:$0xff]  ;;  %v10504_v36 = vld [vmem:[#allocation174_spill] sm:$0xff] }
 0x3c6   :  { %4772 = vmatprep.subr.bf16.mxu0 %v10446_v14  ;;  %4813 = vmatprep.subr.bf16.mxu1 %v10447_v17  ;;  %v10505_v14 = vld [vmem:[#allocation205_spill] sm:$0xff]  ;;  %v10506_v17 = vld [vmem:[#allocation176_spill] sm:$0xff] }
 0x3c9   :  { %4773 = vmatpush1.bf16.msra.mxu0 %v10448_v18  ;;  %4814 = vmatpush1.bf16.msra.mxu1 %v10449_v41  ;;  %v10507_v18 = vld [vmem:[#allocation207_spill] sm:$0xff]  ;;  %v10508_v41 = vld [vmem:[#allocation178_spill] sm:$0xff] }
 0x3ca   :  { %4774 = vmatprep.subr.bf16.mxu0 %v10450_v20  ;;  %4815 = vmatprep.subr.bf16.mxu1 %v10451_v22  ;;  %v10509_v20 = vld [vmem:[#allocation209_spill] sm:$0xff]  ;;  %v10510_v22 = vld [vmem:[#allocation180_spill] sm:$0xff] }
 0x3cd   :  { %4775 = vmatpush1.bf16.msra.mxu0 %v10452_v24  ;;  %4816 = vmatpush1.bf16.msra.mxu1 %v10453_v26  ;;  %v10511_v24 = vld [vmem:[#allocation211_spill] sm:$0xff]  ;;  %v10512_v26 = vld [vmem:[#allocation182_spill] sm:$0xff] }
 0x3ce   :  { %4776 = vmatprep.subr.bf16.mxu0 %v10454_v28  ;;  %4817 = vmatprep.subr.bf16.mxu1 %v10455_v30  ;;  %v10513_v28 = vld [vmem:[#allocation213_spill] sm:$0xff]  ;;  %v10514_v30 = vld [vmem:[#allocation184_spill] sm:$0xff] }
 0x3d1   :  { %4777 = vmatpush1.bf16.msra.mxu0 %v10456_v32  ;;  %4818 = vmatpush1.bf16.msra.mxu1 %v10457_v34  ;;  %v10515_v32 = vld [vmem:[#allocation215_spill] sm:$0xff]  ;;  %v10516_v34 = vld [vmem:[#allocation186_spill] sm:$0xff] }
 0x3d2   :  { %4778 = vmatprep.subr.bf16.mxu0 %v10458_v35  ;;  %4819 = vmatprep.subr.bf16.mxu1 %v10459_v37  ;;  %v10517_v35 = vld [vmem:[#allocation217_spill] sm:$0xff]  ;;  %v10518_v37 = vld [vmem:[#allocation188_spill] sm:$0xff] }
 0x3d5   :  { %4779 = vmatpush1.bf16.msra.mxu0 %v10460_v39  ;;  %4820 = vmatpush1.bf16.msra.mxu1 %v10461_v42  ;;  %v10519_v39 = vld [vmem:[#allocation219_spill] sm:$0xff]  ;;  %v10520_v42 = vld [vmem:[#allocation190_spill] sm:$0xff] }
 0x3d6   :  { %4846 = vmatprep.subr.bf16.mxu0 %v10462_v47  ;;  %4887 = vmatprep.subr.bf16.mxu1 %v10463_v51  ;;  %v10521_v47 = vld [vmem:[#allocation221_spill] sm:$0xff]  ;;  %v10522_v51 = vld [vmem:[#allocation192_spill] sm:$0xff] }
 0x3d8   :  { %4797 = vmatmul.mubr.bf16.vlgmr.msra.gmra.mrb[8].mxu0 %v9341_v50  ;;  %4838 = vmatmul.mubr.bf16.vlgmr.msra.gmra.mrb[16].mxu1 %v9341_v50 }
 0x3d9   :  { %4847 = vmatpush1.bf16.msra.mxu0 %v10464_v55  ;;  %4888 = vmatpush1.bf16.msra.mxu1 %v10465_v57  ;;  %v10523_v55 = vld [vmem:[#allocation223_spill] sm:$0xff]  ;;  %v10524_v57 = vld [vmem:[#allocation194_spill] sm:$0xff] }
 0x3da   :  { %4848 = vmatprep.subr.bf16.mxu0 %v10466_v59  ;;  %4889 = vmatprep.subr.bf16.mxu1 %v10467_v61  ;;  %v10525_v59 = vld [vmem:[#allocation225_spill] sm:$0xff]  ;;  %v10526_v61 = vld [vmem:[#allocation196_spill] sm:$0xff] }
 0x3db   :  { %4878 = vmatprep.mubr.bf16.mxu0 %v10075_v49  ;;  %4919 = vmatprep.mubr.bf16.mxu1 %v10075_v49 }
 0x3dd   :  { %4849 = vmatpush1.bf16.msra.mxu0 %v10468_v63  ;;  %4890 = vmatpush1.bf16.msra.mxu1 %v10469_v2  ;;  %v10527_v63 = vld [vmem:[#allocation227_spill] sm:$0xff]  ;;  %v10528_v2 = vld [vmem:[#allocation198_spill] sm:$0xff] }
 0x3de   :  { %4850 = vmatprep.subr.bf16.mxu0 %v10470_v4  ;;  %4891 = vmatprep.subr.bf16.mxu1 %v10471_v6  ;;  %v10529_v4 = vld [vmem:[#allocation229_spill] sm:$0xff]  ;;  %v10530_v6 = vld [vmem:[#allocation200_spill] sm:$0xff] }
 0x3e1   :  { %4851 = vmatpush1.bf16.msra.mxu0 %v10472_v8  ;;  %4892 = vmatpush1.bf16.msra.mxu1 %v10473_v12  ;;  %v10531_v8 = vld [vmem:[#allocation231_spill] sm:$0xff]  ;;  %v10532_v12 = vld [vmem:[#allocation202_spill] sm:$0xff] }
 0x3e2   :  { %4852 = vmatprep.subr.bf16.mxu0 %v10474_v53  ;;  %4893 = vmatprep.subr.bf16.mxu1 %v10475_v15  ;;  %v10533_v53 = vld [vmem:[#allocation233_spill] sm:$0xff]  ;;  %v10534_v15 = vld [vmem:[#allocation204_spill] sm:$0xff] }
 0x3e5   :  { %4853 = vmatpush1.bf16.msra.mxu0 %v10476_v43  ;;  %4894 = vmatpush1.bf16.msra.mxu1 %v10477_v38  ;;  %v10535_v43 = vld [vmem:[#allocation235_spill] sm:$0xff]  ;;  %v10536_v38 = vld [vmem:[#allocation206_spill] sm:$0xff] }
 0x3e6   :  { %4854 = vmatprep.subr.bf16.mxu0 %v10478_v40  ;;  %4895 = vmatprep.subr.bf16.mxu1 %v10479_v44  ;;  %v10537_v40 = vld [vmem:[#allocation237_spill] sm:$0xff]  ;;  %v10538_v44 = vld [vmem:[#allocation208_spill] sm:$0xff] }
 0x3e9   :  { %4855 = vmatpush1.bf16.msra.mxu0 %v10480_v46  ;;  %4896 = vmatpush1.bf16.msra.mxu1 %v10481_v48  ;;  %v10539_v46 = vld [vmem:[#allocation239_spill] sm:$0xff]  ;;  %v10540_v48 = vld [vmem:[#allocation210_spill] sm:$0xff] }
 0x3ea   :  { %4856 = vmatprep.subr.bf16.mxu0 %v10482_v52  ;;  %4897 = vmatprep.subr.bf16.mxu1 %v10483_v54  ;;  %v10541_v52 = vld [vmem:[#allocation241_spill] sm:$0xff]  ;;  %v10542_v54 = vld [vmem:[#allocation212_spill] sm:$0xff] }
 0x3ed   :  { %4857 = vmatpush1.bf16.msra.mxu0 %v10484_v56  ;;  %4898 = vmatpush1.bf16.msra.mxu1 %v10485_v58  ;;  %v10543_v56 = vld [vmem:[#allocation243_spill] sm:$0xff]  ;;  %v10544_v58 = vld [vmem:[#allocation214_spill] sm:$0xff] }
 0x3ee   :  { %4858 = vmatprep.subr.bf16.mxu0 %v10486_v60  ;;  %4899 = vmatprep.subr.bf16.mxu1 %v10487_v62  ;;  %v10545_v60 = vld [vmem:[#allocation245_spill] sm:$0xff]  ;;  %v10546_v62 = vld [vmem:[#allocation216_spill] sm:$0xff] }
 0x3f1   :  { %4859 = vmatpush1.bf16.msra.mxu0 %v10488_v1  ;;  %4900 = vmatpush1.bf16.msra.mxu1 %v10489_v3  ;;  %v10547_v1 = vld [vmem:[#allocation247_spill] sm:$0xff]  ;;  %v10548_v3 = vld [vmem:[#allocation218_spill] sm:$0xff] }
 0x3f2   :  { %4860 = vmatprep.subr.bf16.mxu0 %v10490_v5  ;;  %4901 = vmatprep.subr.bf16.mxu1 %v10491_v7  ;;  %v10549_v5 = vld [vmem:[#allocation249_spill] sm:$0xff]  ;;  %v10550_v7 = vld [vmem:[#allocation220_spill] sm:$0xff] }
 0x3f5   :  { %4861 = vmatpush1.bf16.msra.mxu0 %v10492_v9  ;;  %4902 = vmatpush1.bf16.msra.mxu1 %v10493_v11  ;;  %v10551_v9 = vld [vmem:[#allocation251_spill] sm:$0xff]  ;;  %v10552_v11 = vld [vmem:[#allocation222_spill] sm:$0xff] }
 0x3f6   :  { %4928 = vmatprep.subr.bf16.mxu0 %v10494_v13  ;;  %4969 = vmatprep.subr.bf16.mxu1 %v10495_v16  ;;  %v10553_v13 = vld [vmem:[#allocation253_spill] sm:$0xff]  ;;  %v10554_v16 = vld [vmem:[#allocation224_spill] sm:$0xff] }
 0x3f8   :  { %4879 = vmatmul.mubr.bf16.vlgmr.msra.gmra.mrb[12].mxu0 %v9341_v50  ;;  %4920 = vmatmul.mubr.bf16.vlgmr.msra.gmra.mrb[20].mxu1 %v9341_v50 }
 0x3f9   :  { %4929 = vmatpush1.bf16.msra.mxu0 %v10496_v19  ;;  %4970 = vmatpush1.bf16.msra.mxu1 %v10497_v21  ;;  %v10555_v19 = vld [vmem:[#allocation255_spill] sm:$0xff]  ;;  %v10556_v21 = vld [vmem:[#allocation226_spill] sm:$0xff] }
 0x3fa   :  { %4930 = vmatprep.subr.bf16.mxu0 %v10498_v23  ;;  %4971 = vmatprep.subr.bf16.mxu1 %v10499_v25  ;;  %v10557_v23 = vld [vmem:[#allocation257_spill] sm:$0xff]  ;;  %v10558_v25 = vld [vmem:[#allocation228_spill] sm:$0xff] }
 0x3fb   :  { %4960 = vmatprep.mubr.bf16.mxu0 %v10075_v49  ;;  %5001 = vmatprep.mubr.bf16.mxu1 %v10075_v49 }
 0x3fd   :  { %4931 = vmatpush1.bf16.msra.mxu0 %v10500_v27  ;;  %4972 = vmatpush1.bf16.msra.mxu1 %v10501_v29  ;;  %v10559_v27 = vld [vmem:[#allocation259_spill] sm:$0xff]  ;;  %v10560_v29 = vld [vmem:[#allocation230_spill] sm:$0xff] }
 0x3fe   :  { %4932 = vmatprep.subr.bf16.mxu0 %v10502_v31  ;;  %4973 = vmatprep.subr.bf16.mxu1 %v10503_v33  ;;  %v10561_v31 = vld [vmem:[#allocation261_spill] sm:$0xff]  ;;  %v10562_v33 = vld [vmem:[#allocation232_spill] sm:$0xff] }
 0x401   :  { %4933 = vmatpush1.bf16.msra.mxu0 %v10504_v36  ;;  %4974 = vmatpush1.bf16.msra.mxu1 %v10505_v14  ;;  %v10563_v36 = vld [vmem:[#allocation263_spill] sm:$0xff]  ;;  %v5607_v14 = vlaneseq }
 0x402   :  { %4934 = vmatprep.subr.bf16.mxu0 %v10506_v17  ;;  %4975 = vmatprep.subr.bf16.mxu1 %v10507_v18  ;;  %v10564_v17 = vld [vmem:[#allocation234_spill] sm:$0xff]  ;;  %v10565_v18 = vld [vmem:[#allocation265_spill] sm:$0xff] }
 0x405   :  { %4935 = vmatpush1.bf16.msra.mxu0 %v10508_v41  ;;  %4976 = vmatpush1.bf16.msra.mxu1 %v10509_v20  ;;  %v10566_v41 = vld [vmem:[#allocation236_spill] sm:$0xff]  ;;  %v10567_v20 = vld [vmem:[#allocation267_spill] sm:$0xff] }
 0x406   :  { %4936 = vmatprep.subr.bf16.mxu0 %v10510_v22  ;;  %4977 = vmatprep.subr.bf16.mxu1 %v10511_v24  ;;  %v9575_v22 = vshrl.u32 %v5607_v14, 7  ;;  %v10568_v24 = vld [vmem:[#allocation238_spill] sm:$0xff]  ;;  %v10595_v14 = vld [vmem:[#allocation280_spill] sm:$0xff] }
 0x409   :  { %4937 = vmatpush1.bf16.msra.mxu0 %v10512_v26  ;;  %4978 = vmatpush1.bf16.msra.mxu1 %v10513_v28  ;;  %v10569_v26 = vld [vmem:[#allocation268_spill] sm:$0xff] }
 0x40a   :  { %4938 = vmatprep.subr.bf16.mxu0 %v10514_v30  ;;  %4979 = vmatprep.subr.bf16.mxu1 %v10515_v32  ;;  %v10570_v28 = vld [vmem:[#allocation240_spill] sm:$0xff]  ;;  %v10571_v30 = vld [vmem:[#allocation269_spill] sm:$0xff]  ;;  %v9582_v32 = vsub.s32 2, %v9575_v22 }
 0x40d   :  { %4939 = vmatpush1.bf16.msra.mxu0 %v10516_v34  ;;  %4980 = vmatpush1.bf16.msra.mxu1 %v10517_v35  ;;  %v10572_v34 = vld [vmem:[#allocation242_spill] sm:$0xff] }
 0x40e   :  { %4940 = vmatprep.subr.bf16.mxu0 %v10518_v37  ;;  %4981 = vmatprep.subr.bf16.mxu1 %v10519_v39  ;;  %v10573_v35 = vld [vmem:[#allocation270_spill] sm:$0xff]  ;;  %v9589_v39 = vsub.s32 3, %v9575_v22 }
 0x40f   :  { %v9586_v37 = vld [vmem:[#allocation8] sm:$0xff] }
 0x411   :  { %4941 = vmatpush1.bf16.msra.mxu0 %v10520_v42  ;;  %4982 = vmatpush1.bf16.msra.mxu1 %v10521_v47  ;;  %v10574_v42 = vld [vmem:[#allocation244_spill] sm:$0xff]  ;;  %v10575_v47 = vld [vmem:[#allocation271_spill] sm:$0xff] }
 0x412   :  { %4942 = vmatprep.subr.bf16.mxu0 %v10522_v51  ;;  %4983 = vmatprep.subr.bf16.mxu1 %v10523_v55  ;;  %v9594_v51 = vsub.s32 0, %v9575_v22  ;;  %v9597_v55 = vsub.s32 1, %v9575_v22 }
 0x415   :  { %4943 = vmatpush1.bf16.msra.mxu0 %v10524_v57  ;;  %4984 = vmatpush1.bf16.msra.mxu1 %v10525_v59  ;;  %v5618_v57 = vrot.slane %v9586_v37, %v9582_v32  ;;  %v10576_v59 = vld [vmem:[#allocation246_spill] sm:$0xff] }
 0x416   :  { %5010 = vmatprep.subr.bf16.mxu0 %v10526_v61  ;;  %5051 = vmatprep.subr.bf16.mxu1 %v10527_v63  ;;  %v10577_v61 = vld [vmem:[#allocation272_spill] sm:$0xff]  ;;  %v5622_v63 = vrot.slane %v9586_v37, %v9589_v39 }
 0x418   :  { %4961 = vmatmul.mubr.bf16.vlgmr.msra.gmra.mrb[16].mxu0 %v9341_v50  ;;  %5002 = vmatmul.mubr.bf16.vlgmr.msra.gmra.mrb[24].mxu1 %v9341_v50 }
 0x419   :  { %5011 = vmatpush1.bf16.msra.mxu0 %v10528_v2  ;;  %5052 = vmatpush1.bf16.msra.mxu1 %v10529_v4  ;;  %v5610_v2 = vrot.slane %v9586_v37, %v9594_v51  ;;  %v10578_v4 = vld [vmem:[#allocation248_spill] sm:$0xff] }
 0x41a   :  { %5012 = vmatprep.subr.bf16.mxu0 %v10530_v6  ;;  %5053 = vmatprep.subr.bf16.mxu1 %v10531_v8  ;;  %v10579_v6 = vld [vmem:[#allocation273_spill] sm:$0xff] }
 0x41b   :  { %5042 = vmatprep.mubr.bf16.mxu0 %v10075_v49  ;;  %5083 = vmatprep.mubr.bf16.mxu1 %v10075_v49 }
 0x41d   :  { %5013 = vmatpush1.bf16.msra.mxu0 %v10532_v12  ;;  %5054 = vmatpush1.bf16.msra.mxu1 %v10533_v53  ;;  %v5614_v53 = vrot.slane %v9586_v37, %v9597_v55 }
 0x41e   :  { %5014 = vmatprep.subr.bf16.mxu0 %v10534_v15  ;;  %5055 = vmatprep.subr.bf16.mxu1 %v10535_v43  ;;  %v10580_v15 = vld [vmem:[#allocation15_spill] sm:$0xff] }
 0x421   :  { %5015 = vmatpush1.bf16.msra.mxu0 %v10536_v38  ;;  %5056 = vmatpush1.bf16.msra.mxu1 %v10537_v40 }
 0x422   :  { %5016 = vmatprep.subr.bf16.mxu0 %v10538_v44  ;;  %5057 = vmatprep.subr.bf16.mxu1 %v10539_v46  ;;  %v10581_v46 = vld [vmem:[#allocation16_spill] sm:$0xff] }
 0x425   :  { %5017 = vmatpush1.bf16.msra.mxu0 %v10540_v48  ;;  %5058 = vmatpush1.bf16.msra.mxu1 %v10541_v52 }
 0x426   :  { %5018 = vmatprep.subr.bf16.mxu0 %v10542_v54  ;;  %5059 = vmatprep.subr.bf16.mxu1 %v10543_v56 }
 0x429   :  { %5019 = vmatpush1.bf16.msra.mxu0 %v10544_v58  ;;  %5060 = vmatpush1.bf16.msra.mxu1 %v10545_v60  ;;  %v10582_v58 = vld [vmem:[#allocation250_spill] sm:$0xff] }
 0x42a   :  { %5020 = vmatprep.subr.bf16.mxu0 %v10546_v62  ;;  %5061 = vmatprep.subr.bf16.mxu1 %v10547_v1  ;;  %v10583_v60 = vld [vmem:[#allocation274_spill] sm:$0xff] }
 0x42d   :  { %5021 = vmatpush1.bf16.msra.mxu0 %v10548_v3  ;;  %5062 = vmatpush1.bf16.msra.mxu1 %v10549_v5  ;;  %v10584_v5 = vld [vmem:[#allocation252_spill] sm:$0xff] }
 0x42e   :  { %5022 = vmatprep.subr.bf16.mxu0 %v10550_v7  ;;  %5063 = vmatprep.subr.bf16.mxu1 %v10551_v9  ;;  %v10585_v7 = vld [vmem:[#allocation275_spill] sm:$0xff] }
 0x431   :  { %5023 = vmatpush1.bf16.msra.mxu0 %v10552_v11  ;;  %5064 = vmatpush1.bf16.msra.mxu1 %v10553_v13  ;;  %v10586_v11 = vld [vmem:[#allocation254_spill] sm:$0xff]  ;;  %v10587_v13 = vld [vmem:[#allocation276_spill] sm:$0xff] }
 0x432   :  { %5024 = vmatprep.subr.bf16.mxu0 %v10554_v16  ;;  %5065 = vmatprep.subr.bf16.mxu1 %v10555_v19  ;;  %v10588_v16 = vld [vmem:[#allocation256_spill] sm:$0xff]  ;;  %v10589_v19 = vld [vmem:[#allocation277_spill] sm:$0xff] }
 0x435   :  { %5025 = vmatpush1.bf16.msra.mxu0 %v10556_v21  ;;  %5066 = vmatpush1.bf16.msra.mxu1 %v10557_v23  ;;  %v10590_v21 = vld [vmem:[#allocation258_spill] sm:$0xff] }
 0x436   :  { %5092 = vmatprep.subr.bf16.mxu0 %v10558_v25  ;;  %5133 = vmatprep.subr.bf16.mxu1 %v10559_v27  ;;  %v10591_v23 = vld [vmem:[#allocation278_spill] sm:$0xff]  ;;  %v10592_v25 = vld [vmem:[#allocation260_spill] sm:$0xff]  ;;  %v10593_v27 = vld [vmem:[#allocation279_spill] sm:$0xff] }
 0x438   :  { %5043 = vmatmul.mubr.bf16.vlgmr.msra.gmra.mrb[20].mxu0 %v9341_v50  ;;  %5084 = vmatmul.mubr.bf16.vlgmr.msra.gmra.mrb[28].mxu1 %v9341_v50 }
 0x439   :  { %5093 = vmatpush1.bf16.msra.mxu0 %v10560_v29  ;;  %5134 = vmatpush1.bf16.msra.mxu1 %v10561_v31 }
 0x43a   :  { %5094 = vmatprep.subr.bf16.mxu0 %v10562_v33  ;;  %5135 = vmatprep.subr.bf16.mxu1 %v10563_v36  ;;  %v10594_v36 = vld [vmem:[#allocation262_spill] sm:$0xff] }
 0x43b   :  { %5124 = vmatprep.mubr.bf16.mxu0 %v10075_v49  ;;  %5165 = vmatprep.mubr.bf16.mxu1 %v10075_v49 }
 0x43d   :  { %5095 = vmatpush1.bf16.msra.mxu0 %v10564_v17  ;;  %5136 = vmatpush1.bf16.msra.mxu1 %v10565_v18 }
 0x43e   :  { %5096 = vmatprep.subr.bf16.mxu0 %v10566_v41  ;;  %5137 = vmatprep.subr.bf16.mxu1 %v10567_v20  ;;  %v10596_v41 = vld [vmem:[#allocation264_spill] sm:$0xff]  ;;  %v10597_v20 = vld [vmem:[#allocation281_spill] sm:$0xff] }
 0x441   :  { %5097 = vmatpush1.bf16.msra.mxu0 %v10568_v24  ;;  %5138 = vmatpush1.bf16.msra.mxu1 %v10569_v26 }
 0x442   :  { %5098 = vmatprep.subr.bf16.mxu0 %v10570_v28  ;;  %5139 = vmatprep.subr.bf16.mxu1 %v10571_v30 }
 0x445   :  { %5099 = vmatpush1.bf16.msra.mxu0 %v10572_v34  ;;  %5140 = vmatpush1.bf16.msra.mxu1 %v10573_v35 }
 0x446   :  { %5100 = vmatprep.subr.bf16.mxu0 %v10574_v42  ;;  %5141 = vmatprep.subr.bf16.mxu1 %v10575_v47  ;;  %v10598_v42 = vld [vmem:[#allocation266_spill] sm:$0xff] }
 0x447   :  { %v10599_v47 = vld [vmem:[#allocation282_spill] sm:$0xff] }
 0x449   :  { %5101 = vmatpush1.bf16.msra.mxu0 %v10576_v59  ;;  %5142 = vmatpush1.bf16.msra.mxu1 %v10577_v61  ;;  %v7847_v61 = vld [vmem:[#allocation6 + $0x3a4] ss:$200 sps:$4 sm:$0xff]  }
 0x44a   :  { %5102 = vmatprep.subr.bf16.mxu0 %v10578_v4  ;;  %5143 = vmatprep.subr.bf16.mxu1 %v10579_v6  ;;  %v7848_v4 = vld [vmem:[#allocation6 + $0x3a0] ss:$200 sps:$4 sm:$0xff]   ;;  %v10601_v6 = vld [vmem:[#allocation284_spill] sm:$0xff] }
 0x44b   :  { %v4552_v8 = vpop.f32.mrb[48].mxu0  ;;  %v4593_v12 = vpop.f32.mrb[4].mxu1 }
 0x44c   :  { %v6598_v43 = vadd.f32 %v4552_v8, %v10580_v15  ;;  %v5859_v38 = vsub.f32 %v4593_v12, %v5618_v57  ;;  %v4554_v40 = vpop.f32.mrb[49].mxu0  ;;  %v4595_v44 = vpop.f32.mrb[5].mxu1  ;;  %v7849_v8 = vld [vmem:[#allocation6 + $0x534] ss:$200 sps:$4 sm:$0xff]   ;;  %v9642_v15 = vsub.s32 6, %v9575_v22 }
 0x44d   :  { %v6599_v48 = vadd.f32 %v4554_v40, %v10581_v46  ;;  %v5860_v52 = vsub.f32 %v4595_v44, %v5622_v63  ;;  %v4556_v54 = vpop.f32.mrb[50].mxu0  ;;  %v4597_v56 = vpop.f32.mrb[6].mxu1  ;;  %5103 = vmatpush1.bf16.msra.mxu0 %v10582_v58  ;;  %5144 = vmatpush1.bf16.msra.mxu1 %v10583_v60  ;;  %v10600_v63 = vld [vmem:[#allocation283_spill] sm:$0xff]  ;;  %v10602_v12 = vld [vmem:[#allocation285_spill] sm:$0xff]  ;;  %v9646_v40 = vsub.s32 5, %v9575_v22  ;;  %v9649_v44 = vsub.s32 7, %v9575_v22 }
 0x44e   :  { %v5857_v62 = vsub.f32 %v6598_v43, %v5610_v2  ;;  %7403 = vtanh.f32 %v5859_v38  ;;  %v4557_v1 = vpop.f32.mrb[51].mxu0  ;;  %v4598_v3 = vpop.f32.mrb[7].mxu1  ;;  %5104 = vmatprep.subr.bf16.mxu0 %v10584_v5  ;;  %5145 = vmatprep.subr.bf16.mxu1 %v10585_v7  ;;  %v7850_v43 = vld [vmem:[#allocation6 + $0x530] ss:$200 sps:$4 sm:$0xff]   ;;  %v10603_v38 = vld [vmem:[#allocation286_spill] sm:$0xff]  ;;  %v5634_v54 = vrot.slane %v9586_v37, %v9642_v15 }
 0x44f   :  { %v5858_v9 = vsub.f32 %v6599_v48, %v5614_v53  ;;  %7405 = vtanh.f32 %v5860_v52  ;;  %v9639_v53 = vsub.s32 4, %v9575_v22  ;;  %v7851_v46 = vld [vmem:[#allocation6 + $0x6c4] ss:$200 sps:$4 sm:$0xff]   ;;  %v7852_v56 = vld [vmem:[#allocation6 + $0x6c0] ss:$200 sps:$4 sm:$0xff]   ;;  %v10605_v58 = vld [vmem:[#allocation288_spill] sm:$0xff]  ;;  %v5630_v60 = vrot.slane %v9586_v37, %v9646_v40 }
 0x450   :  { %7407 = vtanh.f32 %v5857_v62  ;;  %v10604_v48 = vld [vmem:[#allocation287_spill] sm:$0xff]  ;;  %v5638_v22 = vrot.slane %v9586_v37, %v9649_v44  ;;  %v7853_v62 = vld [vmem:[#allocation6 + $0x854] ss:$200 sps:$4 sm:$0xff]  }
 0x451   :  { %7409 = vtanh.f32 %v5858_v9  ;;  %5105 = vmatpush1.bf16.msra.mxu0 %v10586_v11  ;;  %5146 = vmatpush1.bf16.msra.mxu1 %v10587_v13  ;;  %v5626_v52 = vrot.slane %v9586_v37, %v9639_v53  ;;  %v10606_v1 = vld [vmem:[#allocation289_spill] sm:$0xff] }
 0x452   :  { %5106 = vmatprep.subr.bf16.mxu0 %v10588_v16  ;;  %5147 = vmatprep.subr.bf16.mxu1 %v10589_v19 }
 0x455   :  { %5107 = vmatpush1.bf16.msra.mxu0 %v10590_v21  ;;  %5148 = vmatpush1.bf16.msra.mxu1 %v10591_v23 }
 0x456   :  { %5174 = vmatprep.subr.bf16.mxu0 %v10592_v25  ;;  %5215 = vmatprep.subr.bf16.mxu1 %v10593_v27  ;;  %v7854_v25 = vld [vmem:[#allocation6 + $0x850] ss:$200 sps:$4 sm:$0xff]   ;;  %v10607_v27 = vld [vmem:[#allocation290_spill] sm:$0xff] }
 0x458   :  { %v7404_v29 = vpop.eup %7403  ;;  %5125 = vmatmul.mubr.bf16.vlgmr.msra.gmra.mrb[24].mxu0 %v9341_v50  ;;  %5166 = vmatmul.mubr.bf16.vlgmr.msra.gmra.mrb[32].mxu1 %v9341_v50 }
 0x459   :  { %v7406_v31 = vpop.eup %7405  ;;  %v5959_v33 = vmul.f32 0.5, %v7404_v29  ;;  %5175 = vmatpush1.bf16.msra.mxu0 %v10594_v36  ;;  %5216 = vmatpush1.bf16.msra.mxu1 %v10595_v14  ;;  %v7856_v36 = vld [vmem:[#allocation6 + $0x9e0] ss:$200 sps:$4 sm:$0xff]   ;;  %v7857_v14 = vld [vmem:[#allocation6 + $0xb74] ss:$200 sps:$4 sm:$0xff]  }
 0x45a   :  { %v7408_v17 = vpop.eup %7407  ;;  %v5960_v18 = vmul.f32 0.5, %v7406_v31  ;;  %5176 = vmatprep.subr.bf16.mxu0 %v10596_v41  ;;  %5217 = vmatprep.subr.bf16.mxu1 %v10597_v20  ;;  %v7855_v31 = vld [vmem:[#allocation6 + $0x9e4] ss:$200 sps:$4 sm:$0xff]   ;;  %v7859_v41 = vld [vmem:[#allocation6 + $0x94] ss:$200 sps:$4 sm:$0xff]  }
 0x45b   :  { %v7410_v24 = vpop.eup %7409  ;;  %v5957_v26 = vmul.f32 0.5, %v7408_v17  ;;  %v6009_v28 = vadd.f32 0.5, %v5959_v33  ;;  %5206 = vmatprep.mubr.bf16.mxu0 %v10075_v49  ;;  %5247 = vmatprep.mubr.bf16.mxu1 %v10075_v49  ;;  %v10608_v33 = vld [vmem:[#allocation291_spill] sm:$0xff]  ;;  %v10609_v17 = vld [vmem:[#allocation292_spill] sm:$0xff]  ;;  %v10610_v20 = vld [vmem:[#allocation293_spill] sm:$0xff] }
 0x45c   :  { %v5958_v30 = vmul.f32 0.5, %v7410_v24  ;;  %v6010_v34 = vadd.f32 0.5, %v5960_v18  ;;  %v7858_v18 = vld [vmem:[#allocation6 + $0xb70] ss:$200 sps:$4 sm:$0xff]  }
 0x45d   :  { %v6007_v35 = vadd.f32 0.5, %v5957_v26  ;;  %5177 = vmatpush1.bf16.msra.mxu0 %v10598_v42  ;;  %5218 = vmatpush1.bf16.msra.mxu1 %v10599_v47 }
 0x45e   :  { %v6008_v57 = vadd.f32 0.5, %v5958_v30  ;;  %v6108_v59 = vcombine.low %v6009_v28, %v6010_v34  ;;  %5178 = vmatprep.subr.bf16.mxu0 %v7847_v61  ;;  %5219 = vmatprep.subr.bf16.mxu1 %v10600_v63 }
 0x460   :  { %v6107_v2 = vcombine.low %v6007_v35, %v6008_v57  ;;  %6158 = vst [vmem:[#allocation9 + $0x8] sm:$0x77] %v6108_v59  ;;  %v7861_v35 = vld [vmem:[#allocation6 + $0x224] ss:$200 sps:$4 sm:$0xff]  }
 0x461   :  { %5179 = vmatpush1.bf16.msra.mxu0 %v7848_v4  ;;  %5220 = vmatpush1.bf16.msra.mxu1 %v10601_v6  ;;  %v7863_v4 = vld [vmem:[#allocation6 + $0x228] ss:$200 sps:$4 sm:$0xff]   ;;  %v7864_v6 = vld [vmem:[#allocation6 + $0x3b4] ss:$200 sps:$4 sm:$0xff]  }
 0x462   :  { %6157 = vst [vmem:[#allocation9] sm:$0x77] %v6107_v2  ;;  %5180 = vmatprep.subr.bf16.mxu0 %v7849_v8  ;;  %5221 = vmatprep.subr.bf16.mxu1 %v10602_v12  ;;  %v7862_v2 = vld [vmem:[#allocation6 + $0x220] ss:$200 sps:$4 sm:$0xff]   ;;  %v7865_v8 = vld [vmem:[#allocation6 + $0x3bc] ss:$200 sps:$4 sm:$0xff]  }
 0x465   :  { %5181 = vmatpush1.bf16.msra.mxu0 %v7850_v43  ;;  %5222 = vmatpush1.bf16.msra.mxu1 %v10603_v38  ;;  %v7866_v38 = vld [vmem:[#allocation6 + $0x3b0] ss:$200 sps:$4 sm:$0xff]  }
 0x466   :  { %5182 = vmatprep.subr.bf16.mxu0 %v7851_v46  ;;  %5223 = vmatprep.subr.bf16.mxu1 %v10604_v48  ;;  %v7867_v46 = vld [vmem:[#allocation6 + $0x3b8] ss:$200 sps:$4 sm:$0xff]   ;;  %v7868_v48 = vld [vmem:[#allocation6 + $0x544] ss:$200 sps:$4 sm:$0xff]  }
 0x469   :  { %5183 = vmatpush1.bf16.msra.mxu0 %v7852_v56  ;;  %5224 = vmatpush1.bf16.msra.mxu1 %v10605_v58  ;;  %v7871_v56 = vld [vmem:[#allocation6 + $0x548] ss:$200 sps:$4 sm:$0xff]  }
 0x46a   :  { %5184 = vmatprep.subr.bf16.mxu0 %v7853_v62  ;;  %5225 = vmatprep.subr.bf16.mxu1 %v10606_v1  ;;  %v9674_v58 = vld [vmem:[#allocation8 + $0x8] sm:$0xff] }
 0x46b   :  { %v4634_v3 = vpop.f32.mrb[0].mxu0  ;;  %v4675_v5 = vpop.f32.mrb[8].mxu1  ;;  %v5642_v62 = vrot.slane %v9674_v58, %v9594_v51  ;;  %v5650_v1 = vrot.slane %v9674_v58, %v9582_v32 }
 0x46c   :  { %v5861_v7 = vsub.f32 %v4634_v3, %v5626_v52  ;;  %v5863_v9 = vsub.f32 %v4675_v5, %v5634_v54  ;;  %v4636_v11 = vpop.f32.mrb[1].mxu0  ;;  %v4677_v13 = vpop.f32.mrb[9].mxu1  ;;  %v7869_v52 = vld [vmem:[#allocation6 + $0x54c] ss:$200 sps:$4 sm:$0xff]   ;;  %v7870_v54 = vld [vmem:[#allocation6 + $0x540] ss:$200 sps:$4 sm:$0xff]  }
 0x46d   :  { %v5862_v16 = vsub.f32 %v4636_v11, %v5630_v60  ;;  %v5864_v19 = vsub.f32 %v4677_v13, %v5638_v22  ;;  %v4638_v21 = vpop.f32.mrb[2].mxu0  ;;  %v4679_v23 = vpop.f32.mrb[10].mxu1  ;;  %5185 = vmatpush1.bf16.msra.mxu0 %v7854_v25  ;;  %5226 = vmatpush1.bf16.msra.mxu1 %v10607_v27  ;;  %v7872_v60 = vld [vmem:[#allocation6 + $0x6d4] ss:$200 sps:$4 sm:$0xff]   ;;  %v7874_v3 = vld [vmem:[#allocation6 + $0x6d0] ss:$200 sps:$4 sm:$0xff]  }
 0x46e   :  { %7411 = vtanh.f32 %v5861_v7  ;;  %v4639_v37 = vpop.f32.mrb[3].mxu0  ;;  %v4680_v29 = vpop.f32.mrb[11].mxu1  ;;  %5186 = vmatprep.subr.bf16.mxu0 %v7855_v31  ;;  %5227 = vmatprep.subr.bf16.mxu1 %v10608_v33  ;;  %v7873_v22 = vld [vmem:[#allocation6 + $0x6dc] ss:$200 sps:$4 sm:$0xff]   ;;  %v7875_v5 = vld [vmem:[#allocation6 + $0x6d8] ss:$200 sps:$4 sm:$0xff]   ;;  %v5646_v7 = vrot.slane %v9674_v58, %v9597_v55 }
 0x46f   :  { %7413 = vtanh.f32 %v5863_v9  ;;  %v5654_v9 = vrot.slane %v9674_v58, %v9589_v39  ;;  %v7876_v11 = vld [vmem:[#allocation6 + $0x864] ss:$200 sps:$4 sm:$0xff]  }
 0x470   :  { %7415 = vtanh.f32 %v5862_v16  ;;  %v7877_v13 = vld [vmem:[#allocation6 + $0x86c] ss:$200 sps:$4 sm:$0xff]  }
 0x471   :  { %7417 = vtanh.f32 %v5864_v19  ;;  %5187 = vmatpush1.bf16.msra.mxu0 %v7856_v36  ;;  %5228 = vmatpush1.bf16.msra.mxu1 %v9219_v0  ;;  %v7860_v0 = vld [vmem:[#allocation6 + $0x90] ss:$200 sps:$4 sm:$0xff]   ;;  %v7878_v36 = vld [vmem:[#allocation6 + $0x860] ss:$200 sps:$4 sm:$0xff]  }
 0x472   :  { %5188 = vmatprep.subr.bf16.mxu0 %v7857_v14  ;;  %5229 = vmatprep.subr.bf16.mxu1 %v10609_v17  ;;  %v7879_v14 = vld [vmem:[#allocation6 + $0x868] ss:$200 sps:$4 sm:$0xff]  }
 0x475   :  { %5189 = vmatpush1.bf16.msra.mxu0 %v7858_v18  ;;  %5230 = vmatpush1.bf16.msra.mxu1 %v9225_v10  ;;  %v10611_v10 = vld [vmem:[#allocation294_spill] sm:$0xff] }
 0x476   :  { %5256 = vmatprep.subr.bf16.mxu0 %v7859_v41  ;;  %5297 = vmatprep.subr.bf16.mxu1 %v10610_v20  ;;  %v7880_v41 = vld [vmem:[#allocation6 + $0x9f4] ss:$200 sps:$4 sm:$0xff]  }
 0x477   :  { %v7881_v20 = vld [vmem:[#allocation6 + $0x9fc] ss:$200 sps:$4 sm:$0xff]  }
 0x478   :  { %v7412_v24 = vpop.eup %7411  ;;  %5207 = vmatmul.mubr.bf16.vlgmr.msra.gmra.mrb[28].mxu0 %v9341_v50  ;;  %5248 = vmatmul.mubr.bf16.vlgmr.msra.gmra.mrb[36].mxu1 %v9341_v50 }
 0x479   :  { %v7414_v26 = vpop.eup %7413  ;;  %v5961_v28 = vmul.f32 0.5, %v7412_v24  ;;  %5257 = vmatpush1.bf16.msra.mxu0 %v7860_v0  ;;  %5298 = vmatpush1.bf16.msra.mxu1 %v9233_v45  ;;  %v7882_v24 = vld [vmem:[#allocation6 + $0x9f0] ss:$200 sps:$4 sm:$0xff]   ;;  %v7885_v0 = vld [vmem:[#allocation6 + $0xb8c] ss:$200 sps:$4 sm:$0xff]  }
 0x47a   :  { %v7416_v30 = vpop.eup %7415  ;;  %v5963_v34 = vmul.f32 0.5, %v7414_v26  ;;  %5258 = vmatprep.subr.bf16.mxu0 %v7861_v35  ;;  %5299 = vmatprep.subr.bf16.mxu1 %v10611_v10  ;;  %v7883_v26 = vld [vmem:[#allocation6 + $0x9f8] ss:$200 sps:$4 sm:$0xff]   ;;  %v7888_v35 = vld [vmem:[#allocation6 + $0xa4] ss:$200 sps:$4 sm:$0xff]  }
 0x47b   :  { %v7418_v42 = vpop.eup %7417  ;;  %v6011_v47 = vadd.f32 0.5, %v5961_v28  ;;  %v5962_v57 = vmul.f32 0.5, %v7416_v30  ;;  %5288 = vmatprep.mubr.bf16.mxu0 %v10075_v49  ;;  %5329 = vmatprep.mubr.bf16.mxu1 %v10075_v49  ;;  %v7884_v28 = vld [vmem:[#allocation6 + $0xb84] ss:$200 sps:$4 sm:$0xff]   ;;  %v7886_v30 = vld [vmem:[#allocation6 + $0xb80] ss:$200 sps:$4 sm:$0xff]  }
 0x47c   :  { %v6013_v59 = vadd.f32 0.5, %v5963_v34  ;;  %v5964_v61 = vmul.f32 0.5, %v7418_v42  ;;  %v7887_v34 = vld [vmem:[#allocation6 + $0xb88] ss:$200 sps:$4 sm:$0xff]   ;;  %v7889_v10 = vld [vmem:[#allocation6 + $0xac] ss:$200 sps:$4 sm:$0xff]  }
 0x47d   :  { %v6012_v63 = vadd.f32 0.5, %v5962_v57  ;;  %5259 = vmatpush1.bf16.msra.mxu0 %v7862_v2  ;;  %5300 = vmatpush1.bf16.msra.mxu1 %v7863_v4  ;;  %v7892_v4 = vld [vmem:[#allocation6 + $0x234] ss:$200 sps:$4 sm:$0xff]  }
 0x47e   :  { %v6014_v45 = vadd.f32 0.5, %v5964_v61  ;;  %5260 = vmatprep.subr.bf16.mxu0 %v7864_v6  ;;  %5301 = vmatprep.subr.bf16.mxu1 %v7865_v8  ;;  %v7891_v61 = vld [vmem:[#allocation6 + $0xa8] ss:$200 sps:$4 sm:$0xff]  }
 0x47f   :  { %v6109_v12 = vcombine.low %v6011_v47, %v6012_v63 }
 0x480   :  { %v6110_v43 = vcombine.low %v6013_v59, %v6014_v45  ;;  %v7890_v59 = vld [vmem:[#allocation6 + $0xa0] ss:$200 sps:$4 sm:$0xff]   ;;  %v7893_v45 = vld [vmem:[#allocation6 + $0x23c] ss:$200 sps:$4 sm:$0xff]  }
 0x481   :  { %6159 = vst [vmem:[#allocation9 + $0x10] sm:$0x77] %v6109_v12  ;;  %5261 = vmatpush1.bf16.msra.mxu0 %v7866_v38  ;;  %5302 = vmatpush1.bf16.msra.mxu1 %v7867_v46 }
 0x482   :  { %6160 = vst [vmem:[#allocation9 + $0x18] sm:$0x77] %v6110_v43  ;;  %5262 = vmatprep.subr.bf16.mxu0 %v7868_v48  ;;  %5303 = vmatprep.subr.bf16.mxu1 %v7869_v52  ;;  %v7894_v48 = vld [vmem:[#allocation6 + $0x230] ss:$200 sps:$4 sm:$0xff]  }
 0x483   :  { %v7895_v52 = vld [vmem:[#allocation6 + $0x238] ss:$200 sps:$4 sm:$0xff]  }
 0x485   :  { %5263 = vmatpush1.bf16.msra.mxu0 %v7870_v54  ;;  %5304 = vmatpush1.bf16.msra.mxu1 %v7871_v56  ;;  %v7896_v56 = vld [vmem:[#allocation6 + $0x3c4] ss:$200 sps:$4 sm:$0xff]  }
 0x486   :  { %5264 = vmatprep.subr.bf16.mxu0 %v7872_v60  ;;  %5305 = vmatprep.subr.bf16.mxu1 %v7873_v22  ;;  %v7897_v60 = vld [vmem:[#allocation6 + $0x3cc] ss:$200 sps:$4 sm:$0xff]  }
 0x489   :  { %5265 = vmatpush1.bf16.msra.mxu0 %v7874_v3  ;;  %5306 = vmatpush1.bf16.msra.mxu1 %v7875_v5  ;;  %v7899_v3 = vld [vmem:[#allocation6 + $0x3c8] ss:$200 sps:$4 sm:$0xff]   ;;  %v7900_v5 = vld [vmem:[#allocation6 + $0x554] ss:$200 sps:$4 sm:$0xff]  }
 0x48a   :  { %5266 = vmatprep.subr.bf16.mxu0 %v7876_v11  ;;  %5307 = vmatprep.subr.bf16.mxu1 %v7877_v13  ;;  %v7903_v11 = vld [vmem:[#allocation6 + $0x558] ss:$200 sps:$4 sm:$0xff]   ;;  %v7904_v13 = vld [vmem:[#allocation6 + $0x6e4] ss:$200 sps:$4 sm:$0xff]  }
 0x48b   :  { %v4716_v16 = vpop.f32.mrb[4].mxu0  ;;  %v4757_v19 = vpop.f32.mrb[12].mxu1 }
 0x48c   :  { %v5865_v21 = vsub.f32 %v4716_v16, %v5642_v62  ;;  %v5867_v23 = vsub.f32 %v4757_v19, %v5650_v1  ;;  %v4718_v25 = vpop.f32.mrb[5].mxu0  ;;  %v4759_v27 = vpop.f32.mrb[13].mxu1  ;;  %v7898_v1 = vld [vmem:[#allocation6 + $0x3c0] ss:$200 sps:$4 sm:$0xff]   ;;  %v7905_v16 = vld [vmem:[#allocation6 + $0x6ec] ss:$200 sps:$4 sm:$0xff]   ;;  %v5658_v19 = vrot.slane %v9674_v58, %v9639_v53 }
 0x48d   :  { %v5866_v37 = vsub.f32 %v4718_v25, %v5646_v7  ;;  %v5868_v29 = vsub.f32 %v4759_v27, %v5654_v9  ;;  %v4720_v31 = vpop.f32.mrb[6].mxu0  ;;  %v4761_v33 = vpop.f32.mrb[14].mxu1  ;;  %5267 = vmatpush1.bf16.msra.mxu0 %v7878_v36  ;;  %5308 = vmatpush1.bf16.msra.mxu1 %v7879_v14  ;;  %v7901_v7 = vld [vmem:[#allocation6 + $0x55c] ss:$200 sps:$4 sm:$0xff]   ;;  %v7902_v9 = vld [vmem:[#allocation6 + $0x550] ss:$200 sps:$4 sm:$0xff]   ;;  %v5662_v27 = vrot.slane %v9674_v58, %v9646_v40 }
 0x48e   :  { %7419 = vtanh.f32 %v5865_v21  ;;  %v4721_v17 = vpop.f32.mrb[7].mxu0  ;;  %v4762_v18 = vpop.f32.mrb[15].mxu1  ;;  %5268 = vmatprep.subr.bf16.mxu0 %v7880_v41  ;;  %5309 = vmatprep.subr.bf16.mxu1 %v7881_v20  ;;  %v5666_v21 = vrot.slane %v9674_v58, %v9642_v15  ;;  %v7907_v25 = vld [vmem:[#allocation6 + $0x6e8] ss:$200 sps:$4 sm:$0xff]   ;;  %v7909_v31 = vld [vmem:[#allocation6 + $0x87c] ss:$200 sps:$4 sm:$0xff]  }
 0x48f   :  { %7421 = vtanh.f32 %v5867_v23  ;;  %v7906_v23 = vld [vmem:[#allocation6 + $0x6e0] ss:$200 sps:$4 sm:$0xff]  }
 0x490   :  { %7423 = vtanh.f32 %v5866_v37  ;;  %v5670_v37 = vrot.slane %v9674_v58, %v9649_v44 }
 0x491   :  { %7425 = vtanh.f32 %v5868_v29  ;;  %5269 = vmatpush1.bf16.msra.mxu0 %v7882_v24  ;;  %5310 = vmatpush1.bf16.msra.mxu1 %v7883_v26  ;;  %v7908_v29 = vld [vmem:[#allocation6 + $0x874] ss:$200 sps:$4 sm:$0xff]  }
 0x492   :  { %5270 = vmatprep.subr.bf16.mxu0 %v7884_v28  ;;  %5311 = vmatprep.subr.bf16.mxu1 %v7885_v0  ;;  %v7910_v0 = vld [vmem:[#allocation6 + $0x870] ss:$200 sps:$4 sm:$0xff]  }
 0x495   :  { %5271 = vmatpush1.bf16.msra.mxu0 %v7886_v30  ;;  %5312 = vmatpush1.bf16.msra.mxu1 %v7887_v34  ;;  %v7911_v30 = vld [vmem:[#allocation6 + $0x878] ss:$200 sps:$4 sm:$0xff]  }
 0x496   :  { %5338 = vmatprep.subr.bf16.mxu0 %v7888_v35  ;;  %5379 = vmatprep.subr.bf16.mxu1 %v7889_v10  ;;  %v7912_v35 = vld [vmem:[#allocation6 + $0xa04] ss:$200 sps:$4 sm:$0xff]  }
 0x497   :  { %v7913_v10 = vld [vmem:[#allocation6 + $0xa0c] ss:$200 sps:$4 sm:$0xff]  }
 0x498   :  { %v7420_v42 = vpop.eup %7419  ;;  %5289 = vmatmul.mubr.bf16.vlgmr.msra.gmra.mrb[32].mxu0 %v9341_v50  ;;  %5330 = vmatmul.mubr.bf16.vlgmr.msra.gmra.mrb[40].mxu1 %v9341_v50 }
 0x499   :  { %v7422_v47 = vpop.eup %7421  ;;  %v5965_v57 = vmul.f32 0.5, %v7420_v42  ;;  %5339 = vmatpush1.bf16.msra.mxu0 %v7890_v59  ;;  %5380 = vmatpush1.bf16.msra.mxu1 %v7891_v61  ;;  %v7914_v42 = vld [vmem:[#allocation6 + $0xa00] ss:$200 sps:$4 sm:$0xff]   ;;  %v7917_v59 = vld [vmem:[#allocation6 + $0xb9c] ss:$200 sps:$4 sm:$0xff]  }
 0x49a   :  { %v7424_v63 = vpop.eup %7423  ;;  %v5967_v2 = vmul.f32 0.5, %v7422_v47  ;;  %5340 = vmatprep.subr.bf16.mxu0 %v7892_v4  ;;  %5381 = vmatprep.subr.bf16.mxu1 %v7893_v45  ;;  %v7915_v47 = vld [vmem:[#allocation6 + $0xa08] ss:$200 sps:$4 sm:$0xff]   ;;  %v7921_v4 = vld [vmem:[#allocation6 + $0xbc] ss:$200 sps:$4 sm:$0xff]  }
 0x49b   :  { %v7426_v6 = vpop.eup %7425  ;;  %v6015_v8 = vadd.f32 0.5, %v5965_v57  ;;  %v5966_v12 = vmul.f32 0.5, %v7424_v63  ;;  %5370 = vmatprep.mubr.bf16.mxu0 %v10075_v49  ;;  %5411 = vmatprep.mubr.bf16.mxu1 %v10075_v49  ;;  %v7916_v57 = vld [vmem:[#allocation6 + $0xb94] ss:$200 sps:$4 sm:$0xff]   ;;  %v7918_v61 = vld [vmem:[#allocation6 + $0xb90] ss:$200 sps:$4 sm:$0xff]  }
 0x49c   :  { %v6017_v43 = vadd.f32 0.5, %v5967_v2  ;;  %v5968_v38 = vmul.f32 0.5, %v7426_v6  ;;  %v7919_v63 = vld [vmem:[#allocation6 + $0xb98] ss:$200 sps:$4 sm:$0xff]   ;;  %v7920_v2 = vld [vmem:[#allocation6 + $0xb4] ss:$200 sps:$4 sm:$0xff]  }
 0x49d   :  { %v6016_v46 = vadd.f32 0.5, %v5966_v12  ;;  %5341 = vmatpush1.bf16.msra.mxu0 %v7894_v48  ;;  %5382 = vmatpush1.bf16.msra.mxu1 %v7895_v52  ;;  %v7922_v12 = vld [vmem:[#allocation6 + $0xb0] ss:$200 sps:$4 sm:$0xff]   ;;  %v7924_v48 = vld [vmem:[#allocation6 + $0x244] ss:$200 sps:$4 sm:$0xff]  }
 0x49e   :  { %v6018_v54 = vadd.f32 0.5, %v5968_v38  ;;  %5342 = vmatprep.subr.bf16.mxu0 %v7896_v56  ;;  %5383 = vmatprep.subr.bf16.mxu1 %v7897_v60  ;;  %v7925_v52 = vld [vmem:[#allocation6 + $0x24c] ss:$200 sps:$4 sm:$0xff]  }
 0x49f   :  { %v6111_v22 = vcombine.low %v6015_v8, %v6016_v46 }
 0x4a0   :  { %v6112_v62 = vcombine.low %v6017_v43, %v6018_v54  ;;  %v7923_v43 = vld [vmem:[#allocation6 + $0xb8] ss:$200 sps:$4 sm:$0xff]  }
 0x4a1   :  { %6161 = vst [vmem:[#allocation9 + $0x20] sm:$0x77] %v6111_v22  ;;  %5343 = vmatpush1.bf16.msra.mxu0 %v7898_v1  ;;  %5384 = vmatpush1.bf16.msra.mxu1 %v7899_v3  ;;  %v7926_v3 = vld [vmem:[#allocation6 + $0x240] ss:$200 sps:$4 sm:$0xff]  }
 0x4a2   :  { %6162 = vst [vmem:[#allocation9 + $0x28] sm:$0x77] %v6112_v62  ;;  %5344 = vmatprep.subr.bf16.mxu0 %v7900_v5  ;;  %5385 = vmatprep.subr.bf16.mxu1 %v7901_v7  ;;  %v7927_v5 = vld [vmem:[#allocation6 + $0x248] ss:$200 sps:$4 sm:$0xff]  }
 0x4a5   :  { %5345 = vmatpush1.bf16.msra.mxu0 %v7902_v9  ;;  %5386 = vmatpush1.bf16.msra.mxu1 %v7903_v11  ;;  %v7928_v9 = vld [vmem:[#allocation6 + $0x3d4] ss:$200 sps:$4 sm:$0xff]  }
 0x4a6   :  { %5346 = vmatprep.subr.bf16.mxu0 %v7904_v13  ;;  %5387 = vmatprep.subr.bf16.mxu1 %v7905_v16  ;;  %v7929_v11 = vld [vmem:[#allocation6 + $0x3dc] ss:$200 sps:$4 sm:$0xff]  }
 0x4a9   :  { %5347 = vmatpush1.bf16.msra.mxu0 %v7906_v23  ;;  %5388 = vmatpush1.bf16.msra.mxu1 %v7907_v25  ;;  %v7932_v23 = vld [vmem:[#allocation6 + $0x564] ss:$200 sps:$4 sm:$0xff]  }
 0x4aa   :  { %5348 = vmatprep.subr.bf16.mxu0 %v7908_v29  ;;  %5389 = vmatprep.subr.bf16.mxu1 %v7909_v31  ;;  %v7933_v25 = vld [vmem:[#allocation6 + $0x56c] ss:$200 sps:$4 sm:$0xff]  }
 0x4ab   :  { %v4798_v33 = vpop.f32.mrb[8].mxu0  ;;  %v4839_v36 = vpop.f32.mrb[16].mxu1  ;;  %v9700_v29 = vld [vmem:[#allocation8 + $0x10] sm:$0xff] }
 0x4ac   :  { %v5869_v14 = vsub.f32 %v4798_v33, %v5658_v19  ;;  %v5871_v17 = vsub.f32 %v4839_v36, %v5666_v21  ;;  %v4800_v18 = vpop.f32.mrb[9].mxu0  ;;  %v4841_v41 = vpop.f32.mrb[17].mxu1  ;;  %v7930_v19 = vld [vmem:[#allocation6 + $0x3d0] ss:$200 sps:$4 sm:$0xff]   ;;  %v7936_v31 = vld [vmem:[#allocation6 + $0x6f4] ss:$200 sps:$4 sm:$0xff]   ;;  %v5674_v36 = vrot.slane %v9700_v29, %v9594_v51 }
 0x4ad   :  { %v5870_v20 = vsub.f32 %v4800_v18, %v5662_v27  ;;  %v5872_v24 = vsub.f32 %v4841_v41, %v5670_v37  ;;  %v4802_v26 = vpop.f32.mrb[10].mxu0  ;;  %v4843_v28 = vpop.f32.mrb[18].mxu1  ;;  %5349 = vmatpush1.bf16.msra.mxu0 %v7910_v0  ;;  %5390 = vmatpush1.bf16.msra.mxu1 %v7911_v30  ;;  %v7931_v21 = vld [vmem:[#allocation6 + $0x3d8] ss:$200 sps:$4 sm:$0xff]   ;;  %v7935_v37 = vld [vmem:[#allocation6 + $0x568] ss:$200 sps:$4 sm:$0xff]   ;;  %v5678_v41 = vrot.slane %v9700_v29, %v9597_v55 }
 0x4ae   :  { %7427 = vtanh.f32 %v5869_v14  ;;  %v4803_v58 = vpop.f32.mrb[11].mxu0  ;;  %v4844_v34 = vpop.f32.mrb[19].mxu1  ;;  %5350 = vmatprep.subr.bf16.mxu0 %v7912_v35  ;;  %5391 = vmatprep.subr.bf16.mxu1 %v7913_v10  ;;  %v7934_v27 = vld [vmem:[#allocation6 + $0x560] ss:$200 sps:$4 sm:$0xff]   ;;  %v7937_v33 = vld [vmem:[#allocation6 + $0x6fc] ss:$200 sps:$4 sm:$0xff]   ;;  %v5682_v14 = vrot.slane %v9700_v29, %v9582_v32 }
 0x4af   :  { %7429 = vtanh.f32 %v5871_v17  ;;  %v7938_v17 = vld [vmem:[#allocation6 + $0x6f0] ss:$200 sps:$4 sm:$0xff]   ;;  %v7941_v26 = vld [vmem:[#allocation6 + $0x88c] ss:$200 sps:$4 sm:$0xff]  }
 0x4b0   :  { %7431 = vtanh.f32 %v5870_v20  ;;  %v7939_v18 = vld [vmem:[#allocation6 + $0x6f8] ss:$200 sps:$4 sm:$0xff]   ;;  %v5686_v20 = vrot.slane %v9700_v29, %v9589_v39 }
 0x4b1   :  { %7433 = vtanh.f32 %v5872_v24  ;;  %5351 = vmatpush1.bf16.msra.mxu0 %v7914_v42  ;;  %5392 = vmatpush1.bf16.msra.mxu1 %v7915_v47  ;;  %v7940_v24 = vld [vmem:[#allocation6 + $0x884] ss:$200 sps:$4 sm:$0xff]  }
 0x4b2   :  { %5352 = vmatprep.subr.bf16.mxu0 %v7916_v57  ;;  %5393 = vmatprep.subr.bf16.mxu1 %v7917_v59  ;;  %v7942_v59 = vld [vmem:[#allocation6 + $0x880] ss:$200 sps:$4 sm:$0xff]  }
 0x4b5   :  { %5353 = vmatpush1.bf16.msra.mxu0 %v7918_v61  ;;  %5394 = vmatpush1.bf16.msra.mxu1 %v7919_v63  ;;  %v7943_v61 = vld [vmem:[#allocation6 + $0x888] ss:$200 sps:$4 sm:$0xff]  }
 0x4b6   :  { %5420 = vmatprep.subr.bf16.mxu0 %v7920_v2  ;;  %5461 = vmatprep.subr.bf16.mxu1 %v7921_v4  ;;  %v7944_v4 = vld [vmem:[#allocation6 + $0xa14] ss:$200 sps:$4 sm:$0xff]  }
 0x4b8   :  { %v7428_v45 = vpop.eup %7427  ;;  %5371 = vmatmul.mubr.bf16.vlgmr.msra.gmra.mrb[36].mxu0 %v9341_v50  ;;  %5412 = vmatmul.mubr.bf16.vlgmr.msra.gmra.mrb[44].mxu1 %v9341_v50 }
 0x4b9   :  { %v7430_v6 = vpop.eup %7429  ;;  %v5969_v8 = vmul.f32 0.5, %v7428_v45  ;;  %5421 = vmatpush1.bf16.msra.mxu0 %v7922_v12  ;;  %5462 = vmatpush1.bf16.msra.mxu1 %v7923_v43  ;;  %v7945_v45 = vld [vmem:[#allocation6 + $0xa1c] ss:$200 sps:$4 sm:$0xff]   ;;  %v7949_v43 = vld [vmem:[#allocation6 + $0xbac] ss:$200 sps:$4 sm:$0xff]  }
 0x4ba   :  { %v7432_v38 = vpop.eup %7431  ;;  %v5971_v46 = vmul.f32 0.5, %v7430_v6  ;;  %5422 = vmatprep.subr.bf16.mxu0 %v7924_v48  ;;  %5463 = vmatprep.subr.bf16.mxu1 %v7925_v52  ;;  %v7946_v6 = vld [vmem:[#allocation6 + $0xa10] ss:$200 sps:$4 sm:$0xff]   ;;  %v7948_v12 = vld [vmem:[#allocation6 + $0xba4] ss:$200 sps:$4 sm:$0xff]  }
 0x4bb   :  { %v7434_v54 = vpop.eup %7433  ;;  %v6019_v56 = vadd.f32 0.5, %v5969_v8  ;;  %v5970_v60 = vmul.f32 0.5, %v7432_v38  ;;  %5452 = vmatprep.mubr.bf16.mxu0 %v10075_v49  ;;  %5493 = vmatprep.mubr.bf16.mxu1 %v10075_v49  ;;  %v7947_v8 = vld [vmem:[#allocation6 + $0xa18] ss:$200 sps:$4 sm:$0xff]   ;;  %v7952_v48 = vld [vmem:[#allocation6 + $0xc4] ss:$200 sps:$4 sm:$0xff]  }
 0x4bc   :  { %v6021_v22 = vadd.f32 0.5, %v5971_v46  ;;  %v5972_v62 = vmul.f32 0.5, %v7434_v54  ;;  %v7950_v38 = vld [vmem:[#allocation6 + $0xba0] ss:$200 sps:$4 sm:$0xff]  }
 0x4bd   :  { %v6020_v1 = vadd.f32 0.5, %v5970_v60  ;;  %5423 = vmatpush1.bf16.msra.mxu0 %v7926_v3  ;;  %5464 = vmatpush1.bf16.msra.mxu1 %v7927_v5  ;;  %v7951_v46 = vld [vmem:[#allocation6 + $0xba8] ss:$200 sps:$4 sm:$0xff]  }
 0x4be   :  { %v6022_v7 = vadd.f32 0.5, %v5972_v62  ;;  %5424 = vmatprep.subr.bf16.mxu0 %v7928_v9  ;;  %5465 = vmatprep.subr.bf16.mxu1 %v7929_v11  ;;  %v7953_v60 = vld [vmem:[#allocation6 + $0xc0] ss:$200 sps:$4 sm:$0xff]  }
 0x4bf   :  { %v6113_v13 = vcombine.low %v6019_v56, %v6020_v1  ;;  %v7954_v1 = vld [vmem:[#allocation6 + $0x254] ss:$200 sps:$4 sm:$0xff]  }
 0x4c0   :  { %v6114_v16 = vcombine.low %v6021_v22, %v6022_v7 }
 0x4c1   :  { %6163 = vst [vmem:[#allocation9 + $0x30] sm:$0x77] %v6113_v13  ;;  %5425 = vmatpush1.bf16.msra.mxu0 %v7930_v19  ;;  %5466 = vmatpush1.bf16.msra.mxu1 %v7931_v21  ;;  %v7956_v21 = vld [vmem:[#allocation6 + $0x3e4] ss:$200 sps:$4 sm:$0xff]  }
 0x4c2   :  { %6164 = vst [vmem:[#allocation9 + $0x38] sm:$0x77] %v6114_v16  ;;  %5426 = vmatprep.subr.bf16.mxu0 %v7932_v23  ;;  %5467 = vmatprep.subr.bf16.mxu1 %v7933_v25  ;;  %v7955_v16 = vld [vmem:[#allocation6 + $0x250] ss:$200 sps:$4 sm:$0xff]  }
 0x4c5   :  { %5427 = vmatpush1.bf16.msra.mxu0 %v7934_v27  ;;  %5468 = vmatpush1.bf16.msra.mxu1 %v7935_v37  ;;  %v7957_v27 = vld [vmem:[#allocation6 + $0x3e0] ss:$200 sps:$4 sm:$0xff]   ;;  %v7959_v37 = vld [vmem:[#allocation6 + $0x570] ss:$200 sps:$4 sm:$0xff]  }
 0x4c6   :  { %5428 = vmatprep.subr.bf16.mxu0 %v7936_v31  ;;  %5469 = vmatprep.subr.bf16.mxu1 %v7937_v33  ;;  %v7960_v31 = vld [vmem:[#allocation6 + $0x704] ss:$200 sps:$4 sm:$0xff]   ;;  %v5690_v33 = vrot.slane %v9700_v29, %v9639_v53 }
 0x4c9   :  { %5429 = vmatpush1.bf16.msra.mxu0 %v7938_v17  ;;  %5470 = vmatpush1.bf16.msra.mxu1 %v7939_v18  ;;  %v5694_v17 = vrot.slane %v9700_v29, %v9646_v40  ;;  %v5702_v18 = vrot.slane %v9700_v29, %v9649_v44 }
 0x4ca   :  { %5430 = vmatprep.subr.bf16.mxu0 %v7940_v24  ;;  %5471 = vmatprep.subr.bf16.mxu1 %v7941_v26 }
 0x4cb   :  { %v4880_v28 = vpop.f32.mrb[12].mxu0  ;;  %v4921_v0 = vpop.f32.mrb[20].mxu1 }
 0x4cc   :  { %v5873_v30 = vsub.f32 %v4880_v28, %v5674_v36  ;;  %v5875_v58 = vsub.f32 %v4921_v0, %v5682_v14  ;;  %v4882_v34 = vpop.f32.mrb[13].mxu0  ;;  %v4923_v35 = vpop.f32.mrb[21].mxu1  ;;  %v5698_v36 = vrot.slane %v9700_v29, %v9642_v15  ;;  %v7961_v14 = vld [vmem:[#allocation6 + $0x700] ss:$200 sps:$4 sm:$0xff]  }
 0x4cd   :  { %v5874_v10 = vsub.f32 %v4882_v34, %v5678_v41  ;;  %v5876_v42 = vsub.f32 %v4923_v35, %v5686_v20  ;;  %v4884_v47 = vpop.f32.mrb[14].mxu0  ;;  %v4925_v57 = vpop.f32.mrb[22].mxu1  ;;  %5431 = vmatpush1.bf16.msra.mxu0 %v7942_v59  ;;  %5472 = vmatpush1.bf16.msra.mxu1 %v7943_v61  ;;  %v7962_v41 = vld [vmem:[#allocation6 + $0x894] ss:$200 sps:$4 sm:$0xff]   ;;  %v7964_v59 = vld [vmem:[#allocation6 + $0xa24] ss:$200 sps:$4 sm:$0xff]  }
 0x4ce   :  { %7435 = vtanh.f32 %v5873_v30  ;;  %v4885_v63 = vpop.f32.mrb[15].mxu0  ;;  %v4926_v2 = vpop.f32.mrb[23].mxu1  ;;  %5432 = vmatprep.subr.bf16.mxu0 %v7944_v4  ;;  %5473 = vmatprep.subr.bf16.mxu1 %v7945_v45  ;;  %v7965_v29 = vld [vmem:[#allocation6 + $0xa20] ss:$200 sps:$4 sm:$0xff]   ;;  %v7966_v61 = vld [vmem:[#allocation6 + $0xbb4] ss:$200 sps:$4 sm:$0xff]  }
 0x4cf   :  { %7437 = vtanh.f32 %v5875_v58  ;;  %v7967_v63 = vld [vmem:[#allocation6 + $0xbb0] ss:$200 sps:$4 sm:$0xff]  }
 0x4d0   :  { %7439 = vtanh.f32 %v5874_v10 }
 0x4d1   :  { %7441 = vtanh.f32 %v5876_v42  ;;  %5433 = vmatpush1.bf16.msra.mxu0 %v7946_v6  ;;  %5474 = vmatpush1.bf16.msra.mxu1 %v7947_v8  ;;  %v7963_v42 = vld [vmem:[#allocation6 + $0x890] ss:$200 sps:$4 sm:$0xff]  }
 0x4d2   :  { %5434 = vmatprep.subr.bf16.mxu0 %v7948_v12  ;;  %5475 = vmatprep.subr.bf16.mxu1 %v7949_v43 }
 0x4d5   :  { %5435 = vmatpush1.bf16.msra.mxu0 %v7950_v38  ;;  %5476 = vmatpush1.bf16.msra.mxu1 %v7951_v46 }
 0x4d6   :  { %5502 = vmatprep.subr.bf16.mxu0 %v7952_v48 }
 0x4d8   :  { %v7436_v52 = vpop.eup %7435  ;;  %5453 = vmatmul.mubr.bf16.vlgmr.msra.gmra.mrb[40].mxu0 %v9341_v50  ;;  %5494 = vmatmul.mubr.bf16.vlgmr.msra.gmra.mrb[48].mxu1 %v9341_v50 }
 0x4d9   :  { %v7438_v54 = vpop.eup %7437  ;;  %v5973_v56 = vmul.f32 0.5, %v7436_v52  ;;  %5503 = vmatpush1.bf16.msra.mxu0 %v7953_v60  ;;  %5534 = vmatprep.mubr.bf16.mxu0 %v10075_v49  ;;  %v7958_v49 = vld [vmem:[#allocation6 + $0x574] ss:$200 sps:$4 sm:$0xff]  }
 0x4da   :  { %v7440_v22 = vpop.eup %7439  ;;  %v5975_v62 = vmul.f32 0.5, %v7438_v54  ;;  %5504 = vmatprep.subr.bf16.mxu0 %v7954_v1 }
 0x4db   :  { %v7442_v3 = vpop.eup %7441  ;;  %v6023_v5 = vadd.f32 0.5, %v5973_v56  ;;  %v5974_v7 = vmul.f32 0.5, %v7440_v22  ;;  %v5596_v22 = vld [vmem:[#allocation8 + $0x18] sm:$0xff] }
 0x4dc   :  { %v6025_v9 = vadd.f32 0.5, %v5975_v62  ;;  %v5976_v11 = vmul.f32 0.5, %v7442_v3  ;;  %v5706_v62 = vrot.slane %v5596_v22, %v9594_v51  ;;  %v5710_v1 = vrot.slane %v5596_v22, %v9597_v55 }
 0x4dd   :  { %v6024_v13 = vadd.f32 0.5, %v5974_v7  ;;  %5505 = vmatpush1.bf16.msra.mxu0 %v7955_v16  ;;  %v5718_v3 = vrot.slane %v5596_v22, %v9589_v39 }
 0x4de   :  { %v6026_v19 = vadd.f32 0.5, %v5976_v11  ;;  %5506 = vmatprep.subr.bf16.mxu0 %v7956_v21 }
 0x4df   :  { %v6115_v23 = vcombine.low %v6023_v5, %v6024_v13 }
 0x4e0   :  { %v6116_v25 = vcombine.low %v6025_v9, %v6026_v19 }
 0x4e1   :  { %6165 = vst [vmem:[#allocation9 + $0x40] sm:$0x77] %v6115_v23  ;;  %5507 = vmatpush1.bf16.msra.mxu0 %v7957_v27 }
 0x4e2   :  { %6166 = vst [vmem:[#allocation9 + $0x48] sm:$0x77] %v6116_v25  ;;  %5508 = vmatprep.subr.bf16.mxu0 %v7958_v49 }
 0x4e5   :  { %5509 = vmatpush1.bf16.msra.mxu0 %v7959_v37 }
 0x4e6   :  { %5510 = vmatprep.subr.bf16.mxu0 %v7960_v31 }
 0x4e9   :  { %5511 = vmatpush1.bf16.msra.mxu0 %v7961_v14 }
 0x4ea   :  { %5512 = vmatprep.subr.bf16.mxu0 %v7962_v41 }
 0x4eb   :  { %v4962_v20 = vpop.f32.mrb[16].mxu0  ;;  %v5003_v24 = vpop.f32.mrb[24].mxu1 }
 0x4ec   :  { %v5877_v26 = vsub.f32 %v4962_v20, %v5690_v33  ;;  %v5879_v28 = vsub.f32 %v5003_v24, %v5698_v36  ;;  %v4964_v0 = vpop.f32.mrb[17].mxu0  ;;  %v5005_v30 = vpop.f32.mrb[25].mxu1 }
 0x4ed   :  { %v5878_v58 = vsub.f32 %v4964_v0, %v5694_v17  ;;  %v5880_v34 = vsub.f32 %v5005_v30, %v5702_v18  ;;  %v4966_v35 = vpop.f32.mrb[18].mxu0  ;;  %v5007_v10 = vpop.f32.mrb[26].mxu1  ;;  %5513 = vmatpush1.bf16.msra.mxu0 %v7963_v42 }
 0x4ee   :  { %7443 = vtanh.f32 %v5877_v26  ;;  %v4967_v47 = vpop.f32.mrb[19].mxu0  ;;  %v5008_v57 = vpop.f32.mrb[27].mxu1  ;;  %5514 = vmatprep.subr.bf16.mxu0 %v7964_v59  ;;  %v5726_v35 = vrot.slane %v5596_v22, %v9646_v40  ;;  %v5734_v10 = vrot.slane %v5596_v22, %v9649_v44 }
 0x4ef   :  { %7445 = vtanh.f32 %v5879_v28 }
 0x4f0   :  { %7447 = vtanh.f32 %v5878_v58  ;;  %v5722_v58 = vrot.slane %v5596_v22, %v9639_v53 }
 0x4f1   :  { %7449 = vtanh.f32 %v5880_v34  ;;  %5515 = vmatpush1.bf16.msra.mxu0 %v7965_v29  ;;  %v5730_v34 = vrot.slane %v5596_v22, %v9642_v15 }
 0x4f2   :  { %5516 = vmatprep.subr.bf16.mxu0 %v7966_v61 }
 0x4f5   :  { %5517 = vmatpush1.bf16.msra.mxu0 %v7967_v63 }
 0x4f8   :  { %v7444_v2 = vpop.eup %7443  ;;  %5535 = vmatmul.mubr.bf16.vlgmr.msra.gmra.mrb[44].mxu0 %v9341_v50  ;;  %v5714_v50 = vrot.slane %v5596_v22, %v9582_v32 }
 0x4f9   :  { %v7446_v4 = vpop.eup %7445  ;;  %v5977_v45 = vmul.f32 0.5, %v7444_v2 }
 0x4fa   :  { %v7448_v6 = vpop.eup %7447  ;;  %v5979_v8 = vmul.f32 0.5, %v7446_v4 }
 0x4fb   :  { %v7450_v12 = vpop.eup %7449  ;;  %v6027_v43 = vadd.f32 0.5, %v5977_v45  ;;  %v5978_v38 = vmul.f32 0.5, %v7448_v6 }
 0x4fc   :  { %v6029_v46 = vadd.f32 0.5, %v5979_v8  ;;  %v5980_v48 = vmul.f32 0.5, %v7450_v12 }
 0x4fd   :  { %v6028_v52 = vadd.f32 0.5, %v5978_v38 }
 0x4fe   :  { %v6030_v54 = vadd.f32 0.5, %v5980_v48 }
 0x4ff   :  { %v6117_v56 = vcombine.low %v6027_v43, %v6028_v52 }
 0x500   :  { %v6118_v60 = vcombine.low %v6029_v46, %v6030_v54 }
 0x501   :  { %6167 = vst [vmem:[#allocation9 + $0x50] sm:$0x77] %v6117_v56 }
 0x502   :  { %6168 = vst [vmem:[#allocation9 + $0x58] sm:$0x77] %v6118_v60 }
 0x50b   :  { %v5044_v5 = vpop.f32.mrb[20].mxu0  ;;  %v5085_v7 = vpop.f32.mrb[28].mxu1 }
 0x50c   :  { %v5881_v9 = vsub.f32 %v5044_v5, %v5706_v62  ;;  %v5883_v11 = vsub.f32 %v5085_v7, %v5714_v50  ;;  %v5046_v13 = vpop.f32.mrb[21].mxu0  ;;  %v5087_v16 = vpop.f32.mrb[29].mxu1  ;;  %v5597_v5 = vld [vmem:[#allocation8 + $0x20] sm:$0xff] }
 0x50d   :  { %v5882_v19 = vsub.f32 %v5046_v13, %v5710_v1  ;;  %v5884_v21 = vsub.f32 %v5087_v16, %v5718_v3  ;;  %v5048_v23 = vpop.f32.mrb[22].mxu0  ;;  %v5089_v25 = vpop.f32.mrb[30].mxu1  ;;  %v5738_v7 = vrot.slane %v5597_v5, %v9594_v51  ;;  %v5750_v13 = vrot.slane %v5597_v5, %v9589_v39 }
 0x50e   :  { %7451 = vtanh.f32 %v5881_v9  ;;  %v5049_v27 = vpop.f32.mrb[23].mxu0  ;;  %v5090_v49 = vpop.f32.mrb[31].mxu1  ;;  %v5746_v9 = vrot.slane %v5597_v5, %v9582_v32 }
 0x50f   :  { %7453 = vtanh.f32 %v5883_v11  ;;  %v5742_v11 = vrot.slane %v5597_v5, %v9597_v55 }
 0x510   :  { %7455 = vtanh.f32 %v5882_v19 }
 0x511   :  { %7457 = vtanh.f32 %v5884_v21 }
 0x518   :  { %v7452_v37 = vpop.eup %7451 }
 0x519   :  { %v7454_v31 = vpop.eup %7453  ;;  %v5981_v33 = vmul.f32 0.5, %v7452_v37 }
 0x51a   :  { %v7456_v36 = vpop.eup %7455  ;;  %v5983_v14 = vmul.f32 0.5, %v7454_v31 }
 0x51b   :  { %v7458_v17 = vpop.eup %7457  ;;  %v6031_v18 = vadd.f32 0.5, %v5981_v33  ;;  %v5982_v41 = vmul.f32 0.5, %v7456_v36 }
 0x51c   :  { %v6033_v20 = vadd.f32 0.5, %v5983_v14  ;;  %v5984_v24 = vmul.f32 0.5, %v7458_v17 }
 0x51d   :  { %v6032_v26 = vadd.f32 0.5, %v5982_v41 }
 0x51e   :  { %v6034_v28 = vadd.f32 0.5, %v5984_v24 }
 0x51f   :  { %v6119_v0 = vcombine.low %v6031_v18, %v6032_v26 }
 0x520   :  { %v6120_v30 = vcombine.low %v6033_v20, %v6034_v28 }
 0x521   :  { %6169 = vst [vmem:[#allocation9 + $0x60] sm:$0x77] %v6119_v0 }
 0x522   :  { %6170 = vst [vmem:[#allocation9 + $0x68] sm:$0x77] %v6120_v30 }
 0x52b   :  { %v5126_v42 = vpop.f32.mrb[24].mxu0  ;;  %v5167_v47 = vpop.f32.mrb[32].mxu1 }
 0x52c   :  { %v5885_v57 = vsub.f32 %v5126_v42, %v5722_v58  ;;  %v5887_v59 = vsub.f32 %v5167_v47, %v5730_v34  ;;  %v5128_v29 = vpop.f32.mrb[25].mxu0  ;;  %v5169_v61 = vpop.f32.mrb[33].mxu1  ;;  %v5754_v47 = vrot.slane %v5597_v5, %v9639_v53 }
 0x52d   :  { %v5886_v63 = vsub.f32 %v5128_v29, %v5726_v35  ;;  %v5888_v2 = vsub.f32 %v5169_v61, %v5734_v10  ;;  %v5130_v4 = vpop.f32.mrb[26].mxu0  ;;  %v5171_v45 = vpop.f32.mrb[34].mxu1  ;;  %v5766_v29 = vrot.slane %v5597_v5, %v9649_v44 }
 0x52e   :  { %7459 = vtanh.f32 %v5885_v57  ;;  %v5131_v6 = vpop.f32.mrb[27].mxu0  ;;  %v5172_v8 = vpop.f32.mrb[35].mxu1  ;;  %v5762_v57 = vrot.slane %v5597_v5, %v9642_v15 }
 0x52f   :  { %7461 = vtanh.f32 %v5887_v59  ;;  %v5758_v59 = vrot.slane %v5597_v5, %v9646_v40 }
 0x530   :  { %7463 = vtanh.f32 %v5886_v63 }
 0x531   :  { %7465 = vtanh.f32 %v5888_v2 }
 0x538   :  { %v7460_v12 = vpop.eup %7459 }
 0x539   :  { %v7462_v43 = vpop.eup %7461  ;;  %v5985_v38 = vmul.f32 0.5, %v7460_v12 }
 0x53a   :  { %v7464_v46 = vpop.eup %7463  ;;  %v5987_v48 = vmul.f32 0.5, %v7462_v43 }
 0x53b   :  { %v7466_v52 = vpop.eup %7465  ;;  %v6035_v54 = vadd.f32 0.5, %v5985_v38  ;;  %v5986_v56 = vmul.f32 0.5, %v7464_v46 }
 0x53c   :  { %v6037_v60 = vadd.f32 0.5, %v5987_v48  ;;  %v5988_v22 = vmul.f32 0.5, %v7466_v52 }
 0x53d   :  { %v6036_v62 = vadd.f32 0.5, %v5986_v56 }
 0x53e   :  { %v6038_v50 = vadd.f32 0.5, %v5988_v22 }
 0x53f   :  { %v6121_v1 = vcombine.low %v6035_v54, %v6036_v62 }
 0x540   :  { %v6122_v3 = vcombine.low %v6037_v60, %v6038_v50 }
 0x541   :  { %6171 = vst [vmem:[#allocation9 + $0x70] sm:$0x77] %v6121_v1 }
 0x542   :  { %6172 = vst [vmem:[#allocation9 + $0x78] sm:$0x77] %v6122_v3 }
 0x54b   :  { %v5208_v16 = vpop.f32.mrb[28].mxu0  ;;  %v5249_v19 = vpop.f32.mrb[36].mxu1 }
 0x54c   :  { %v5889_v21 = vsub.f32 %v5208_v16, %v5738_v7  ;;  %v5891_v23 = vsub.f32 %v5249_v19, %v5746_v9  ;;  %v5210_v25 = vpop.f32.mrb[29].mxu0  ;;  %v5251_v27 = vpop.f32.mrb[37].mxu1  ;;  %v5598_v16 = vld [vmem:[#allocation8 + $0x28] sm:$0xff] }
 0x54d   :  { %v5890_v49 = vsub.f32 %v5210_v25, %v5742_v11  ;;  %v5892_v37 = vsub.f32 %v5251_v27, %v5750_v13  ;;  %v5212_v31 = vpop.f32.mrb[30].mxu0  ;;  %v5253_v33 = vpop.f32.mrb[38].mxu1  ;;  %v5770_v19 = vrot.slane %v5598_v16, %v9594_v51  ;;  %v5782_v25 = vrot.slane %v5598_v16, %v9589_v39 }
 0x54e   :  { %7467 = vtanh.f32 %v5889_v21  ;;  %v5213_v36 = vpop.f32.mrb[31].mxu0  ;;  %v5254_v14 = vpop.f32.mrb[39].mxu1  ;;  %v5778_v21 = vrot.slane %v5598_v16, %v9582_v32 }
 0x54f   :  { %7469 = vtanh.f32 %v5891_v23  ;;  %v5774_v23 = vrot.slane %v5598_v16, %v9597_v55 }
 0x550   :  { %7471 = vtanh.f32 %v5890_v49 }
 0x551   :  { %7473 = vtanh.f32 %v5892_v37 }
 0x558   :  { %v7468_v17 = vpop.eup %7467 }
 0x559   :  { %v7470_v18 = vpop.eup %7469  ;;  %v5989_v41 = vmul.f32 0.5, %v7468_v17 }
 0x55a   :  { %v7472_v20 = vpop.eup %7471  ;;  %v5991_v24 = vmul.f32 0.5, %v7470_v18 }
 0x55b   :  { %v7474_v26 = vpop.eup %7473  ;;  %v6039_v28 = vadd.f32 0.5, %v5989_v41  ;;  %v5990_v0 = vmul.f32 0.5, %v7472_v20 }
 0x55c   :  { %v6041_v30 = vadd.f32 0.5, %v5991_v24  ;;  %v5992_v58 = vmul.f32 0.5, %v7474_v26 }
 0x55d   :  { %v6040_v34 = vadd.f32 0.5, %v5990_v0 }
 0x55e   :  { %v6042_v35 = vadd.f32 0.5, %v5992_v58 }
 0x55f   :  { %v6123_v10 = vcombine.low %v6039_v28, %v6040_v34 }
 0x560   :  { %v6124_v42 = vcombine.low %v6041_v30, %v6042_v35 }
 0x561   :  { %6173 = vst [vmem:[#allocation9 + $0x80] sm:$0x77] %v6123_v10 }
 0x562   :  { %6174 = vst [vmem:[#allocation9 + $0x88] sm:$0x77] %v6124_v42 }
 0x56b   :  { %v5290_v61 = vpop.f32.mrb[32].mxu0  ;;  %v5331_v63 = vpop.f32.mrb[40].mxu1 }
 0x56c   :  { %v5893_v2 = vsub.f32 %v5290_v61, %v5754_v47  ;;  %v5895_v4 = vsub.f32 %v5331_v63, %v5762_v57  ;;  %v5292_v45 = vpop.f32.mrb[33].mxu0  ;;  %v5333_v6 = vpop.f32.mrb[41].mxu1  ;;  %v5794_v61 = vrot.slane %v5598_v16, %v9642_v15  ;;  %v5790_v63 = vrot.slane %v5598_v16, %v9646_v40 }
 0x56d   :  { %v5894_v8 = vsub.f32 %v5292_v45, %v5758_v59  ;;  %v5896_v12 = vsub.f32 %v5333_v6, %v5766_v29  ;;  %v5294_v43 = vpop.f32.mrb[34].mxu0  ;;  %v5335_v38 = vpop.f32.mrb[42].mxu1  ;;  %v5786_v29 = vrot.slane %v5598_v16, %v9639_v53 }
 0x56e   :  { %7475 = vtanh.f32 %v5893_v2  ;;  %v5295_v46 = vpop.f32.mrb[35].mxu0  ;;  %v5336_v48 = vpop.f32.mrb[43].mxu1  ;;  %v5798_v2 = vrot.slane %v5598_v16, %v9649_v44 }
 0x56f   :  { %7477 = vtanh.f32 %v5895_v4 }
 0x570   :  { %7479 = vtanh.f32 %v5894_v8 }
 0x571   :  { %7481 = vtanh.f32 %v5896_v12 }
 0x578   :  { %v7476_v52 = vpop.eup %7475 }
 0x579   :  { %v7478_v54 = vpop.eup %7477  ;;  %v5993_v56 = vmul.f32 0.5, %v7476_v52 }
 0x57a   :  { %v7480_v60 = vpop.eup %7479  ;;  %v5995_v22 = vmul.f32 0.5, %v7478_v54 }
 0x57b   :  { %v7482_v62 = vpop.eup %7481  ;;  %v6043_v50 = vadd.f32 0.5, %v5993_v56  ;;  %v5994_v1 = vmul.f32 0.5, %v7480_v60 }
 0x57c   :  { %v6045_v3 = vadd.f32 0.5, %v5995_v22  ;;  %v5996_v5 = vmul.f32 0.5, %v7482_v62 }
 0x57d   :  { %v6044_v7 = vadd.f32 0.5, %v5994_v1 }
 0x57e   :  { %v6046_v9 = vadd.f32 0.5, %v5996_v5 }
 0x57f   :  { %v6125_v11 = vcombine.low %v6043_v50, %v6044_v7 }
 0x580   :  { %v6126_v13 = vcombine.low %v6045_v3, %v6046_v9 }
 0x581   :  { %6175 = vst [vmem:[#allocation9 + $0x90] sm:$0x77] %v6125_v11 }
 0x582   :  { %6176 = vst [vmem:[#allocation9 + $0x98] sm:$0x77] %v6126_v13  ;;  %v5599_v13 = vld [vmem:[#allocation8 + $0x30] sm:$0x3] }
 0x583   :  { %v5802_v16 = vrot.slane %v5599_v13, %v9594_v51 }
 0x58b   :  { %v5372_v27 = vpop.f32.mrb[36].mxu0  ;;  %v5413_v49 = vpop.f32.mrb[44].mxu1 }
 0x58c   :  { %v5897_v37 = vsub.f32 %v5372_v27, %v5770_v19  ;;  %v5899_v31 = vsub.f32 %v5413_v49, %v5778_v21  ;;  %v5374_v33 = vpop.f32.mrb[37].mxu0  ;;  %v5415_v36 = vpop.f32.mrb[45].mxu1  ;;  %v5806_v19 = vrot.slane %v5599_v13, %v9597_v55 }
 0x58d   :  { %v5898_v14 = vsub.f32 %v5374_v33, %v5774_v23  ;;  %v5900_v17 = vsub.f32 %v5415_v36, %v5782_v25  ;;  %v5376_v18 = vpop.f32.mrb[38].mxu0  ;;  %v5417_v41 = vpop.f32.mrb[46].mxu1 }
 0x58e   :  { %7483 = vtanh.f32 %v5897_v37  ;;  %v5377_v20 = vpop.f32.mrb[39].mxu0  ;;  %v5418_v24 = vpop.f32.mrb[47].mxu1 }
 0x58f   :  { %7485 = vtanh.f32 %v5899_v31 }
 0x590   :  { %7487 = vtanh.f32 %v5898_v14 }
 0x591   :  { %7489 = vtanh.f32 %v5900_v17 }
 0x598   :  { %v7484_v32 = vpop.eup %7483 }
 0x599   :  { %v7486_v26 = vpop.eup %7485  ;;  %v5997_v28 = vmul.f32 0.5, %v7484_v32 }
 0x59a   :  { %v7488_v39 = vpop.eup %7487  ;;  %v5999_v0 = vmul.f32 0.5, %v7486_v26 }
 0x59b   :  { %v7490_v30 = vpop.eup %7489  ;;  %v6047_v58 = vadd.f32 0.5, %v5997_v28  ;;  %v5998_v34 = vmul.f32 0.5, %v7488_v39 }
 0x59c   :  { %v6049_v35 = vadd.f32 0.5, %v5999_v0  ;;  %v6000_v10 = vmul.f32 0.5, %v7490_v30 }
 0x59d   :  { %v6048_v42 = vadd.f32 0.5, %v5998_v34 }
 0x59e   :  { %v6050_v47 = vadd.f32 0.5, %v6000_v10 }
 0x59f   :  { %v6127_v57 = vcombine.low %v6047_v58, %v6048_v42 }
 0x5a0   :  { %v6128_v59 = vcombine.low %v6049_v35, %v6050_v47 }
 0x5a1   :  { %6177 = vst [vmem:[#allocation9 + $0xa0] sm:$0x77] %v6127_v57 }
 0x5a2   :  { %6178 = vst [vmem:[#allocation9 + $0xa8] sm:$0x77] %v6128_v59 }
 0x5ab   :  { %v5454_v4 = vpop.f32.mrb[40].mxu0  ;;  %v5495_v45 = vpop.f32.mrb[48].mxu1 }
 0x5ac   :  { %v5901_v6 = vsub.f32 %v5454_v4, %v5786_v29  ;;  %v5903_v8 = vsub.f32 %v5495_v45, %v5794_v61  ;;  %v5456_v12 = vpop.f32.mrb[41].mxu0  ;;  %v5497_v43 = vpop.f32.mrb[49].mxu1 }
 0x5ad   :  { %v5902_v38 = vsub.f32 %v5456_v12, %v5790_v63  ;;  %v5904_v46 = vsub.f32 %v5497_v43, %v5798_v2  ;;  %v5458_v48 = vpop.f32.mrb[42].mxu0  ;;  %v5499_v52 = vpop.f32.mrb[50].mxu1 }
 0x5ae   :  { %7491 = vtanh.f32 %v5901_v6  ;;  %v5459_v54 = vpop.f32.mrb[43].mxu0  ;;  %v5500_v56 = vpop.f32.mrb[51].mxu1 }
 0x5af   :  { %7493 = vtanh.f32 %v5903_v8 }
 0x5b0   :  { %7495 = vtanh.f32 %v5902_v38 }
 0x5b1   :  { %7497 = vtanh.f32 %v5904_v46 }
 0x5b8   :  { %v7492_v53 = vpop.eup %7491 }
 0x5b9   :  { %v7494_v15 = vpop.eup %7493  ;;  %v6001_v40 = vmul.f32 0.5, %v7492_v53 }
 0x5ba   :  { %v7496_v44 = vpop.eup %7495  ;;  %v6003_v60 = vmul.f32 0.5, %v7494_v15 }
 0x5bb   :  { %v7498_v22 = vpop.eup %7497  ;;  %v6051_v62 = vadd.f32 0.5, %v6001_v40  ;;  %v6002_v50 = vmul.f32 0.5, %v7496_v44 }
 0x5bc   :  { %v6053_v1 = vadd.f32 0.5, %v6003_v60  ;;  %v6004_v3 = vmul.f32 0.5, %v7498_v22 }
 0x5bd   :  { %v6052_v5 = vadd.f32 0.5, %v6002_v50 }
 0x5be   :  { %v6054_v7 = vadd.f32 0.5, %v6004_v3 }
 0x5bf   :  { %v6129_v9 = vcombine.low %v6051_v62, %v6052_v5 }
 0x5c0   :  { %v6130_v11 = vcombine.low %v6053_v1, %v6054_v7 }
 0x5c1   :  { %6179 = vst [vmem:[#allocation9 + $0xb0] sm:$0x77] %v6129_v9 }
 0x5c2   :  { %6180 = vst [vmem:[#allocation9 + $0xb8] sm:$0x77] %v6130_v11 }
 0x5cb   :  { %v5536_v21 = vpop.f32.mrb[44].mxu0 }
 0x5cc   :  { %v5905_v23 = vsub.f32 %v5536_v21, %v5802_v16  ;;  %v5538_v25 = vpop.f32.mrb[45].mxu0 }
 0x5cd   :  { %v5906_v27 = vsub.f32 %v5538_v25, %v5806_v19  ;;  %v5540_v49 = vpop.f32.mrb[46].mxu0 }
 0x5ce   :  { %7499 = vtanh.f32 %v5905_v23  ;;  %v5541_v37 = vpop.f32.mrb[47].mxu0 }
 0x5cf   :  { %7501 = vtanh.f32 %v5906_v27 }
 0x5d8   :  { %v7500_v31 = vpop.eup %7499 }
 0x5d9   :  { %v7502_v33 = vpop.eup %7501  ;;  %v6005_v36 = vmul.f32 0.5, %v7500_v31 }
 0x5da   :  { %v6006_v14 = vmul.f32 0.5, %v7502_v33 }
 0x5db   :  { %v6055_v17 = vadd.f32 0.5, %v6005_v36 }
 0x5dc   :  { %v6056_v18 = vadd.f32 0.5, %v6006_v14 }
 0x5de   :  { %v6131_v41 = vcombine.low %v6055_v17, %v6056_v18 }
 0x5e0   :  { %6181 = vst [vmem:[#allocation9 + $0xc0] sm:$0x77] %v6131_v41 }
 0x5e1   :  { %8045 = shalt.err (!%p8042_p0)
}
 0x5e2   :  { %s8046_s30 = scalar_lea.hbm %s9764_s4, 3200 }
 0x5e3   :  { %p8047_p1 = scmp.ne.s32.totalorder %s9764_s4, %s8046_s30  ;;  %p8050_p2 = scmp.lt.u32.totalorder %s8046_s30, %s9764_s4 }
 0x5e5   :  { %p8052_p3 = pnand %p8050_p2, %p8047_p1 }
 0x5e7   :  { %8055 = shalt.err (!%p8052_p3)
}
 0x5e8   :  { %6191 = dma.vmem_to_hbm [thread:$0]  %s6189_s26, 3200, %s9764_s4, [#allocation5]  }
 0x5e9   :  { %8060 = dma.done.wait [#allocation5], 3200  }
 0x5ea   :  { %8061 = vsyncadd [#allocation5], 4294964096 }
 0x5eb   :  { %6195 = vsyncpa [#allocation4], 1 }
 0x5ec   :  { %6196 = vsyncpa [#allocation7], 1 }
 0x5ed   :  { %6197 = vsyncpa [#allocation5], 1 }

</bundles_post_ra>
